<compile_context>
chip_gen: v7x
topology: tpu7x:2x2x1
jax: 0.10.0
libtpu: 0.0.40
codegen_flags: <defaults>
</compile_context>

<pallas_src>
import math

import jax
import jax.numpy as jnp
from jax.experimental import pallas as pl
from jax.experimental.pallas import tpu as pltpu

LANE = 128
SUBLANE = 8
VMEM_LIMIT = 40 * 1024 * 1024  # safe on v7x (64 MiB physical) and below
MAX_TILE = 3072                # big-layer K/N tile cap (v7x VMEM-derived)


def _round_up(x, m):
    return (x + m - 1) // m * m


def _pad_to(a, shape):
    pads = [(0, s - d) for d, s in zip(a.shape, shape)]
    return jnp.pad(a, pads)


def _pick_tile(in_pad, cap=MAX_TILE):
    """Largest multiple of LANE that divides in_pad, capped at `cap`."""
    best = LANE
    t = LANE
    while t <= min(in_pad, cap):
        if in_pad % t == 0:
            best = t
        t += LANE
    return best


# --------------------------------------------------------------------------
# Kernel 1: encoder L1 (K-tiled reduction) + fused small layers in epilogue
# --------------------------------------------------------------------------
def enc_fused_kernel(
    x_ref, we1_ref, be1_ref, eps_ref,
    we2_ref, be2_ref, we3_ref, be3_ref,
    whead_ref, bhead_ref,
    wd1_ref, bd1_ref, wd2_ref, bd2_ref, wd3_ref, bd3_ref,
    mu_ref, sigma_ref, d3_ref,
    acc_ref,
):
    k = pl.program_id(0)
    tile = we1_ref.shape[0]

    @pl.when(k == 0)
    def _():
        acc_ref[...] = jnp.zeros_like(acc_ref)

    # x is fully VMEM-resident; slice the current K-chunk in-kernel.
    off = pl.multiple_of(k * tile, LANE)
    xk = x_ref[:, pl.ds(off, tile)]
    acc_ref[...] += jnp.dot(xk, we1_ref[...], preferred_element_type=jnp.float32)

    @pl.when(k == pl.num_programs(0) - 1)
    def _():
        f32 = jnp.float32
        bf16 = jnp.bfloat16

        def linear(h, w_ref, b_ref):
            return jnp.dot(h, w_ref[...], preferred_element_type=f32) + b_ref[...]

        # encoder tail
        h1 = jnp.maximum(acc_ref[...] + be1_ref[...], 0.0).astype(bf16)      # (B,1024)
        h2 = jnp.maximum(linear(h1, we2_ref, be2_ref), 0.0).astype(bf16)     # (B,256)
        h3 = jnp.maximum(linear(h2, we3_ref, be3_ref), 0.0).astype(bf16)     # (B,128)

        # fused mu/logvar head: one matmul, split along lanes (128-aligned)
        head = linear(h3, whead_ref, bhead_ref)                              # (B,2*lat)
        lat = mu_ref.shape[1]
        mu = head[:, :lat]
        logvar = head[:, lat:]
        sigma = jnp.exp(0.5 * logvar)   # NOTE: padded latent lanes are exp(0)=1;
                                        # harmless, wrapper slices them off.

        # reparameterize (padded eps / mu lanes are 0 -> padded z lanes are 0)
        z = (mu + sigma * eps_ref[...]).astype(bf16)                         # (B,lat)

        # decoder head (up to the last big layer)
        d1 = jnp.maximum(linear(z, wd1_ref, bd1_ref), 0.0).astype(bf16)      # (B,128)
        d2 = jnp.maximum(linear(d1, wd2_ref, bd2_ref), 0.0).astype(bf16)     # (B,256)
        d3 = jnp.maximum(linear(d2, wd3_ref, bd3_ref), 0.0).astype(bf16)     # (B,1024)

        mu_ref[...] = mu.astype(mu_ref.dtype)
        sigma_ref[...] = sigma.astype(sigma_ref.dtype)
        d3_ref[...] = d3.astype(d3_ref.dtype)


# --------------------------------------------------------------------------
# Kernel 2: decoder L4 (d @ W + b, sigmoid), N-tiled over input_dim (parallel)
# --------------------------------------------------------------------------
def dec_l4_kernel(d_ref, w_ref, b_ref, o_ref):
    y = jnp.dot(d_ref[...], w_ref[...], preferred_element_type=jnp.float32)
    o_ref[...] = jax.nn.sigmoid(y + b_ref[...]).astype(o_ref.dtype)


# --------------------------------------------------------------------------
# Parameters (PyTorch nn.Linear init), stored pre-padded / bf16
# --------------------------------------------------------------------------
def _torch_linear_init(key, fan_in, fan_out):
    kw, kb = jax.random.split(key)
    bound = 1.0 / math.sqrt(fan_in)
    w = jax.random.uniform(kw, (fan_in, fan_out), jnp.float32, -bound, bound)
    b = jax.random.uniform(kb, (1, fan_out), jnp.float32, -bound, bound)
    return w, b


def build_params(key, input_dim, latent_dim):
    """Weights laid out (fan_in, fan_out) so kernels do x @ W + b.

    Returns (params, raw): params holds padded bf16 weights / f32 biases used
    by the kernels; raw holds unpadded bf16 weights / f32 biases for a pure
    JAX reference check.
    """
    bf16 = jnp.bfloat16
    in_pad = _round_up(input_dim, LANE)
    lat_pad = _round_up(latent_dim, LANE)
    tile = _pick_tile(in_pad)

    keys = jax.random.split(key, 9)
    we1, be1 = _torch_linear_init(keys[0], input_dim, 1024)
    we2, be2 = _torch_linear_init(keys[1], 1024, 256)
    we3, be3 = _torch_linear_init(keys[2], 256, 64)
    wmu, bmu = _torch_linear_init(keys[3], 64, latent_dim)
    wlv, blv = _torch_linear_init(keys[4], 64, latent_dim)
    wd1, bd1 = _torch_linear_init(keys[5], latent_dim, 64)
    wd2, bd2 = _torch_linear_init(keys[6], 64, 256)
    wd3, bd3 = _torch_linear_init(keys[7], 256, 1024)
    wd4, bd4 = _torch_linear_init(keys[8], 1024, input_dim)

    # fused mu/logvar head, rows padded 64->128, columns padded latent->lat_pad
    whead = jnp.concatenate(
        [_pad_to(wmu, (64, lat_pad)), _pad_to(wlv, (64, lat_pad))], axis=1)
    bhead = jnp.concatenate(
        [_pad_to(bmu, (1, lat_pad)), _pad_to(blv, (1, lat_pad))], axis=1)

    params = {
        "tile": tile, "in_pad": in_pad, "lat_pad": lat_pad,
        # encoder L1 (padded K rows are zero -> no contribution)
        "we1": _pad_to(we1, (in_pad, 1024)).astype(bf16), "be1": be1,
        # fused small layers (64-wide dims padded to 128 lanes)
        "we2": we2.astype(bf16), "be2": be2,
        "we3": _pad_to(we3, (256, 128)).astype(bf16), "be3": _pad_to(be3, (1, 128)),
        "whead": _pad_to(whead, (128, 2 * lat_pad)).astype(bf16), "bhead": bhead,
        "wd1": _pad_to(wd1, (lat_pad, 128)).astype(bf16), "bd1": _pad_to(bd1, (1, 128)),
        "wd2": _pad_to(wd2, (128, 256)).astype(bf16), "bd2": bd2,
        "wd3": wd3.astype(bf16), "bd3": bd3,
        # decoder L4 (padded output columns sliced off in the wrapper)
        "wd4": _pad_to(wd4, (1024, in_pad)).astype(bf16),
        "bd4": _pad_to(bd4, (1, in_pad)),
    }
    raw = {
        "we1": we1.astype(bf16), "be1": be1, "we2": we2.astype(bf16), "be2": be2,
        "we3": we3.astype(bf16), "be3": be3, "wmu": wmu.astype(bf16), "bmu": bmu,
        "wlv": wlv.astype(bf16), "blv": blv, "wd1": wd1.astype(bf16), "bd1": bd1,
        "wd2": wd2.astype(bf16), "bd2": bd2, "wd3": wd3.astype(bf16), "bd3": bd3,
        "wd4": wd4.astype(bf16), "bd4": bd4,
    }
    return params, raw


# --------------------------------------------------------------------------
# Forward wrapper: pad -> 2 pallas_calls -> slice back
# --------------------------------------------------------------------------
def vae_forward(x, eps, params):
    """x: (B, input_dim) f32, eps: (B, latent_dim) f32. Returns (recon, mu, sigma)."""
    B, input_dim = x.shape
    latent_dim = eps.shape[1]
    tile, in_pad, lat_pad = params["tile"], params["in_pad"], params["lat_pad"]
    B_pad = _round_up(B, SUBLANE)

    x_p = _pad_to(x, (B_pad, in_pad)).astype(jnp.bfloat16)
    eps_p = _pad_to(eps, (B_pad, lat_pad)).astype(jnp.float32)

    cparams_arb = pltpu.CompilerParams(
        dimension_semantics=("arbitrary",), vmem_limit_bytes=VMEM_LIMIT)
    cparams_par = pltpu.CompilerParams(
        dimension_semantics=("parallel",), vmem_limit_bytes=VMEM_LIMIT)

    const = lambda k: (0, 0)  # VMEM-resident (constant block index) inputs/outputs

    # ---- encoder L1 (K-tiled) + fused small layers in the final-K epilogue ----
    num_k = in_pad // tile
    mu_p, sigma_p, d3 = pl.pallas_call(
        enc_fused_kernel,
        out_shape=(
            jax.ShapeDtypeStruct((B_pad, lat_pad), jnp.float32),
            jax.ShapeDtypeStruct((B_pad, lat_pad), jnp.float32),
            jax.ShapeDtypeStruct((B_pad, 1024), jnp.bfloat16),
        ),
        grid_spec=pltpu.PrefetchScalarGridSpec(
            num_scalar_prefetch=0,
            grid=(num_k,),
            in_specs=[
                pl.BlockSpec((B_pad, in_pad), const),          # x (resident)
                pl.BlockSpec((tile, 1024), lambda k: (k, 0)),  # we1 slab
                pl.BlockSpec((1, 1024), const),                # be1
                pl.BlockSpec((B_pad, lat_pad), const),         # eps
                pl.BlockSpec((1024, 256), const),              # we2
                pl.BlockSpec((1, 256), const),                 # be2
                pl.BlockSpec((256, 128), const),               # we3
                pl.BlockSpec((1, 128), const),                 # be3
                pl.BlockSpec((128, 2 * lat_pad), const),       # whead
                pl.BlockSpec((1, 2 * lat_pad), const),         # bhead
                pl.BlockSpec((lat_pad, 128), const),           # wd1
                pl.BlockSpec((1, 128), const),                 # bd1
                pl.BlockSpec((128, 256), const),               # wd2
                pl.BlockSpec((1, 256), const),                 # bd2
                pl.BlockSpec((256, 1024), const),              # wd3
                pl.BlockSpec((1, 1024), const),                # bd3
            ],
            out_specs=(
                pl.BlockSpec((B_pad, lat_pad), const),
                pl.BlockSpec((B_pad, lat_pad), const),
                pl.BlockSpec((B_pad, 1024), const),
            ),
            scratch_shapes=[pltpu.VMEM((B_pad, 1024), jnp.float32)],
        ),
        compiler_params=cparams_arb,
    )(
        x_p, params["we1"], params["be1"], eps_p,
        params["we2"], params["be2"], params["we3"], params["be3"],
        params["whead"], params["bhead"],
        params["wd1"], params["bd1"], params["wd2"], params["bd2"],
        params["wd3"], params["bd3"],
    )

    # ---- decoder L4: N-tiled over input_dim, parallel grid (megacore) ----
    num_n = in_pad // tile
    recon_p = pl.pallas_call(
        dec_l4_kernel,
        out_shape=jax.ShapeDtypeStruct((B_pad, in_pad), jnp.float32),
        grid_spec=pltpu.PrefetchScalarGridSpec(
            num_scalar_prefetch=0,
            grid=(num_n,),
            in_specs=[
                pl.BlockSpec((B_pad, 1024), lambda j: (0, 0)),   # d3 (resident)
                pl.BlockSpec((1024, tile), lambda j: (0, j)),    # wd4 slab
                pl.BlockSpec((1, tile), lambda j: (0, j)),       # bd4 slab
            ],
            out_specs=pl.BlockSpec((B_pad, tile), lambda j: (0, j)),
        ),
        compiler_params=cparams_par,
    )(d3, params["wd4"], params["bd4"])

    # slice padding away
    recon = recon_p[:B, :input_dim]
    mu = mu_p[:B, :latent_dim]
    sigma = sigma_p[:B, :latent_dim]
    return recon, mu, sigma


# --------------------------------------------------------------------------
# Pure-JAX reference (same bf16 weight / activation quantization as the kernels)
# --------------------------------------------------------------------------
def vae_reference(x, eps, raw):
    bf16, f32 = jnp.bfloat16, jnp.float32

    def lin(h, w, b):
        return jnp.dot(h.astype(f32), w.astype(f32)) + b

    h = x.astype(bf16)
    h = jnp.maximum(lin(h, raw["we1"], raw["be1"]), 0.0).astype(bf16)
    h = jnp.maximum(lin(h, raw["we2"], raw["be2"]), 0.0).astype(bf16)
    h = jnp.maximum(lin(h, raw["we3"], raw["be3"]), 0.0).astype(bf16)
    mu = lin(h, raw["wmu"], raw["bmu"])
    logvar = lin(h, raw["wlv"], raw["blv"])
    sigma = jnp.exp(0.5 * logvar)
    z = (mu + sigma * eps).astype(bf16)
    d = jnp.maximum(lin(z, raw["wd1"], raw["bd1"]), 0.0).astype(bf16)
    d = jnp.maximum(lin(d, raw["wd2"], raw["bd2"]), 0.0).astype(bf16)
    d = jnp.maximum(lin(d, raw["wd3"], raw["bd3"]), 0.0).astype(bf16)
    recon = jax.nn.sigmoid(lin(d, raw["wd4"], raw["bd4"]))
    return recon, mu, sigma


if __name__ == "__main__":
    # Small shapes consistent with the module: a 16x16x3 image flattened,
    # latent_dim kept at the module's default of 100.
    B = 2
    INPUT_DIM = 16 * 16 * 3   # 768 (scaled down from 64*64*3 for a small example)
    LATENT_DIM = 100

    root = jax.random.PRNGKey(0)
    k_x, k_eps, k_params = jax.random.split(root, 3)

    x = jax.random.uniform(k_x, (B, INPUT_DIM), jnp.float32)      # image-like input
    # TODO(synk): torch.randn_like is generated host-side and passed in; could
    # be moved in-kernel with pltpu.prng_seed / pltpu.stateful_normal.
    eps = jax.random.normal(k_eps, (B, LATENT_DIM), jnp.float32)  # reparam noise
    params, raw = build_params(k_params, INPUT_DIM, LATENT_DIM)

    recon, mu, sigma = vae_forward(x, eps, params)
    jax.block_until_ready((recon, mu, sigma))

    assert recon.shape == (B, INPUT_DIM)
    assert mu.shape == (B, LATENT_DIM)
    assert sigma.shape == (B, LATENT_DIM)
    assert bool(jnp.all((recon >= 0.0) & (recon <= 1.0)))
    assert bool(jnp.all(sigma > 0.0))

    # numerical check against a pure-JAX reference with matching quantization
    r_ref, mu_ref, sig_ref = vae_reference(x, eps, raw)
    assert bool(jnp.allclose(recon, r_ref, rtol=5e-2, atol=5e-2))
    assert bool(jnp.allclose(mu, mu_ref, rtol=5e-2, atol=5e-2))
    assert bool(jnp.allclose(sigma, sig_ref, rtol=5e-2, atol=5e-2))

    print("KERNEL_OK")
</pallas_src>

<mosaic_0001>
module attributes {stable_mosaic.version = 11 : i64} {
  func.func @enc_fused_kernel(%arg0: i32, %arg1: memref<8x768xbf16, #tpu.memory_space<vmem>>, %arg2: memref<768x1024xbf16, #tpu.memory_space<vmem>>, %arg3: memref<1x1024xf32, #tpu.memory_space<vmem>>, %arg4: memref<8x128xf32, #tpu.memory_space<vmem>>, %arg5: memref<1024x256xbf16, #tpu.memory_space<vmem>>, %arg6: memref<1x256xf32, #tpu.memory_space<vmem>>, %arg7: memref<256x128xbf16, #tpu.memory_space<vmem>>, %arg8: memref<1x128xf32, #tpu.memory_space<vmem>>, %arg9: memref<128x256xbf16, #tpu.memory_space<vmem>>, %arg10: memref<1x256xf32, #tpu.memory_space<vmem>>, %arg11: memref<128x128xbf16, #tpu.memory_space<vmem>>, %arg12: memref<1x128xf32, #tpu.memory_space<vmem>>, %arg13: memref<128x256xbf16, #tpu.memory_space<vmem>>, %arg14: memref<1x256xf32, #tpu.memory_space<vmem>>, %arg15: memref<256x1024xbf16, #tpu.memory_space<vmem>>, %arg16: memref<1x1024xf32, #tpu.memory_space<vmem>>, %arg17: memref<8x128xf32, #tpu.memory_space<vmem>>, %arg18: memref<8x128xf32, #tpu.memory_space<vmem>>, %arg19: memref<8x1024xbf16, #tpu.memory_space<vmem>>, %arg20: memref<8x1024xf32, #tpu.memory_space<vmem>>) attributes {dimension_semantics = [#tpu.dimension_semantics<arbitrary>], iteration_bounds = array<i64: 1>, scalar_prefetch = 0 : i64, scratch_operands = 1 : i64, tpu.core_type = #tpu.core_type<tc>, window_params = [{pipeline_mode = #tpu.pipeline_mode<synchronous>, transform_indices = @transform_0, window_bounds = array<i64: 8, 768>}, {transform_indices = @transform_1, window_bounds = array<i64: 768, 1024>}, {pipeline_mode = #tpu.pipeline_mode<synchronous>, transform_indices = @transform_2, window_bounds = array<i64: 1, 1024>}, {pipeline_mode = #tpu.pipeline_mode<synchronous>, transform_indices = @transform_3, window_bounds = array<i64: 8, 128>}, {pipeline_mode = #tpu.pipeline_mode<synchronous>, transform_indices = @transform_4, window_bounds = array<i64: 1024, 256>}, {pipeline_mode = #tpu.pipeline_mode<synchronous>, transform_indices = @transform_5, window_bounds = array<i64: 1, 256>}, {pipeline_mode = #tpu.pipeline_mode<synchronous>, transform_indices = @transform_6, window_bounds = array<i64: 256, 128>}, {pipeline_mode = #tpu.pipeline_mode<synchronous>, transform_indices = @transform_7, window_bounds = array<i64: 1, 128>}, {pipeline_mode = #tpu.pipeline_mode<synchronous>, transform_indices = @transform_8, window_bounds = array<i64: 128, 256>}, {pipeline_mode = #tpu.pipeline_mode<synchronous>, transform_indices = @transform_9, window_bounds = array<i64: 1, 256>}, {pipeline_mode = #tpu.pipeline_mode<synchronous>, transform_indices = @transform_10, window_bounds = array<i64: 128, 128>}, {pipeline_mode = #tpu.pipeline_mode<synchronous>, transform_indices = @transform_11, window_bounds = array<i64: 1, 128>}, {pipeline_mode = #tpu.pipeline_mode<synchronous>, transform_indices = @transform_12, window_bounds = array<i64: 128, 256>}, {pipeline_mode = #tpu.pipeline_mode<synchronous>, transform_indices = @transform_13, window_bounds = array<i64: 1, 256>}, {pipeline_mode = #tpu.pipeline_mode<synchronous>, transform_indices = @transform_14, window_bounds = array<i64: 256, 1024>}, {pipeline_mode = #tpu.pipeline_mode<synchronous>, transform_indices = @transform_15, window_bounds = array<i64: 1, 1024>}, {pipeline_mode = #tpu.pipeline_mode<synchronous>, transform_indices = @transform_16, window_bounds = array<i64: 8, 128>}, {pipeline_mode = #tpu.pipeline_mode<synchronous>, transform_indices = @transform_17, window_bounds = array<i64: 8, 128>}, {pipeline_mode = #tpu.pipeline_mode<synchronous>, transform_indices = @transform_18, window_bounds = array<i64: 8, 1024>}]} {
    %c0_i32 = arith.constant 0 : i32
    %0 = arith.cmpi eq, %arg0, %c0_i32 : i32
    %1 = arith.extui %0 : i1 to i32
    %c0_i32_0 = arith.constant 0 : i32
    %2 = arith.cmpi ne, %1, %c0_i32_0 : i32
    scf.if %2 {
      %cst_9 = arith.constant 0.000000e+00 : f32
      %15 = vector.broadcast %cst_9 : f32 to vector<8x1024xf32>
      %c0_10 = arith.constant 0 : index
      %c0_11 = arith.constant 0 : index
      %16 = vector.load %arg20[%c0_10, %c0_11] : memref<8x1024xf32, #tpu.memory_space<vmem>>, vector<8x1024xf32>
      tpu.vector_store %arg20[%c0_10, %c0_11], %15 {strides = array<i32>} : memref<8x1024xf32, #tpu.memory_space<vmem>>, vector<8x1024xf32>,
    } else {
    }
    %c768_i32 = arith.constant 768 : i32
    %3 = arith.muli %arg0, %c768_i32 : i32
    %4 = tpu.assume_multiple %3, 128 : i32
    %c0 = arith.constant 0 : index
    %5 = arith.index_cast %4 : i32 to index
    %6 = vector.load %arg1[%c0, %5] : memref<8x768xbf16, #tpu.memory_space<vmem>>, vector<8x768xbf16>
    %c0_1 = arith.constant 0 : index
    %c0_2 = arith.constant 0 : index
    %7 = vector.load %arg20[%c0_1, %c0_2] : memref<8x1024xf32, #tpu.memory_space<vmem>>, vector<8x1024xf32>
    %c0_3 = arith.constant 0 : index
    %c0_4 = arith.constant 0 : index
    %8 = vector.load %arg2[%c0_3, %c0_4] : memref<768x1024xbf16, #tpu.memory_space<vmem>>, vector<768x1024xbf16>
    %cst = arith.constant dense<0.000000e+00> : vector<8x1024xf32>
    %9 = tpu.matmul %6, %8, %cst {dimension_numbers = #tpu.dot_dimension_numbers<[1], [0], [0], [1], [0, 0, 1, 1], [], []>} : vector<8x768xbf16>, vector<768x1024xbf16>, vector<8x1024xf32> -> vector<8x1024xf32>
    %10 = arith.addf %7, %9 : vector<8x1024xf32>
    %c0_5 = arith.constant 0 : index
    %c0_6 = arith.constant 0 : index
    %11 = vector.load %arg20[%c0_5, %c0_6] : memref<8x1024xf32, #tpu.memory_space<vmem>>, vector<8x1024xf32>
    tpu.vector_store %arg20[%c0_5, %c0_6], %10 {strides = array<i32>} : memref<8x1024xf32, #tpu.memory_space<vmem>>, vector<8x1024xf32>,
    %c0_i32_7 = arith.constant 0 : i32
    %12 = arith.cmpi eq, %arg0, %c0_i32_7 : i32
    %13 = arith.extui %12 : i1 to i32
    %c0_i32_8 = arith.constant 0 : i32
    %14 = arith.cmpi ne, %13, %c0_i32_8 : i32
    scf.if %14 {
      %c0_9 = arith.constant 0 : index
      %c0_10 = arith.constant 0 : index
      %15 = vector.load %arg20[%c0_9, %c0_10] : memref<8x1024xf32, #tpu.memory_space<vmem>>, vector<8x1024xf32>
      %c0_11 = arith.constant 0 : index
      %c0_12 = arith.constant 0 : index
      %16 = vector.load %arg3[%c0_11, %c0_12] : memref<1x1024xf32, #tpu.memory_space<vmem>>, vector<1x1024xf32>
      %17 = vector.broadcast %16 : vector<1x1024xf32> to vector<8x1024xf32>
      %18 = arith.addf %15, %17 : vector<8x1024xf32>
      %cst_13 = arith.constant 0.000000e+00 : f32
      %19 = vector.broadcast %cst_13 : f32 to vector<8x1024xf32>
      %20 = arith.maximumf %18, %19 : vector<8x1024xf32>
      %21 = arith.truncf %20 : vector<8x1024xf32> to vector<8x1024xbf16>
      %c0_14 = arith.constant 0 : index
      %c0_15 = arith.constant 0 : index
      %22 = vector.load %arg5[%c0_14, %c0_15] : memref<1024x256xbf16, #tpu.memory_space<vmem>>, vector<1024x256xbf16>
      %cst_16 = arith.constant dense<0.000000e+00> : vector<8x256xf32>
      %23 = tpu.matmul %21, %22, %cst_16 {dimension_numbers = #tpu.dot_dimension_numbers<[1], [0], [0], [1], [0, 0, 1, 1], [], []>} : vector<8x1024xbf16>, vector<1024x256xbf16>, vector<8x256xf32> -> vector<8x256xf32>
      %c0_17 = arith.constant 0 : index
      %c0_18 = arith.constant 0 : index
      %24 = vector.load %arg6[%c0_17, %c0_18] : memref<1x256xf32, #tpu.memory_space<vmem>>, vector<1x256xf32>
      %25 = vector.broadcast %24 : vector<1x256xf32> to vector<8x256xf32>
      %26 = arith.addf %23, %25 : vector<8x256xf32>
      %cst_19 = arith.constant 0.000000e+00 : f32
      %27 = vector.broadcast %cst_19 : f32 to vector<8x256xf32>
      %28 = arith.maximumf %26, %27 : vector<8x256xf32>
      %29 = arith.truncf %28 : vector<8x256xf32> to vector<8x256xbf16>
      %c0_20 = arith.constant 0 : index
      %c0_21 = arith.constant 0 : index
      %30 = vector.load %arg7[%c0_20, %c0_21] : memref<256x128xbf16, #tpu.memory_space<vmem>>, vector<256x128xbf16>
      %cst_22 = arith.constant dense<0.000000e+00> : vector<8x128xf32>
      %31 = tpu.matmul %29, %30, %cst_22 {dimension_numbers = #tpu.dot_dimension_numbers<[1], [0], [0], [1], [0, 0, 1, 1], [], []>} : vector<8x256xbf16>, vector<256x128xbf16>, vector<8x128xf32> -> vector<8x128xf32>
      %c0_23 = arith.constant 0 : index
      %c0_24 = arith.constant 0 : index
      %32 = vector.load %arg8[%c0_23, %c0_24] : memref<1x128xf32, #tpu.memory_space<vmem>>, vector<1x128xf32>
      %33 = vector.broadcast %32 : vector<1x128xf32> to vector<8x128xf32>
      %34 = arith.addf %31, %33 : vector<8x128xf32>
      %cst_25 = arith.constant 0.000000e+00 : f32
      %35 = vector.broadcast %cst_25 : f32 to vector<8x128xf32>
      %36 = arith.maximumf %34, %35 : vector<8x128xf32>
      %37 = arith.truncf %36 : vector<8x128xf32> to vector<8x128xbf16>
      %c0_26 = arith.constant 0 : index
      %c0_27 = arith.constant 0 : index
      %38 = vector.load %arg9[%c0_26, %c0_27] : memref<128x256xbf16, #tpu.memory_space<vmem>>, vector<128x256xbf16>
      %cst_28 = arith.constant dense<0.000000e+00> : vector<8x256xf32>
      %39 = tpu.matmul %37, %38, %cst_28 {dimension_numbers = #tpu.dot_dimension_numbers<[1], [0], [0], [1], [0, 0, 1, 1], [], []>} : vector<8x128xbf16>, vector<128x256xbf16>, vector<8x256xf32> -> vector<8x256xf32>
      %c0_29 = arith.constant 0 : index
      %c0_30 = arith.constant 0 : index
      %40 = vector.load %arg10[%c0_29, %c0_30] : memref<1x256xf32, #tpu.memory_space<vmem>>, vector<1x256xf32>
      %41 = vector.broadcast %40 : vector<1x256xf32> to vector<8x256xf32>
      %42 = arith.addf %39, %41 : vector<8x256xf32>
      %43 = vector.extract_strided_slice %42 {offsets = [0, 0], sizes = [8, 128], strides = [1, 1]} : vector<8x256xf32> to vector<8x128xf32>
      %44 = vector.extract_strided_slice %42 {offsets = [0, 128], sizes = [8, 128], strides = [1, 1]} : vector<8x256xf32> to vector<8x128xf32>
      %cst_31 = arith.constant 5.000000e-01 : f32
      %45 = vector.broadcast %cst_31 : f32 to vector<8x128xf32>
      %46 = arith.mulf %45, %44 : vector<8x128xf32>
      %47 = math.exp %46 : vector<8x128xf32>
      %c0_32 = arith.constant 0 : index
      %c0_33 = arith.constant 0 : index
      %48 = vector.load %arg4[%c0_32, %c0_33] : memref<8x128xf32, #tpu.memory_space<vmem>>, vector<8x128xf32>
      %49 = arith.mulf %47, %48 : vector<8x128xf32>
      %50 = arith.addf %43, %49 : vector<8x128xf32>
      %51 = arith.truncf %50 : vector<8x128xf32> to vector<8x128xbf16>
      %c0_34 = arith.constant 0 : index
      %c0_35 = arith.constant 0 : index
      %52 = vector.load %arg11[%c0_34, %c0_35] : memref<128x128xbf16, #tpu.memory_space<vmem>>, vector<128x128xbf16>
      %cst_36 = arith.constant dense<0.000000e+00> : vector<8x128xf32>
      %53 = tpu.matmul %51, %52, %cst_36 {dimension_numbers = #tpu.dot_dimension_numbers<[1], [0], [0], [1], [0, 0, 1, 1], [], []>} : vector<8x128xbf16>, vector<128x128xbf16>, vector<8x128xf32> -> vector<8x128xf32>
      %c0_37 = arith.constant 0 : index
      %c0_38 = arith.constant 0 : index
      %54 = vector.load %arg12[%c0_37, %c0_38] : memref<1x128xf32, #tpu.memory_space<vmem>>, vector<1x128xf32>
      %55 = vector.broadcast %54 : vector<1x128xf32> to vector<8x128xf32>
      %56 = arith.addf %53, %55 : vector<8x128xf32>
      %cst_39 = arith.constant 0.000000e+00 : f32
      %57 = vector.broadcast %cst_39 : f32 to vector<8x128xf32>
      %58 = arith.maximumf %56, %57 : vector<8x128xf32>
      %59 = arith.truncf %58 : vector<8x128xf32> to vector<8x128xbf16>
      %c0_40 = arith.constant 0 : index
      %c0_41 = arith.constant 0 : index
      %60 = vector.load %arg13[%c0_40, %c0_41] : memref<128x256xbf16, #tpu.memory_space<vmem>>, vector<128x256xbf16>
      %cst_42 = arith.constant dense<0.000000e+00> : vector<8x256xf32>
      %61 = tpu.matmul %59, %60, %cst_42 {dimension_numbers = #tpu.dot_dimension_numbers<[1], [0], [0], [1], [0, 0, 1, 1], [], []>} : vector<8x128xbf16>, vector<128x256xbf16>, vector<8x256xf32> -> vector<8x256xf32>
      %c0_43 = arith.constant 0 : index
      %c0_44 = arith.constant 0 : index
      %62 = vector.load %arg14[%c0_43, %c0_44] : memref<1x256xf32, #tpu.memory_space<vmem>>, vector<1x256xf32>
      %63 = vector.broadcast %62 : vector<1x256xf32> to vector<8x256xf32>
      %64 = arith.addf %61, %63 : vector<8x256xf32>
      %cst_45 = arith.constant 0.000000e+00 : f32
      %65 = vector.broadcast %cst_45 : f32 to vector<8x256xf32>
      %66 = arith.maximumf %64, %65 : vector<8x256xf32>
      %67 = arith.truncf %66 : vector<8x256xf32> to vector<8x256xbf16>
      %c0_46 = arith.constant 0 : index
      %c0_47 = arith.constant 0 : index
      %68 = vector.load %arg15[%c0_46, %c0_47] : memref<256x1024xbf16, #tpu.memory_space<vmem>>, vector<256x1024xbf16>
      %cst_48 = arith.constant dense<0.000000e+00> : vector<8x1024xf32>
      %69 = tpu.matmul %67, %68, %cst_48 {dimension_numbers = #tpu.dot_dimension_numbers<[1], [0], [0], [1], [0, 0, 1, 1], [], []>} : vector<8x256xbf16>, vector<256x1024xbf16>, vector<8x1024xf32> -> vector<8x1024xf32>
      %c0_49 = arith.constant 0 : index
      %c0_50 = arith.constant 0 : index
      %70 = vector.load %arg16[%c0_49, %c0_50] : memref<1x1024xf32, #tpu.memory_space<vmem>>, vector<1x1024xf32>
      %71 = vector.broadcast %70 : vector<1x1024xf32> to vector<8x1024xf32>
      %72 = arith.addf %69, %71 : vector<8x1024xf32>
      %cst_51 = arith.constant 0.000000e+00 : f32
      %73 = vector.broadcast %cst_51 : f32 to vector<8x1024xf32>
      %74 = arith.maximumf %72, %73 : vector<8x1024xf32>
      %75 = arith.truncf %74 : vector<8x1024xf32> to vector<8x1024xbf16>
      %c0_52 = arith.constant 0 : index
      %c0_53 = arith.constant 0 : index
      %76 = vector.load %arg17[%c0_52, %c0_53] : memref<8x128xf32, #tpu.memory_space<vmem>>, vector<8x128xf32>
      tpu.vector_store %arg17[%c0_52, %c0_53], %43 {strides = array<i32>} : memref<8x128xf32, #tpu.memory_space<vmem>>, vector<8x128xf32>,
      %c0_54 = arith.constant 0 : index
      %c0_55 = arith.constant 0 : index
      %77 = vector.load %arg18[%c0_54, %c0_55] : memref<8x128xf32, #tpu.memory_space<vmem>>, vector<8x128xf32>
      tpu.vector_store %arg18[%c0_54, %c0_55], %47 {strides = array<i32>} : memref<8x128xf32, #tpu.memory_space<vmem>>, vector<8x128xf32>,
      %c0_56 = arith.constant 0 : index
      %c0_57 = arith.constant 0 : index
      %78 = vector.load %arg19[%c0_56, %c0_57] : memref<8x1024xbf16, #tpu.memory_space<vmem>>, vector<8x1024xbf16>
      tpu.vector_store %arg19[%c0_56, %c0_57], %75 {strides = array<i32>} : memref<8x1024xbf16, #tpu.memory_space<vmem>>, vector<8x1024xbf16>,
    } else {
    }
    return
  }
  func.func @transform_0(%arg0: i32) -> (i32, i32) {
    %c0_i32 = arith.constant 0 : i32
    %c0_i32_0 = arith.constant 0 : i32
    %c0_i32_1 = arith.constant 0 : i32
    return %c0_i32, %c0_i32_0 : i32, i32
  }
  func.func @transform_1(%arg0: i32) -> (i32, i32) {
    %c0_i32 = arith.constant 0 : i32
    %c0_i32_0 = arith.constant 0 : i32
    return %arg0, %c0_i32 : i32, i32
  }
  func.func @transform_2(%arg0: i32) -> (i32, i32) {
    %c0_i32 = arith.constant 0 : i32
    %c0_i32_0 = arith.constant 0 : i32
    %c0_i32_1 = arith.constant 0 : i32
    return %c0_i32, %c0_i32_0 : i32, i32
  }
  func.func @transform_3(%arg0: i32) -> (i32, i32) {
    %c0_i32 = arith.constant 0 : i32
    %c0_i32_0 = arith.constant 0 : i32
    %c0_i32_1 = arith.constant 0 : i32
    return %c0_i32, %c0_i32_0 : i32, i32
  }
  func.func @transform_4(%arg0: i32) -> (i32, i32) {
    %c0_i32 = arith.constant 0 : i32
    %c0_i32_0 = arith.constant 0 : i32
    %c0_i32_1 = arith.constant 0 : i32
    return %c0_i32, %c0_i32_0 : i32, i32
  }
  func.func @transform_5(%arg0: i32) -> (i32, i32) {
    %c0_i32 = arith.constant 0 : i32
    %c0_i32_0 = arith.constant 0 : i32
    %c0_i32_1 = arith.constant 0 : i32
    return %c0_i32, %c0_i32_0 : i32, i32
  }
  func.func @transform_6(%arg0: i32) -> (i32, i32) {
    %c0_i32 = arith.constant 0 : i32
    %c0_i32_0 = arith.constant 0 : i32
    %c0_i32_1 = arith.constant 0 : i32
    return %c0_i32, %c0_i32_0 : i32, i32
  }
  func.func @transform_7(%arg0: i32) -> (i32, i32) {
    %c0_i32 = arith.constant 0 : i32
    %c0_i32_0 = arith.constant 0 : i32
    %c0_i32_1 = arith.constant 0 : i32
    return %c0_i32, %c0_i32_0 : i32, i32
  }
  func.func @transform_8(%arg0: i32) -> (i32, i32) {
    %c0_i32 = arith.constant 0 : i32
    %c0_i32_0 = arith.constant 0 : i32
    %c0_i32_1 = arith.constant 0 : i32
    return %c0_i32, %c0_i32_0 : i32, i32
  }
  func.func @transform_9(%arg0: i32) -> (i32, i32) {
    %c0_i32 = arith.constant 0 : i32
    %c0_i32_0 = arith.constant 0 : i32
    %c0_i32_1 = arith.constant 0 : i32
    return %c0_i32, %c0_i32_0 : i32, i32
  }
  func.func @transform_10(%arg0: i32) -> (i32, i32) {
    %c0_i32 = arith.constant 0 : i32
    %c0_i32_0 = arith.constant 0 : i32
    %c0_i32_1 = arith.constant 0 : i32
    return %c0_i32, %c0_i32_0 : i32, i32
  }
  func.func @transform_11(%arg0: i32) -> (i32, i32) {
    %c0_i32 = arith.constant 0 : i32
    %c0_i32_0 = arith.constant 0 : i32
    %c0_i32_1 = arith.constant 0 : i32
    return %c0_i32, %c0_i32_0 : i32, i32
  }
  func.func @transform_12(%arg0: i32) -> (i32, i32) {
    %c0_i32 = arith.constant 0 : i32
    %c0_i32_0 = arith.constant 0 : i32
    %c0_i32_1 = arith.constant 0 : i32
    return %c0_i32, %c0_i32_0 : i32, i32
  }
  func.func @transform_13(%arg0: i32) -> (i32, i32) {
    %c0_i32 = arith.constant 0 : i32
    %c0_i32_0 = arith.constant 0 : i32
    %c0_i32_1 = arith.constant 0 : i32
    return %c0_i32, %c0_i32_0 : i32, i32
  }
  func.func @transform_14(%arg0: i32) -> (i32, i32) {
    %c0_i32 = arith.constant 0 : i32
    %c0_i32_0 = arith.constant 0 : i32
    %c0_i32_1 = arith.constant 0 : i32
    return %c0_i32, %c0_i32_0 : i32, i32
  }
  func.func @transform_15(%arg0: i32) -> (i32, i32) {
    %c0_i32 = arith.constant 0 : i32
    %c0_i32_0 = arith.constant 0 : i32
    %c0_i32_1 = arith.constant 0 : i32
    return %c0_i32, %c0_i32_0 : i32, i32
  }
  func.func @transform_16(%arg0: i32) -> (i32, i32) {
    %c0_i32 = arith.constant 0 : i32
    %c0_i32_0 = arith.constant 0 : i32
    %c0_i32_1 = arith.constant 0 : i32
    return %c0_i32, %c0_i32_0 : i32, i32
  }
  func.func @transform_17(%arg0: i32) -> (i32, i32) {
    %c0_i32 = arith.constant 0 : i32
    %c0_i32_0 = arith.constant 0 : i32
    %c0_i32_1 = arith.constant 0 : i32
    return %c0_i32, %c0_i32_0 : i32, i32
  }
  func.func @transform_18(%arg0: i32) -> (i32, i32) {
    %c0_i32 = arith.constant 0 : i32
    %c0_i32_0 = arith.constant 0 : i32
    %c0_i32_1 = arith.constant 0 : i32
    return %c0_i32, %c0_i32_0 : i32, i32
  }
}

</mosaic_0001>

<bundles_post_ra>
// kernel: tpu_custom_call.1
= control target key start
LH: loop header
LB: loop body
LE: loop exit
PB: predicated region body
PF: predicated region fallthrough
CT: control target
= control target key end

     0   :  { %s7884_s0 = inlined_call_operand.hbm [shape: bf16[8,768], index: 0, kind: input, shape index: {}]   ;;  %s7885_s1 = inlined_call_operand.hbm [shape: bf16[768,1024], index: 1, kind: input, shape index: {}]   ;;  %s7886_s2 = inlined_call_operand.hbm [shape: f32[1,1024], index: 2, kind: input, shape index: {}]   ;;  %s7887_s3 = inlined_call_operand.hbm [shape: f32[8,128], index: 3, kind: input, shape index: {}]   ;;  %s7888_s4 = inlined_call_operand.hbm [shape: bf16[1024,256], index: 4, kind: input, shape index: {}]   ;;  %s7889_s5 = inlined_call_operand.hbm [shape: f32[1,256], index: 5, kind: input, shape index: {}]   ;;  %s7890_s6 = inlined_call_operand.hbm [shape: bf16[256,128], index: 6, kind: input, shape index: {}]   ;;  %s7891_s7 = inlined_call_operand.hbm [shape: f32[1,128], index: 7, kind: input, shape index: {}]   ;;  %s7892_s8 = inlined_call_operand.hbm [shape: bf16[128,256], index: 8, kind: input, shape index: {}]   ;;  %s7893_s9 = inlined_call_operand.hbm [shape: f32[1,256], index: 9, kind: input, shape index: {}]   ;;  %s7894_s10 = inlined_call_operand.hbm [shape: bf16[128,128], index: 10, kind: input, shape index: {}]   ;;  %s7895_s11 = inlined_call_operand.hbm [shape: f32[1,128], index: 11, kind: input, shape index: {}]   ;;  %s7896_s12 = inlined_call_operand.hbm [shape: bf16[128,256], index: 12, kind: input, shape index: {}]   ;;  %s7897_s13 = inlined_call_operand.hbm [shape: f32[1,256], index: 13, kind: input, shape index: {}]   ;;  %s7898_s14 = inlined_call_operand.hbm [shape: bf16[256,1024], index: 14, kind: input, shape index: {}]   ;;  %s7899_s15 = inlined_call_operand.hbm [shape: f32[1,1024], index: 15, kind: input, shape index: {}]   ;;  %s7900_s16 = inlined_call_operand.hbm [shape: f32[8,128], index: 16, kind: output, shape index: {0}]   ;;  %s7901_s17 = inlined_call_operand.hbm [shape: f32[8,128], index: 17, kind: output, shape index: {1}]   ;;  %s7902_s18 = inlined_call_operand.hbm [shape: bf16[8,1024], index: 18, kind: output, shape index: {2}]  }
   0x1   :  { %7908 = sst [smem:[#allocation44_spill]] %s7884_s0 }
   0x2   :  { %7909 = sst [smem:[#allocation45_spill]] %s7885_s1 }
   0x3   :  { %7910 = sst [smem:[#allocation46_spill]] %s7886_s2 }
   0x4   :  { %7911 = sst [smem:[#allocation47_spill]] %s7900_s16 }
   0x5   :  { %7912 = sst [smem:[#allocation48_spill]] %s7902_s18 }
   0x6   :  { %24 = vsyncpa [#allocation4], 0 }
   0x7   :  { %25 = vsyncpa [#allocation7], 0 }
   0x8   :  { %26 = vsyncpa [#allocation10], 0 }
   0x9   :  { %27 = vsyncpa [#allocation13], 0 }
   0xa   :  { %28 = vsyncpa [#allocation16], 0 }
   0xb   :  { %29 = vsyncpa [#allocation19], 0 }
   0xc   :  { %30 = vsyncpa [#allocation22], 0 }
   0xd   :  { %31 = vsyncpa [#allocation25], 0 }
   0xe   :  { %32 = vsyncpa [#allocation28], 0 }
   0xf   :  { %33 = vsyncpa [#allocation5], 0 }
  0x10   :  { %34 = vsyncpa [#allocation31], 0  ;;  %s7332_s27 = smov [#allocation6]   ;;  %s7913_s0 = sld [smem:[#allocation45_spill]] }
  0x11   :  { %s50_s28 = sshll.u32 %s7332_s27, 4  ;;  %s51_s28 = int_to_ptr.vmem [resolvable:$true] %s50_s28 }
  0x16   :  { %s6892_s19 = scalar_lea.hbm %s7913_s0, 49152 }
  0x17   :  { %p6893_p0 = scmp.ne.s32.totalorder %s7913_s0, %s6892_s19  ;;  %p6896_p1 = scmp.lt.u32.totalorder %s6892_s19, %s7913_s0 }
  0x19   :  { %p6898_p2 = pnand %p6896_p1, %p6893_p0 }
  0x1b   :  { %6901 = shalt.err (!%p6898_p2)
}
  0x1c   :  { %s6902_s2 = scalar_lea.vmem %s51_s28, 49152  ;;  %p6907_p4 = scmp.lt.s32.totalorder %s51_s28, %s51_s28 }
  0x1d   :  { %p6903_p3 = scmp.ne.s32.totalorder %s51_s28, %s6902_s2  ;;  %p6908_p5 = scmp.lt.s32.totalorder %s6902_s2, %s6902_s2 }
  0x1f   :  { %p6909_p6 = por %p6908_p5, %p6907_p4 }
  0x21   :  { %p6910_p7 = pnand %p6909_p6, %p6903_p3 }
  0x23   :  { %6913 = shalt.err (!%p6910_p7)
}
  0x24   :  { %s7333_s23 = smov 512   ;;  %s7334_s24 = smov 32  }
  0x25   :  { %56 = dma.hbm_to_vmem [thread:$0]  %s7913_s0, 49152, %s51_s28, [#allocation7], %s7333_s23, %s7333_s23, %s7334_s24  }
  0x26   :  { %s7335_s27 = smov [#allocation9]   ;;  %s7336_s30 = smov [#allocation12]  }
  0x27   :  { %s73_s29 = sshll.u32 %s7335_s27, 4  ;;  %s95_s19 = sshll.u32 %s7336_s30, 4  ;;  %s74_s29 = int_to_ptr.vmem [resolvable:$true] %s73_s29  ;;  %s96_s19 = int_to_ptr.vmem [resolvable:$true] %s95_s19 }
  0x28   :  { %s6914_s21 = scalar_lea.hbm %s7887_s3, 128 }
  0x29   :  { %p6915_p8 = scmp.ne.s32.totalorder %s7887_s3, %s6914_s21  ;;  %p6918_p9 = scmp.lt.u32.totalorder %s6914_s21, %s7887_s3 }
  0x2b   :  { %p6920_p10 = pnand %p6918_p9, %p6915_p8 }
  0x2d   :  { %6923 = shalt.err (!%p6920_p10)
}
  0x2e   :  { %s6924_s28 = scalar_lea.vmem %s74_s29, 128  ;;  %p6929_p12 = scmp.lt.s32.totalorder %s74_s29, %s74_s29 }
  0x2f   :  { %p6925_p11 = scmp.ne.s32.totalorder %s74_s29, %s6924_s28  ;;  %p6930_p13 = scmp.lt.s32.totalorder %s6924_s28, %s6924_s28 }
  0x31   :  { %p6931_p0 = por %p6930_p13, %p6929_p12 }
  0x33   :  { %p6932_p1 = pnand %p6931_p0, %p6925_p11 }
  0x35   :  { %6935 = shalt.err (!%p6932_p1)
}
  0x36   :  { %76 = dma.hbm_to_vmem [thread:$0]  %s7887_s3, 128, %s74_s29, [#allocation10]  }
  0x37   :  { %s6936_s30 = scalar_lea.hbm %s7889_s5, 32 }
  0x38   :  { %p6937_p2 = scmp.ne.s32.totalorder %s7889_s5, %s6936_s30  ;;  %p6940_p3 = scmp.lt.u32.totalorder %s6936_s30, %s7889_s5 }
  0x3a   :  { %p6942_p4 = pnand %p6940_p3, %p6937_p2 }
  0x3c   :  { %6945 = shalt.err (!%p6942_p4)
}
  0x3d   :  { %s6946_s21 = scalar_lea.vmem %s96_s19, 32  ;;  %p6951_p6 = scmp.lt.s32.totalorder %s96_s19, %s96_s19 }
  0x3e   :  { %p6947_p5 = scmp.ne.s32.totalorder %s96_s19, %s6946_s21  ;;  %p6952_p7 = scmp.lt.s32.totalorder %s6946_s21, %s6946_s21 }
  0x40   :  { %p6953_p8 = por %p6952_p7, %p6951_p6 }
  0x42   :  { %p6954_p9 = pnand %p6953_p8, %p6947_p5 }
  0x44   :  { %6957 = shalt.err (!%p6954_p9)
}
  0x45   :  { %98 = dma.hbm_to_vmem [thread:$0]  %s7889_s5, 32, %s96_s19, [#allocation13]  }
  0x46   :  { %s7337_s22 = smov [#allocation15]   ;;  %s7338_s28 = smov [#allocation18]  }
  0x47   :  { %s117_s2 = sshll.u32 %s7337_s22, 4  ;;  %s139_s0 = sshll.u32 %s7338_s28, 4  ;;  %s118_s2 = int_to_ptr.vmem [resolvable:$true] %s117_s2  ;;  %s140_s0 = int_to_ptr.vmem [resolvable:$true] %s139_s0 }
  0x48   :  { %s6958_s27 = scalar_lea.hbm %s7891_s7, 16 }
  0x49   :  { %p6959_p10 = scmp.ne.s32.totalorder %s7891_s7, %s6958_s27  ;;  %p6962_p11 = scmp.lt.u32.totalorder %s6958_s27, %s7891_s7 }
  0x4b   :  { %p6964_p12 = pnand %p6962_p11, %p6959_p10 }
  0x4d   :  { %6967 = shalt.err (!%p6964_p12)
}
  0x4e   :  { %s6968_s5 = scalar_lea.vmem %s118_s2, 16  ;;  %s6972_s19 = scalar_lea.vmem %s118_s2, 32 }
  0x4f   :  { %p6969_p13 = scmp.ne.s32.totalorder %s118_s2, %s6968_s5  ;;  %p6973_p0 = scmp.lt.s32.totalorder %s118_s2, %s118_s2 }
  0x50   :  { %p6974_p1 = scmp.lt.s32.totalorder %s6972_s19, %s6968_s5 }
  0x52   :  { %p6975_p2 = por %p6974_p1, %p6973_p0 }
  0x54   :  { %p6976_p3 = pnand %p6975_p2, %p6969_p13 }
  0x56   :  { %6979 = shalt.err (!%p6976_p3)
}
  0x57   :  { %120 = dma.hbm_to_vmem [thread:$0]  %s7891_s7, 16, %s118_s2, [#allocation16]  }
  0x58   :  { %s6980_s22 = scalar_lea.hbm %s7893_s9, 32 }
  0x59   :  { %p6981_p4 = scmp.ne.s32.totalorder %s7893_s9, %s6980_s22  ;;  %p6984_p5 = scmp.lt.u32.totalorder %s6980_s22, %s7893_s9 }
  0x5b   :  { %p6986_p6 = pnand %p6984_p5, %p6981_p4 }
  0x5d   :  { %6989 = shalt.err (!%p6986_p6)
}
  0x5e   :  { %s6990_s30 = scalar_lea.vmem %s140_s0, 32  ;;  %p6995_p8 = scmp.lt.s32.totalorder %s140_s0, %s140_s0 }
  0x5f   :  { %p6991_p7 = scmp.ne.s32.totalorder %s140_s0, %s6990_s30  ;;  %p6996_p9 = scmp.lt.s32.totalorder %s6990_s30, %s6990_s30 }
  0x61   :  { %p6997_p10 = por %p6996_p9, %p6995_p8 }
  0x63   :  { %p6998_p11 = pnand %p6997_p10, %p6991_p7 }
  0x65   :  { %7001 = shalt.err (!%p6998_p11)
}
  0x66   :  { %142 = dma.hbm_to_vmem [thread:$0]  %s7893_s9, 32, %s140_s0, [#allocation19]  }
  0x67   :  { %s7339_s16 = smov [#allocation21]   ;;  %s7340_s1 = smov [#allocation24]  }
  0x68   :  { %s161_s18 = sshll.u32 %s7339_s16, 4  ;;  %s183_s5 = sshll.u32 %s7340_s1, 4  ;;  %s162_s18 = int_to_ptr.vmem [resolvable:$true] %s161_s18  ;;  %s184_s5 = int_to_ptr.vmem [resolvable:$true] %s183_s5 }
  0x69   :  { %s7002_s21 = scalar_lea.hbm %s7895_s11, 16 }
  0x6a   :  { %p7003_p12 = scmp.ne.s32.totalorder %s7895_s11, %s7002_s21  ;;  %p7006_p13 = scmp.lt.u32.totalorder %s7002_s21, %s7895_s11 }
  0x6c   :  { %p7008_p0 = pnand %p7006_p13, %p7003_p12 }
  0x6e   :  { %7011 = shalt.err (!%p7008_p0)
}
  0x6f   :  { %s7012_s9 = scalar_lea.vmem %s162_s18, 16  ;;  %s7016_s0 = scalar_lea.vmem %s162_s18, 32 }
  0x70   :  { %p7013_p1 = scmp.ne.s32.totalorder %s162_s18, %s7012_s9  ;;  %p7017_p2 = scmp.lt.s32.totalorder %s162_s18, %s162_s18 }
  0x71   :  { %p7018_p3 = scmp.lt.s32.totalorder %s7016_s0, %s7012_s9 }
  0x73   :  { %p7019_p4 = por %p7018_p3, %p7017_p2 }
  0x75   :  { %p7020_p5 = pnand %p7019_p4, %p7013_p1 }
  0x77   :  { %7023 = shalt.err (!%p7020_p5)
}
  0x78   :  { %164 = dma.hbm_to_vmem [thread:$0]  %s7895_s11, 16, %s162_s18, [#allocation22]  }
  0x79   :  { %s7024_s7 = scalar_lea.hbm %s7897_s13, 32 }
  0x7a   :  { %p7025_p6 = scmp.ne.s32.totalorder %s7897_s13, %s7024_s7  ;;  %p7028_p7 = scmp.lt.u32.totalorder %s7024_s7, %s7897_s13 }
  0x7c   :  { %p7030_p8 = pnand %p7028_p7, %p7025_p6 }
  0x7e   :  { %7033 = shalt.err (!%p7030_p8)
}
  0x7f   :  { %s7034_s20 = scalar_lea.vmem %s184_s5, 32  ;;  %p7039_p10 = scmp.lt.s32.totalorder %s184_s5, %s184_s5 }
  0x80   :  { %p7035_p9 = scmp.ne.s32.totalorder %s184_s5, %s7034_s20  ;;  %p7040_p11 = scmp.lt.s32.totalorder %s7034_s20, %s7034_s20 }
  0x82   :  { %p7041_p12 = por %p7040_p11, %p7039_p10 }
  0x84   :  { %p7042_p13 = pnand %p7041_p12, %p7035_p9 }
  0x86   :  { %7045 = shalt.err (!%p7042_p13)
}
  0x87   :  { %186 = dma.hbm_to_vmem [thread:$0]  %s7897_s13, 32, %s184_s5, [#allocation25]  }
  0x88   :  { %s7341_s21 = smov [#allocation3]   ;;  %s7342_s29 = smov [#allocation8]  }
  0x89   :  { %s41_s3 = sshll.u32 %s7341_s21, 4  ;;  %s63_s22 = sshll.u32 %s7342_s29, 4  ;;  %s42_s3 = int_to_ptr.vmem [resolvable:$true] %s41_s3  ;;  %s64_s22 = int_to_ptr.vmem [resolvable:$true] %s63_s22 }
  0x8a   :  { %s7914_s0 = sld [smem:[#allocation44_spill]] }
  0x90   :  { %s7046_s25 = scalar_lea.hbm %s7914_s0, 384 }
  0x91   :  { %p7047_p0 = scmp.ne.s32.totalorder %s7914_s0, %s7046_s25  ;;  %p7050_p1 = scmp.lt.u32.totalorder %s7046_s25, %s7914_s0 }
  0x93   :  { %p7052_p2 = pnand %p7050_p1, %p7047_p0 }
  0x95   :  { %7055 = shalt.err (!%p7052_p2)
}
  0x96   :  { %s7056_s13 = scalar_lea.vmem %s42_s3, 384  ;;  %p7061_p4 = scmp.lt.s32.totalorder %s42_s3, %s42_s3 }
  0x97   :  { %p7057_p3 = scmp.ne.s32.totalorder %s42_s3, %s7056_s13  ;;  %p7062_p5 = scmp.lt.s32.totalorder %s7056_s13, %s7056_s13 }
  0x99   :  { %p7063_p6 = por %p7062_p5, %p7061_p4 }
  0x9b   :  { %p7064_p7 = pnand %p7063_p6, %p7057_p3 }
  0x9d   :  { %7067 = shalt.err (!%p7064_p7)
}
  0x9e   :  { %44 = dma.hbm_to_vmem [thread:$0]  %s7914_s0, 384, %s42_s3, [#allocation4]  }
  0x9f   :  { %s7915_s19 = sld [smem:[#allocation46_spill]] }
  0xa5   :  { %s7068_s20 = scalar_lea.hbm %s7915_s19, 128 }
  0xa6   :  { %p7069_p8 = scmp.ne.s32.totalorder %s7915_s19, %s7068_s20  ;;  %p7072_p9 = scmp.lt.u32.totalorder %s7068_s20, %s7915_s19 }
  0xa8   :  { %p7074_p10 = pnand %p7072_p9, %p7069_p8 }
  0xaa   :  { %7077 = shalt.err (!%p7074_p10)
}
  0xab   :  { %s7078_s28 = scalar_lea.vmem %s64_s22, 128  ;;  %p7083_p12 = scmp.lt.s32.totalorder %s64_s22, %s64_s22 }
  0xac   :  { %p7079_p11 = scmp.ne.s32.totalorder %s64_s22, %s7078_s28  ;;  %p7084_p13 = scmp.lt.s32.totalorder %s7078_s28, %s7078_s28 }
  0xae   :  { %p7085_p0 = por %p7084_p13, %p7083_p12 }
  0xb0   :  { %p7086_p1 = pnand %p7085_p0, %p7079_p11 }
  0xb2   :  { %7089 = shalt.err (!%p7086_p1)
}
  0xb3   :  { %66 = dma.hbm_to_vmem [thread:$0]  %s7915_s19, 128, %s64_s22, [#allocation7]  }
  0xb4   :  { %s7343_s0 = smov [#allocation11]   ;;  %s7090_s30 = scalar_lea.hbm %s7888_s4, 16384 }
  0xb5   :  { %s82_s25 = sshll.u32 %s7343_s0, 4  ;;  %p7091_p2 = scmp.ne.s32.totalorder %s7888_s4, %s7090_s30  ;;  %s83_s25 = int_to_ptr.vmem [resolvable:$true] %s82_s25 }
  0xb6   :  { %p7094_p3 = scmp.lt.u32.totalorder %s7090_s30, %s7888_s4 }
  0xb8   :  { %p7096_p4 = pnand %p7094_p3, %p7091_p2 }
  0xba   :  { %7099 = shalt.err (!%p7096_p4)
}
  0xbb   :  { %s7100_s16 = scalar_lea.vmem %s83_s25, 16384  ;;  %p7105_p6 = scmp.lt.s32.totalorder %s83_s25, %s83_s25 }
  0xbc   :  { %p7101_p5 = scmp.ne.s32.totalorder %s83_s25, %s7100_s16  ;;  %p7106_p7 = scmp.lt.s32.totalorder %s7100_s16, %s7100_s16 }
  0xbe   :  { %p7107_p8 = por %p7106_p7, %p7105_p6 }
  0xc0   :  { %p7108_p9 = pnand %p7107_p8, %p7101_p5 }
  0xc2   :  { %7111 = shalt.err (!%p7108_p9)
}
  0xc3   :  { %s7344_s22 = smov 128   ;;  %s7345_s1 = smov 8  }
  0xc4   :  { %88 = dma.hbm_to_vmem [thread:$0]  %s7888_s4, 16384, %s83_s25, [#allocation10], %s7344_s22, %s7344_s22, %s7345_s1  }
  0xc5   :  { %s7346_s11 = smov [#allocation14]   ;;  %s7112_s28 = scalar_lea.hbm %s7890_s6, 2048 }
  0xc6   :  { %s104_s18 = sshll.u32 %s7346_s11, 4  ;;  %p7113_p10 = scmp.ne.s32.totalorder %s7890_s6, %s7112_s28  ;;  %s105_s18 = int_to_ptr.vmem [resolvable:$true] %s104_s18 }
  0xc7   :  { %p7116_p11 = scmp.lt.u32.totalorder %s7112_s28, %s7890_s6 }
  0xc9   :  { %p7118_p12 = pnand %p7116_p11, %p7113_p10 }
  0xcb   :  { %7121 = shalt.err (!%p7118_p12)
}
  0xcc   :  { %s7122_s27 = scalar_lea.vmem %s105_s18, 2048  ;;  %p7127_p0 = scmp.lt.s32.totalorder %s105_s18, %s105_s18 }
  0xcd   :  { %p7123_p13 = scmp.ne.s32.totalorder %s105_s18, %s7122_s27  ;;  %p7128_p1 = scmp.lt.s32.totalorder %s7122_s27, %s7122_s27 }
  0xcf   :  { %p7129_p2 = por %p7128_p1, %p7127_p0 }
  0xd1   :  { %p7130_p3 = pnand %p7129_p2, %p7123_p13 }
  0xd3   :  { %7133 = shalt.err (!%p7130_p3)
}
  0xd4   :  { %s7347_s4 = smov 64   ;;  %s7348_s25 = smov 4  }
  0xd5   :  { %110 = dma.hbm_to_vmem [thread:$0]  %s7890_s6, 2048, %s105_s18, [#allocation13], %s7347_s4, %s7347_s4, %s7348_s25  }
  0xd6   :  { %s7349_s13 = smov [#allocation17]   ;;  %s7350_s2 = smov [#allocation20]  }
  0xd7   :  { %s126_s5 = sshll.u32 %s7349_s13, 4  ;;  %s148_s16 = sshll.u32 %s7350_s2, 4  ;;  %s127_s5 = int_to_ptr.vmem [resolvable:$true] %s126_s5  ;;  %s149_s16 = int_to_ptr.vmem [resolvable:$true] %s148_s16 }
  0xd8   :  { %s7134_s11 = scalar_lea.hbm %s7892_s8, 2048 }
  0xd9   :  { %p7135_p4 = scmp.ne.s32.totalorder %s7892_s8, %s7134_s11  ;;  %p7138_p5 = scmp.lt.u32.totalorder %s7134_s11, %s7892_s8 }
  0xdb   :  { %p7140_p6 = pnand %p7138_p5, %p7135_p4 }
  0xdd   :  { %7143 = shalt.err (!%p7140_p6)
}
  0xde   :  { %s7144_s6 = scalar_lea.vmem %s127_s5, 2048  ;;  %p7149_p8 = scmp.lt.s32.totalorder %s127_s5, %s127_s5 }
  0xdf   :  { %p7145_p7 = scmp.ne.s32.totalorder %s127_s5, %s7144_s6  ;;  %p7150_p9 = scmp.lt.s32.totalorder %s7144_s6, %s7144_s6 }
  0xe1   :  { %p7151_p10 = por %p7150_p9, %p7149_p8 }
  0xe3   :  { %p7152_p11 = pnand %p7151_p10, %p7145_p7 }
  0xe5   :  { %7155 = shalt.err (!%p7152_p11)
}
  0xe6   :  { %132 = dma.hbm_to_vmem [thread:$0]  %s7892_s8, 2048, %s127_s5, [#allocation16], %s7344_s22, %s7344_s22, %s7345_s1  }
  0xe7   :  { %s7156_s27 = scalar_lea.hbm %s7894_s10, 1024 }
  0xe8   :  { %p7157_p12 = scmp.ne.s32.totalorder %s7894_s10, %s7156_s27  ;;  %p7160_p13 = scmp.lt.u32.totalorder %s7156_s27, %s7894_s10 }
  0xea   :  { %p7162_p0 = pnand %p7160_p13, %p7157_p12 }
  0xec   :  { %7165 = shalt.err (!%p7162_p0)
}
  0xed   :  { %s7166_s19 = scalar_lea.vmem %s149_s16, 1024  ;;  %p7171_p2 = scmp.lt.s32.totalorder %s149_s16, %s149_s16 }
  0xee   :  { %p7167_p1 = scmp.ne.s32.totalorder %s149_s16, %s7166_s19  ;;  %p7172_p3 = scmp.lt.s32.totalorder %s7166_s19, %s7166_s19 }
  0xf0   :  { %p7173_p4 = por %p7172_p3, %p7171_p2 }
  0xf2   :  { %p7174_p5 = pnand %p7173_p4, %p7167_p1 }
  0xf4   :  { %7177 = shalt.err (!%p7174_p5)
}
  0xf5   :  { %154 = dma.hbm_to_vmem [thread:$0]  %s7894_s10, 1024, %s149_s16, [#allocation19], %s7347_s4, %s7347_s4, %s7348_s25  }
  0xf6   :  { %s7351_s20 = smov [#allocation23]   ;;  %s7352_s21 = smov [#allocation26]  }
  0xf7   :  { %s170_s11 = sshll.u32 %s7351_s20, 4  ;;  %s192_s29 = sshll.u32 %s7352_s21, 4  ;;  %s171_s11 = int_to_ptr.vmem [resolvable:$true] %s170_s11  ;;  %s193_s29 = int_to_ptr.vmem [resolvable:$true] %s192_s29 }
  0xf8   :  { %s7178_s6 = scalar_lea.hbm %s7896_s12, 2048 }
  0xf9   :  { %p7179_p6 = scmp.ne.s32.totalorder %s7896_s12, %s7178_s6  ;;  %p7182_p7 = scmp.lt.u32.totalorder %s7178_s6, %s7896_s12 }
  0xfb   :  { %p7184_p8 = pnand %p7182_p7, %p7179_p6 }
  0xfd   :  { %7187 = shalt.err (!%p7184_p8)
}
  0xfe   :  { %s7188_s10 = scalar_lea.vmem %s171_s11, 2048  ;;  %p7193_p10 = scmp.lt.s32.totalorder %s171_s11, %s171_s11 }
  0xff   :  { %p7189_p9 = scmp.ne.s32.totalorder %s171_s11, %s7188_s10  ;;  %p7194_p11 = scmp.lt.s32.totalorder %s7188_s10, %s7188_s10 }
 0x101   :  { %p7195_p12 = por %p7194_p11, %p7193_p10 }
 0x103   :  { %p7196_p13 = pnand %p7195_p12, %p7189_p9 }
 0x105   :  { %7199 = shalt.err (!%p7196_p13)
}
 0x106   :  { %176 = dma.hbm_to_vmem [thread:$0]  %s7896_s12, 2048, %s171_s11, [#allocation22], %s7344_s22, %s7344_s22, %s7345_s1  }
 0x107   :  { %s7200_s30 = scalar_lea.hbm %s7898_s14, 16384 }
 0x108   :  { %p7201_p0 = scmp.ne.s32.totalorder %s7898_s14, %s7200_s30  ;;  %p7204_p1 = scmp.lt.u32.totalorder %s7200_s30, %s7898_s14 }
 0x10a   :  { %p7206_p2 = pnand %p7204_p1, %p7201_p0 }
 0x10c   :  { %7209 = shalt.err (!%p7206_p2)
}
 0x10d   :  { %s7210_s8 = scalar_lea.vmem %s193_s29, 16384  ;;  %p7215_p4 = scmp.lt.s32.totalorder %s193_s29, %s193_s29 }
 0x10e   :  { %p7211_p3 = scmp.ne.s32.totalorder %s193_s29, %s7210_s8  ;;  %p7216_p5 = scmp.lt.s32.totalorder %s7210_s8, %s7210_s8 }
 0x110   :  { %p7217_p6 = por %p7216_p5, %p7215_p4 }
 0x112   :  { %p7218_p7 = pnand %p7217_p6, %p7211_p3 }
 0x114   :  { %7221 = shalt.err (!%p7218_p7)
}
 0x115   :  { %198 = dma.hbm_to_vmem [thread:$0]  %s7898_s14, 16384, %s193_s29, [#allocation25], %s7333_s23, %s7333_s23, %s7334_s24  }
 0x116   :  { %s7353_s1 = smov [#allocation27]   ;;  %s7222_s21 = scalar_lea.hbm %s7899_s15, 128 }
 0x117   :  { %s205_s5 = sshll.u32 %s7353_s1, 4  ;;  %p7223_p8 = scmp.ne.s32.totalorder %s7899_s15, %s7222_s21  ;;  %s206_s5 = int_to_ptr.vmem [resolvable:$true] %s205_s5 }
 0x118   :  { %p7226_p9 = scmp.lt.u32.totalorder %s7222_s21, %s7899_s15 }
 0x11a   :  { %p7228_p10 = pnand %p7226_p9, %p7223_p8 }
 0x11c   :  { %7231 = shalt.err (!%p7228_p10)
}
 0x11d   :  { %s7232_s9 = scalar_lea.vmem %s206_s5, 128  ;;  %p7237_p12 = scmp.lt.s32.totalorder %s206_s5, %s206_s5 }
 0x11e   :  { %p7233_p11 = scmp.ne.s32.totalorder %s206_s5, %s7232_s9  ;;  %p7238_p13 = scmp.lt.s32.totalorder %s7232_s9, %s7232_s9 }
 0x120   :  { %p7239_p0 = por %p7238_p13, %p7237_p12 }
 0x122   :  { %p7240_p1 = pnand %p7239_p0, %p7233_p11 }
 0x124   :  { %7243 = shalt.err (!%p7240_p1)
}
 0x125   :  { %208 = dma.hbm_to_vmem [thread:$0]  %s7899_s15, 128, %s206_s5, [#allocation28]  }
 0x126   :  { %7310 = dma.done.wait [#allocation4], 384  }
 0x127   :  { %7311 = vsyncadd [#allocation4], 4294966912 }
 0x128   :  { %7312 = dma.done.wait [#allocation7], 49280  }
 0x129   :  { %7313 = vsyncadd [#allocation7], 4294918016 }
 0x12a   :  { %7314 = dma.done.wait [#allocation10], 16512  }
 0x12b   :  { %7315 = vsyncadd [#allocation10], 4294950784 }
 0x12c   :  { %7316 = dma.done.wait [#allocation13], 2080  }
 0x12d   :  { %7317 = vsyncadd [#allocation13], 4294965216 }
 0x12e   :  { %7318 = dma.done.wait [#allocation16], 2064  }
 0x12f   :  { %7319 = vsyncadd [#allocation16], 4294965232 }
 0x130   :  { %7320 = dma.done.wait [#allocation19], 1056  }
 0x131   :  { %7321 = vsyncadd [#allocation19], 4294966240 }
 0x132   :  { %7322 = dma.done.wait [#allocation22], 2064  }
 0x133   :  { %7323 = vsyncadd [#allocation22], 4294965232 }
 0x134   :  { %7324 = dma.done.wait [#allocation25], 16416  }
 0x135   :  { %7325 = vsyncadd [#allocation25], 4294950880 }
 0x136   :  { %7326 = dma.done.wait [#allocation28], 128  }
 0x137   :  { %7327 = vsyncadd [#allocation28], 4294967168  ;;  %v286_v0 = vld [vmem:[#allocation6] sm:$0xff]  ;;  %v7668_v53 = vld [vmem:[#allocation3] sm:$0xff]  ;;  %vm7356_vm0 = vmmov 0   ;;  %s7357_s15 = smov [#allocation30]  }
 0x138   :  { %v290_v1 = vld [vmem:[#allocation6 + $0x20] sm:$0xff]  ;;  %v7670_v54 = vld [vmem:[#allocation3 + $0x8] sm:$0xff]  ;;  %v7674_v58 = vcombine.high %v7668_v53, %v7668_v53  ;;  %s5779_s24 = sshll.u32 %s7357_s15, 4  ;;  %s7358_s29 = smov [#allocation29]   ;;  %s5780_s24 = int_to_ptr.vmem [resolvable:$true] %s5779_s24 }
 0x139   :  { %v414_v2 = vld [vmem:[#allocation6 + $0x400] sm:$0xff]  ;;  %v5822_v3 = vcombine.high %v286_v0, %v290_v1  ;;  %v5821_v5 = vcombine.low %v286_v0, %v290_v1  ;;  %v7678_v59 = vcombine.high %v7670_v54, %v7670_v54  ;;  %s5769_s0 = sshll.u32 %s7358_s29, 4  ;;  %s7244_s26 = scalar_lea.vmem %s5780_s24, 128  ;;  %s5770_s0 = int_to_ptr.vmem [resolvable:$true] %s5769_s0 }
 0x13a   :  { %v418_v4 = vld [vmem:[#allocation6 + $0x420] sm:$0xff]  ;;  %2643 = vmatprep.mubr.bf16.mxu0 %v7674_v58  ;;  %p7245_p2 = scmp.ne.s32.totalorder %s5780_s24, %s7244_s26  ;;  %p7249_p3 = scmp.lt.s32.totalorder %s5780_s24, %s5780_s24 }
 0x13b   :  { %v294_v6 = vld [vmem:[#allocation6 + $0x40] sm:$0xff]  ;;  %v5950_v8 = vcombine.high %v414_v2, %v418_v4  ;;  %v5949_v9 = vcombine.low %v414_v2, %v418_v4  ;;  %2611 = vmatprep.subr.bf16.mxu0 %v5822_v3  ;;  %2684 = vmatprep.mubr.bf16.mxu1 %v7678_v59  ;;  %p7250_p4 = scmp.lt.s32.totalorder %s7244_s26, %s7244_s26 }
 0x13c   :  { %v298_v7 = vld [vmem:[#allocation6 + $0x60] sm:$0xff]  ;;  %2612 = vmatpush1.bf16.msra.mxu0 %v5821_v5 }
 0x13d   :  { %v5830_v10 = vcombine.high %v294_v6, %v298_v7  ;;  %v422_v11 = vld [vmem:[#allocation6 + $0x440] sm:$0xff]  ;;  %2652 = vmatprep.subr.bf16.mxu1 %v5950_v8  ;;  %v5829_v18 = vcombine.low %v294_v6, %v298_v7  ;;  %p7251_p5 = por %p7250_p4, %p7249_p3 }
 0x13e   :  { %v426_v12 = vld [vmem:[#allocation6 + $0x460] sm:$0xff]  ;;  %2653 = vmatpush1.bf16.msra.mxu1 %v5949_v9 }
 0x13f   :  { %v302_v13 = vld [vmem:[#allocation6 + $0x80] sm:$0xff]  ;;  %v5958_v14 = vcombine.high %v422_v11, %v426_v12  ;;  %2613 = vmatprep.subr.bf16.mxu0 %v5830_v10  ;;  %v5957_v19 = vcombine.low %v422_v11, %v426_v12  ;;  %p7252_p6 = pnand %p7251_p5, %p7245_p2 }
 0x140   :  { %v306_v15 = vld [vmem:[#allocation6 + $0xa0] sm:$0xff]  ;;  %2614 = vmatpush1.bf16.msra.mxu0 %v5829_v18 }
 0x141   :  { %v430_v16 = vld [vmem:[#allocation6 + $0x480] sm:$0xff]  ;;  %v5838_v20 = vcombine.high %v302_v13, %v306_v15  ;;  %2654 = vmatprep.subr.bf16.mxu1 %v5958_v14  ;;  %v5837_v26 = vcombine.low %v302_v13, %v306_v15 }
 0x142   :  { %v434_v17 = vld [vmem:[#allocation6 + $0x4a0] sm:$0xff]  ;;  %2655 = vmatpush1.bf16.msra.mxu1 %v5957_v19 }
 0x143   :  { %v5966_v21 = vcombine.high %v430_v16, %v434_v17  ;;  %v310_v22 = vld [vmem:[#allocation6 + $0xc0] sm:$0xff]  ;;  %2615 = vmatprep.subr.bf16.mxu0 %v5838_v20  ;;  %v5965_v27 = vcombine.low %v430_v16, %v434_v17 }
 0x144   :  { %v314_v23 = vld [vmem:[#allocation6 + $0xe0] sm:$0xff]  ;;  %2616 = vmatpush1.bf16.msra.mxu0 %v5837_v26 }
 0x145   :  { %v438_v24 = vld [vmem:[#allocation6 + $0x4c0] sm:$0xff]  ;;  %v5846_v28 = vcombine.high %v310_v22, %v314_v23  ;;  %2656 = vmatprep.subr.bf16.mxu1 %v5966_v21  ;;  %v5845_v34 = vcombine.low %v310_v22, %v314_v23 }
 0x146   :  { %v442_v25 = vld [vmem:[#allocation6 + $0x4e0] sm:$0xff]  ;;  %2657 = vmatpush1.bf16.msra.mxu1 %v5965_v27 }
 0x147   :  { %v5974_v29 = vcombine.high %v438_v24, %v442_v25  ;;  %v318_v30 = vld [vmem:[#allocation6 + $0x100] sm:$0xff]  ;;  %2617 = vmatprep.subr.bf16.mxu0 %v5846_v28  ;;  %v5973_v35 = vcombine.low %v438_v24, %v442_v25 }
 0x148   :  { %v322_v31 = vld [vmem:[#allocation6 + $0x120] sm:$0xff]  ;;  %2618 = vmatpush1.bf16.msra.mxu0 %v5845_v34 }
 0x149   :  { %v446_v32 = vld [vmem:[#allocation6 + $0x500] sm:$0xff]  ;;  %v5854_v36 = vcombine.high %v318_v30, %v322_v31  ;;  %2658 = vmatprep.subr.bf16.mxu1 %v5974_v29  ;;  %v5853_v42 = vcombine.low %v318_v30, %v322_v31 }
 0x14a   :  { %v450_v33 = vld [vmem:[#allocation6 + $0x520] sm:$0xff]  ;;  %2659 = vmatpush1.bf16.msra.mxu1 %v5973_v35 }
 0x14b   :  { %v5982_v37 = vcombine.high %v446_v32, %v450_v33  ;;  %v326_v38 = vld [vmem:[#allocation6 + $0x140] sm:$0xff]  ;;  %2619 = vmatprep.subr.bf16.mxu0 %v5854_v36  ;;  %v5981_v43 = vcombine.low %v446_v32, %v450_v33 }
 0x14c   :  { %v330_v39 = vld [vmem:[#allocation6 + $0x160] sm:$0xff]  ;;  %2620 = vmatpush1.bf16.msra.mxu0 %v5853_v42 }
 0x14d   :  { %v454_v40 = vld [vmem:[#allocation6 + $0x540] sm:$0xff]  ;;  %v5862_v44 = vcombine.high %v326_v38, %v330_v39  ;;  %2660 = vmatprep.subr.bf16.mxu1 %v5982_v37  ;;  %v5861_v50 = vcombine.low %v326_v38, %v330_v39 }
 0x14e   :  { %v458_v41 = vld [vmem:[#allocation6 + $0x560] sm:$0xff]  ;;  %2661 = vmatpush1.bf16.msra.mxu1 %v5981_v43 }
 0x14f   :  { %v5990_v45 = vcombine.high %v454_v40, %v458_v41  ;;  %v334_v46 = vld [vmem:[#allocation6 + $0x180] sm:$0xff]  ;;  %2621 = vmatprep.subr.bf16.mxu0 %v5862_v44  ;;  %v5989_v51 = vcombine.low %v454_v40, %v458_v41 }
 0x150   :  { %v338_v47 = vld [vmem:[#allocation6 + $0x1a0] sm:$0xff]  ;;  %2622 = vmatpush1.bf16.msra.mxu0 %v5861_v50 }
 0x151   :  { %v462_v48 = vld [vmem:[#allocation6 + $0x580] sm:$0xff]  ;;  %v5870_v52 = vcombine.high %v334_v46, %v338_v47  ;;  %2662 = vmatprep.subr.bf16.mxu1 %v5990_v45  ;;  %v5869_v62 = vcombine.low %v334_v46, %v338_v47 }
 0x152   :  { %v466_v49 = vld [vmem:[#allocation6 + $0x5a0] sm:$0xff]  ;;  %2663 = vmatpush1.bf16.msra.mxu1 %v5989_v51 }
 0x153   :  { %v5998_v55 = vcombine.high %v462_v48, %v466_v49  ;;  %v342_v56 = vld [vmem:[#allocation6 + $0x1c0] sm:$0xff]  ;;  %2623 = vmatprep.subr.bf16.mxu0 %v5870_v52  ;;  %v5997_v63 = vcombine.low %v462_v48, %v466_v49 }
 0x154   :  { %v346_v57 = vld [vmem:[#allocation6 + $0x1e0] sm:$0xff]  ;;  %2624 = vmatpush1.bf16.msra.mxu0 %v5869_v62 }
 0x155   :  { %v470_v60 = vld [vmem:[#allocation6 + $0x5c0] sm:$0xff]  ;;  %v5878_v0 = vcombine.high %v342_v56, %v346_v57  ;;  %2664 = vmatprep.subr.bf16.mxu1 %v5998_v55  ;;  %v5877_v6 = vcombine.low %v342_v56, %v346_v57 }
 0x156   :  { %v474_v61 = vld [vmem:[#allocation6 + $0x5e0] sm:$0xff]  ;;  %2665 = vmatpush1.bf16.msra.mxu1 %v5997_v63 }
 0x157   :  { %v6006_v1 = vcombine.high %v470_v60, %v474_v61  ;;  %v350_v2 = vld [vmem:[#allocation6 + $0x200] sm:$0xff]  ;;  %2625 = vmatprep.subr.bf16.mxu0 %v5878_v0  ;;  %v6005_v7 = vcombine.low %v470_v60, %v474_v61 }
 0x158   :  { %v354_v3 = vld [vmem:[#allocation6 + $0x220] sm:$0xff]  ;;  %2626 = vmatpush1.bf16.msra.mxu0 %v5877_v6 }
 0x159   :  { %v478_v4 = vld [vmem:[#allocation6 + $0x600] sm:$0xff]  ;;  %v5886_v8 = vcombine.high %v350_v2, %v354_v3  ;;  %2666 = vmatprep.subr.bf16.mxu1 %v6006_v1  ;;  %v5885_v14 = vcombine.low %v350_v2, %v354_v3 }
 0x15a   :  { %v482_v5 = vld [vmem:[#allocation6 + $0x620] sm:$0xff]  ;;  %2667 = vmatpush1.bf16.msra.mxu1 %v6005_v7 }
 0x15b   :  { %v6014_v9 = vcombine.high %v478_v4, %v482_v5  ;;  %v358_v10 = vld [vmem:[#allocation6 + $0x240] sm:$0xff]  ;;  %2627 = vmatprep.subr.bf16.mxu0 %v5886_v8  ;;  %v6013_v15 = vcombine.low %v478_v4, %v482_v5  ;;  %v287_v8 = vld [vmem:[#allocation6 + $0x8] sm:$0xff] }
 0x15c   :  { %v362_v11 = vld [vmem:[#allocation6 + $0x260] sm:$0xff]  ;;  %2628 = vmatpush1.bf16.msra.mxu0 %v5885_v14 }
 0x15d   :  { %v486_v12 = vld [vmem:[#allocation6 + $0x640] sm:$0xff]  ;;  %v5894_v16 = vcombine.high %v358_v10, %v362_v11  ;;  %2668 = vmatprep.subr.bf16.mxu1 %v6014_v9  ;;  %v5893_v22 = vcombine.low %v358_v10, %v362_v11  ;;  %v291_v9 = vld [vmem:[#allocation6 + $0x28] sm:$0xff] }
 0x15e   :  { %v490_v13 = vld [vmem:[#allocation6 + $0x660] sm:$0xff]  ;;  %2669 = vmatpush1.bf16.msra.mxu1 %v6013_v15 }
 0x15f   :  { %v6022_v17 = vcombine.high %v486_v12, %v490_v13  ;;  %v366_v18 = vld [vmem:[#allocation6 + $0x280] sm:$0xff]  ;;  %2629 = vmatprep.subr.bf16.mxu0 %v5894_v16  ;;  %v6021_v23 = vcombine.low %v486_v12, %v490_v13  ;;  %v5824_v13 = vcombine.high %v287_v8, %v291_v9  ;;  %v7684_v16 = vcombine.low %v7668_v53, %v7668_v53 }
 0x160   :  { %v370_v19 = vld [vmem:[#allocation6 + $0x2a0] sm:$0xff]  ;;  %2630 = vmatpush1.bf16.msra.mxu0 %v5893_v22  ;;  %v5823_v22 = vcombine.low %v287_v8, %v291_v9 }
 0x161   :  { %v494_v20 = vld [vmem:[#allocation6 + $0x680] sm:$0xff]  ;;  %v5902_v24 = vcombine.high %v366_v18, %v370_v19  ;;  %2670 = vmatprep.subr.bf16.mxu1 %v6022_v17  ;;  %v5901_v30 = vcombine.low %v366_v18, %v370_v19  ;;  %v295_v17 = vld [vmem:[#allocation6 + $0x48] sm:$0xff]  ;;  %v7686_v19 = vld [vmem:[#allocation3 + $0x10] sm:$0xff] }
 0x162   :  { %v498_v21 = vld [vmem:[#allocation6 + $0x6a0] sm:$0xff]  ;;  %2671 = vmatpush1.bf16.msra.mxu1 %v6021_v23  ;;  %v299_v18 = vld [vmem:[#allocation6 + $0x68] sm:$0xff] }
 0x163   :  { %v6030_v25 = vcombine.high %v494_v20, %v498_v21  ;;  %v374_v26 = vld [vmem:[#allocation6 + $0x2c0] sm:$0xff]  ;;  %2631 = vmatprep.subr.bf16.mxu0 %v5902_v24  ;;  %v6029_v31 = vcombine.low %v494_v20, %v498_v21  ;;  %v7690_v20 = vcombine.low %v7670_v54, %v7670_v54  ;;  %v5832_v53 = vcombine.high %v295_v17, %v299_v18 }
 0x164   :  { %v378_v27 = vld [vmem:[#allocation6 + $0x2e0] sm:$0xff]  ;;  %2632 = vmatpush1.bf16.msra.mxu0 %v5901_v30 }
 0x165   :  { %v502_v28 = vld [vmem:[#allocation6 + $0x6c0] sm:$0xff]  ;;  %v5910_v32 = vcombine.high %v374_v26, %v378_v27  ;;  %2672 = vmatprep.subr.bf16.mxu1 %v6030_v25  ;;  %v5909_v38 = vcombine.low %v374_v26, %v378_v27  ;;  %v303_v26 = vld [vmem:[#allocation6 + $0x88] sm:$0xff] }
 0x166   :  { %v506_v29 = vld [vmem:[#allocation6 + $0x6e0] sm:$0xff]  ;;  %2673 = vmatpush1.bf16.msra.mxu1 %v6029_v31  ;;  %v307_v27 = vld [vmem:[#allocation6 + $0xa8] sm:$0xff] }
 0x167   :  { %v6038_v33 = vcombine.high %v502_v28, %v506_v29  ;;  %v382_v34 = vld [vmem:[#allocation6 + $0x300] sm:$0xff]  ;;  %2633 = vmatprep.subr.bf16.mxu0 %v5910_v32  ;;  %v6037_v39 = vcombine.low %v502_v28, %v506_v29  ;;  %v7694_v28 = vcombine.high %v7686_v19, %v7686_v19  ;;  %v5831_v29 = vcombine.low %v295_v17, %v299_v18 }
 0x168   :  { %v386_v35 = vld [vmem:[#allocation6 + $0x320] sm:$0xff]  ;;  %2634 = vmatpush1.bf16.msra.mxu0 %v5909_v38 }
 0x169   :  { %v510_v36 = vld [vmem:[#allocation6 + $0x700] sm:$0xff]  ;;  %v5918_v40 = vcombine.high %v382_v34, %v386_v35  ;;  %2674 = vmatprep.subr.bf16.mxu1 %v6038_v33  ;;  %v5917_v46 = vcombine.low %v382_v34, %v386_v35  ;;  %v311_v33 = vld [vmem:[#allocation6 + $0xc8] sm:$0xff]  ;;  %v5840_v34 = vcombine.high %v303_v26, %v307_v27 }
 0x16a   :  { %v514_v37 = vld [vmem:[#allocation6 + $0x720] sm:$0xff]  ;;  %2675 = vmatpush1.bf16.msra.mxu1 %v6037_v39  ;;  %v315_v35 = vld [vmem:[#allocation6 + $0xe8] sm:$0xff] }
 0x16b   :  { %v6046_v41 = vcombine.high %v510_v36, %v514_v37  ;;  %v390_v42 = vld [vmem:[#allocation6 + $0x340] sm:$0xff]  ;;  %2635 = vmatprep.subr.bf16.mxu0 %v5918_v40  ;;  %v6045_v47 = vcombine.low %v510_v36, %v514_v37  ;;  %v5839_v37 = vcombine.low %v303_v26, %v307_v27  ;;  %v363_v26 = vld [vmem:[#allocation6 + $0x268] sm:$0xff] }
 0x16c   :  { %v394_v43 = vld [vmem:[#allocation6 + $0x360] sm:$0xff]  ;;  %2636 = vmatpush1.bf16.msra.mxu0 %v5917_v46 }
 0x16d   :  { %v518_v44 = vld [vmem:[#allocation6 + $0x740] sm:$0xff]  ;;  %v5926_v48 = vcombine.high %v390_v42, %v394_v43  ;;  %2676 = vmatprep.subr.bf16.mxu1 %v6046_v41  ;;  %v5925_v56 = vcombine.low %v390_v42, %v394_v43  ;;  %v319_v41 = vld [vmem:[#allocation6 + $0x108] sm:$0xff]  ;;  %v5848_v42 = vcombine.high %v311_v33, %v315_v35 }
 0x16e   :  { %v522_v45 = vld [vmem:[#allocation6 + $0x760] sm:$0xff]  ;;  %2677 = vmatpush1.bf16.msra.mxu1 %v6045_v47  ;;  %v323_v43 = vld [vmem:[#allocation6 + $0x128] sm:$0xff] }
 0x16f   :  { %v6054_v49 = vcombine.high %v518_v44, %v522_v45  ;;  %v398_v50 = vld [vmem:[#allocation6 + $0x380] sm:$0xff]  ;;  %2637 = vmatprep.subr.bf16.mxu0 %v5926_v48  ;;  %v6053_v57 = vcombine.low %v518_v44, %v522_v45  ;;  %v5847_v45 = vcombine.low %v311_v33, %v315_v35  ;;  %v371_v33 = vld [vmem:[#allocation6 + $0x2a8] sm:$0xff] }
 0x170   :  { %v402_v51 = vld [vmem:[#allocation6 + $0x3a0] sm:$0xff]  ;;  %2638 = vmatpush1.bf16.msra.mxu0 %v5925_v56 }
 0x171   :  { %v526_v52 = vld [vmem:[#allocation6 + $0x780] sm:$0xff]  ;;  %v5934_v60 = vcombine.high %v398_v50, %v402_v51  ;;  %2678 = vmatprep.subr.bf16.mxu1 %v6054_v49  ;;  %v5933_v2 = vcombine.low %v398_v50, %v402_v51  ;;  %v327_v49 = vld [vmem:[#allocation6 + $0x148] sm:$0xff]  ;;  %v5856_v50 = vcombine.high %v319_v41, %v323_v43 }
 0x172   :  { %v530_v55 = vld [vmem:[#allocation6 + $0x7a0] sm:$0xff]  ;;  %2679 = vmatpush1.bf16.msra.mxu1 %v6053_v57  ;;  %v331_v51 = vld [vmem:[#allocation6 + $0x168] sm:$0xff] }
 0x173   :  { %v6062_v61 = vcombine.high %v526_v52, %v530_v55  ;;  %v406_v62 = vld [vmem:[#allocation6 + $0x3c0] sm:$0xff]  ;;  %2639 = vmatprep.subr.bf16.mxu0 %v5934_v60  ;;  %v6061_v3 = vcombine.low %v526_v52, %v530_v55  ;;  %v5855_v55 = vcombine.low %v319_v41, %v323_v43  ;;  %v379_v41 = vld [vmem:[#allocation6 + $0x2e8] sm:$0xff] }
 0x174   :  { %v410_v63 = vld [vmem:[#allocation6 + $0x3e0] sm:$0xff]  ;;  %2640 = vmatpush1.bf16.msra.mxu0 %v5933_v2 }
 0x175   :  { %v534_v0 = vld [vmem:[#allocation6 + $0x7c0] sm:$0xff]  ;;  %v5942_v4 = vcombine.high %v406_v62, %v410_v63  ;;  %2680 = vmatprep.subr.bf16.mxu1 %v6062_v61  ;;  %v5941_v10 = vcombine.low %v406_v62, %v410_v63  ;;  %v335_v61 = vld [vmem:[#allocation6 + $0x188] sm:$0xff]  ;;  %v5864_v62 = vcombine.high %v327_v49, %v331_v51 }
 0x176   :  { %v538_v1 = vld [vmem:[#allocation6 + $0x7e0] sm:$0xff]  ;;  %2681 = vmatpush1.bf16.msra.mxu1 %v6061_v3  ;;  %v339_v63 = vld [vmem:[#allocation6 + $0x1a8] sm:$0xff] }
 0x177   :  { %v6070_v5 = vcombine.high %v534_v0, %v538_v1  ;;  %v542_v6 = vld [vmem:[#allocation6 + $0x800] sm:$0xff]  ;;  %2641 = vmatprep.subr.bf16.mxu0 %v5942_v4  ;;  %v6069_v11 = vcombine.low %v534_v0, %v538_v1  ;;  %v5863_v1 = vcombine.low %v327_v49, %v331_v51  ;;  %v5871_v9 = vcombine.low %v335_v61, %v339_v63  ;;  %v387_v49 = vld [vmem:[#allocation6 + $0x328] sm:$0xff] }
 0x178   :  { %v546_v7 = vld [vmem:[#allocation6 + $0x820] sm:$0xff]  ;;  %2642 = vmatpush1.bf16.msra.mxu0 %v5941_v10 }
 0x179   :  { %v6078_v12 = vcombine.high %v542_v6, %v546_v7  ;;  %2682 = vmatprep.subr.bf16.mxu1 %v6070_v5  ;;  %v550_v14 = vld [vmem:[#allocation6 + $0x840] sm:$0xff]  ;;  %v6077_v21 = vcombine.low %v542_v6, %v546_v7  ;;  %v343_v5 = vld [vmem:[#allocation6 + $0x1c8] sm:$0xff]  ;;  %v5872_v6 = vcombine.high %v335_v61, %v339_v63 }
 0x17a   :  { %v554_v15 = vld [vmem:[#allocation6 + $0x860] sm:$0xff]  ;;  %2683 = vmatpush1.bf16.msra.mxu1 %v6069_v11  ;;  %v347_v7 = vld [vmem:[#allocation6 + $0x1e8] sm:$0xff] }
 0x17b   :  { %2693 = vmatprep.subr.bf16.mxu0 %v6078_v12  ;;  %v6086_v23 = vcombine.high %v550_v14, %v554_v15  ;;  %v558_v24 = vld [vmem:[#allocation6 + $0x880] sm:$0xff]  ;;  %2734 = vmatprep.subr.bf16.mxu1 %v5824_v13  ;;  %v6085_v54 = vcombine.low %v550_v14, %v554_v15  ;;  %v351_v13 = vld [vmem:[#allocation6 + $0x208] sm:$0xff]  ;;  %v5880_v14 = vcombine.high %v343_v5, %v347_v7 }
 0x17c   :  { %v562_v25 = vld [vmem:[#allocation6 + $0x8a0] sm:$0xff]  ;;  %2644 = vmatmul.mubr.bf16.vlgmr.msra.gmra.mrb[0].mxu0 %v7684_v16  ;;  %v355_v15 = vld [vmem:[#allocation6 + $0x228] sm:$0xff]  ;;  %v5879_v18 = vcombine.low %v343_v5, %v347_v7 }
 0x17d   :  { %2685 = vmatmul.mubr.bf16.vlgmr.msra.gmra.mrb[0].mxu1 %v7690_v20  ;;  %2694 = vmatpush1.bf16.msra.mxu0 %v6077_v21  ;;  %v6094_v30 = vcombine.high %v558_v24, %v562_v25  ;;  %v566_v31 = vld [vmem:[#allocation6 + $0x8c0] sm:$0xff]  ;;  %v6093_v36 = vcombine.low %v558_v24, %v562_v25  ;;  %v359_v24 = vld [vmem:[#allocation6 + $0x248] sm:$0xff]  ;;  %v5888_v25 = vcombine.high %v351_v13, %v355_v15 }
 0x17e   :  { %2735 = vmatpush1.bf16.msra.mxu1 %v5823_v22  ;;  %2695 = vmatprep.subr.bf16.mxu0 %v6086_v23  ;;  %v570_v32 = vld [vmem:[#allocation6 + $0x8e0] sm:$0xff]  ;;  %v5887_v27 = vcombine.low %v351_v13, %v355_v15  ;;  %v5895_v35 = vcombine.low %v359_v24, %v363_v26  ;;  %v395_v61 = vld [vmem:[#allocation6 + $0x368] sm:$0xff] }
 0x17f   :  { %2736 = vmatprep.subr.bf16.mxu1 %v5832_v53  ;;  %2725 = vmatprep.mubr.bf16.mxu0 %v7694_v28  ;;  %v6102_v38 = vcombine.high %v566_v31, %v570_v32  ;;  %v574_v39 = vld [vmem:[#allocation6 + $0x900] sm:$0xff]  ;;  %v6101_v44 = vcombine.low %v566_v31, %v570_v32  ;;  %v367_v31 = vld [vmem:[#allocation6 + $0x288] sm:$0xff]  ;;  %v5896_v32 = vcombine.high %v359_v24, %v363_v26 }
 0x180   :  { %2766 = vmatprep.mubr.bf16.mxu1 %v7674_v58  ;;  %v578_v40 = vld [vmem:[#allocation6 + $0x920] sm:$0xff]  ;;  %v5903_v43 = vcombine.low %v367_v31, %v371_v33  ;;  %v403_v5 = vld [vmem:[#allocation6 + $0x3a8] sm:$0xff] }
 0x181   :  { %2696 = vmatpush1.bf16.msra.mxu0 %v6085_v54  ;;  %v6110_v46 = vcombine.high %v574_v39, %v578_v40  ;;  %v582_v47 = vld [vmem:[#allocation6 + $0x940] sm:$0xff]  ;;  %v6109_v52 = vcombine.low %v574_v39, %v578_v40  ;;  %v375_v39 = vld [vmem:[#allocation6 + $0x2c8] sm:$0xff]  ;;  %v5904_v40 = vcombine.high %v367_v31, %v371_v33 }
 0x182   :  { %2737 = vmatpush1.bf16.msra.mxu1 %v5831_v29  ;;  %2697 = vmatprep.subr.bf16.mxu0 %v6094_v30  ;;  %v586_v48 = vld [vmem:[#allocation6 + $0x960] sm:$0xff]  ;;  %v5911_v51 = vcombine.low %v375_v39, %v379_v41  ;;  %v411_v13 = vld [vmem:[#allocation6 + $0x3e8] sm:$0xff] }
 0x183   :  { %2738 = vmatprep.subr.bf16.mxu1 %v5840_v34  ;;  %v6118_v56 = vcombine.high %v582_v47, %v586_v48  ;;  %v590_v57 = vld [vmem:[#allocation6 + $0x980] sm:$0xff]  ;;  %v6117_v0 = vcombine.low %v582_v47, %v586_v48  ;;  %v383_v47 = vld [vmem:[#allocation6 + $0x308] sm:$0xff]  ;;  %v5912_v48 = vcombine.high %v375_v39, %v379_v41 }
 0x184   :  { %v594_v60 = vld [vmem:[#allocation6 + $0x9a0] sm:$0xff]  ;;  %v5919_v63 = vcombine.low %v383_v47, %v387_v49  ;;  %v547_v24 = vld [vmem:[#allocation6 + $0x828] sm:$0xff] }
 0x185   :  { %2698 = vmatpush1.bf16.msra.mxu0 %v6093_v36  ;;  %v6126_v2 = vcombine.high %v590_v57, %v594_v60  ;;  %v598_v3 = vld [vmem:[#allocation6 + $0x9c0] sm:$0xff]  ;;  %v6125_v8 = vcombine.low %v590_v57, %v594_v60  ;;  %v391_v57 = vld [vmem:[#allocation6 + $0x348] sm:$0xff]  ;;  %v5920_v60 = vcombine.high %v383_v47, %v387_v49 }
 0x186   :  { %2739 = vmatpush1.bf16.msra.mxu1 %v5839_v37  ;;  %2699 = vmatprep.subr.bf16.mxu0 %v6102_v38  ;;  %v602_v4 = vld [vmem:[#allocation6 + $0x9e0] sm:$0xff]  ;;  %v5927_v7 = vcombine.low %v391_v57, %v395_v61  ;;  %v555_v31 = vld [vmem:[#allocation6 + $0x868] sm:$0xff] }
 0x187   :  { %2740 = vmatprep.subr.bf16.mxu1 %v5848_v42  ;;  %v6134_v10 = vcombine.high %v598_v3, %v602_v4  ;;  %v606_v11 = vld [vmem:[#allocation6 + $0xa00] sm:$0xff]  ;;  %v6133_v17 = vcombine.low %v598_v3, %v602_v4  ;;  %v399_v3 = vld [vmem:[#allocation6 + $0x388] sm:$0xff]  ;;  %v5928_v4 = vcombine.high %v391_v57, %v395_v61 }
 0x188   :  { %v610_v12 = vld [vmem:[#allocation6 + $0xa20] sm:$0xff]  ;;  %v5935_v15 = vcombine.low %v399_v3, %v403_v5  ;;  %v559_v39 = vld [vmem:[#allocation6 + $0x888] sm:$0xff] }
 0x189   :  { %2700 = vmatpush1.bf16.msra.mxu0 %v6101_v44  ;;  %v6142_v21 = vcombine.high %v606_v11, %v610_v12  ;;  %v614_v22 = vld [vmem:[#allocation6 + $0xa40] sm:$0xff]  ;;  %v6141_v53 = vcombine.low %v606_v11, %v610_v12  ;;  %v407_v11 = vld [vmem:[#allocation6 + $0x3c8] sm:$0xff]  ;;  %v5936_v12 = vcombine.high %v399_v3, %v403_v5 }
 0x18a   :  { %2741 = vmatpush1.bf16.msra.mxu1 %v5847_v45  ;;  %2701 = vmatprep.subr.bf16.mxu0 %v6110_v46  ;;  %v618_v23 = vld [vmem:[#allocation6 + $0xa60] sm:$0xff]  ;;  %v5943_v26 = vcombine.low %v407_v11, %v411_v13  ;;  %v571_v47 = vld [vmem:[#allocation6 + $0x8e8] sm:$0xff] }
 0x18b   :  { %2742 = vmatprep.subr.bf16.mxu1 %v5856_v50  ;;  %v6150_v54 = vcombine.high %v614_v22, %v618_v23  ;;  %v622_v29 = vld [vmem:[#allocation6 + $0xa80] sm:$0xff]  ;;  %v6149_v34 = vcombine.low %v614_v22, %v618_v23  ;;  %v543_v22 = vld [vmem:[#allocation6 + $0x808] sm:$0xff]  ;;  %v5944_v23 = vcombine.high %v407_v11, %v411_v13 }
 0x18c   :  { %v626_v30 = vld [vmem:[#allocation6 + $0xaa0] sm:$0xff]  ;;  %v579_v57 = vld [vmem:[#allocation6 + $0x928] sm:$0xff] }
 0x18d   :  { %2702 = vmatpush1.bf16.msra.mxu0 %v6109_v52  ;;  %v6158_v36 = vcombine.high %v622_v29, %v626_v30  ;;  %v630_v37 = vld [vmem:[#allocation6 + $0xac0] sm:$0xff]  ;;  %v6157_v42 = vcombine.low %v622_v29, %v626_v30  ;;  %v551_v29 = vld [vmem:[#allocation6 + $0x848] sm:$0xff]  ;;  %v6080_v30 = vcombine.high %v543_v22, %v547_v24 }
 0x18e   :  { %2743 = vmatpush1.bf16.msra.mxu1 %v5855_v55  ;;  %2703 = vmatprep.subr.bf16.mxu0 %v6118_v56  ;;  %v634_v38 = vld [vmem:[#allocation6 + $0xae0] sm:$0xff]  ;;  %v587_v3 = vld [vmem:[#allocation6 + $0x968] sm:$0xff] }
 0x18f   :  { %2744 = vmatprep.subr.bf16.mxu1 %v5864_v62  ;;  %v6166_v44 = vcombine.high %v630_v37, %v634_v38  ;;  %v638_v45 = vld [vmem:[#allocation6 + $0xb00] sm:$0xff]  ;;  %v6165_v50 = vcombine.low %v630_v37, %v634_v38  ;;  %v435_v37 = vld [vmem:[#allocation6 + $0x4a8] sm:$0xff]  ;;  %v6088_v38 = vcombine.high %v551_v29, %v555_v31 }
 0x190   :  { %v642_v46 = vld [vmem:[#allocation6 + $0xb20] sm:$0xff]  ;;  %v595_v11 = vld [vmem:[#allocation6 + $0x9a8] sm:$0xff] }
 0x191   :  { %2704 = vmatpush1.bf16.msra.mxu0 %v6117_v0  ;;  %v6174_v52 = vcombine.high %v638_v45, %v642_v46  ;;  %v646_v55 = vld [vmem:[#allocation6 + $0xb40] sm:$0xff]  ;;  %v6173_v62 = vcombine.low %v638_v45, %v642_v46  ;;  %v567_v46 = vld [vmem:[#allocation6 + $0x8c8] sm:$0xff] }
 0x192   :  { %2745 = vmatpush1.bf16.msra.mxu1 %v5863_v1  ;;  %2705 = vmatprep.subr.bf16.mxu0 %v6126_v2  ;;  %v650_v56 = vld [vmem:[#allocation6 + $0xb60] sm:$0xff]  ;;  %v6103_v61 = vcombine.low %v567_v46, %v571_v47 }
 0x193   :  { %2746 = vmatprep.subr.bf16.mxu1 %v5872_v6  ;;  %v6182_v0 = vcombine.high %v646_v55, %v650_v56  ;;  %v654_v1 = vld [vmem:[#allocation6 + $0xb80] sm:$0xff]  ;;  %v6181_v6 = vcombine.low %v646_v55, %v650_v56  ;;  %v6104_v55 = vcombine.high %v567_v46, %v571_v47  ;;  %v575_v56 = vld [vmem:[#allocation6 + $0x908] sm:$0xff] }
 0x194   :  { %v658_v2 = vld [vmem:[#allocation6 + $0xba0] sm:$0xff]  ;;  %v6111_v5 = vcombine.low %v575_v56, %v579_v57 }
 0x195   :  { %2706 = vmatpush1.bf16.msra.mxu0 %v6125_v8  ;;  %v6190_v8 = vcombine.high %v654_v1, %v658_v2 }
 0x196   :  { %2747 = vmatpush1.bf16.msra.mxu1 %v5871_v9  ;;  %2707 = vmatprep.subr.bf16.mxu0 %v6134_v10  ;;  %v662_v9 = vld [vmem:[#allocation6 + $0xbc0] sm:$0xff] }
 0x197   :  { %2748 = vmatprep.subr.bf16.mxu1 %v5880_v14  ;;  %v666_v10 = vld [vmem:[#allocation6 + $0xbe0] sm:$0xff]  ;;  %v6189_v14 = vcombine.low %v654_v1, %v658_v2  ;;  %v6112_v1 = vcombine.high %v575_v56, %v579_v57  ;;  %v583_v2 = vld [vmem:[#allocation6 + $0x948] sm:$0xff] }
 0x198   :  { %v6119_v13 = vcombine.low %v583_v2, %v587_v3 }
 0x199   :  { %2708 = vmatpush1.bf16.msra.mxu0 %v6133_v17  ;;  %v6198_v17 = vcombine.high %v662_v9, %v666_v10 }
 0x19a   :  { %2749 = vmatpush1.bf16.msra.mxu1 %v5879_v18  ;;  %2709 = vmatprep.subr.bf16.mxu0 %v6142_v21  ;;  %v415_v18 = vld [vmem:[#allocation6 + $0x408] sm:$0xff] }
 0x19b   :  { %2750 = vmatprep.subr.bf16.mxu1 %v5888_v25  ;;  %v419_v21 = vld [vmem:[#allocation6 + $0x428] sm:$0xff]  ;;  %v6197_v25 = vcombine.low %v662_v9, %v666_v10  ;;  %v6120_v9 = vcombine.high %v583_v2, %v587_v3 }
 0x19c   :  { %v5951_v33 = vcombine.low %v415_v18, %v419_v21  ;;  %v591_v10 = vld [vmem:[#allocation6 + $0x988] sm:$0xff] }
 0x19d   :  { %2710 = vmatpush1.bf16.msra.mxu0 %v6141_v53  ;;  %v5952_v53 = vcombine.high %v415_v18, %v419_v21  ;;  %v6128_v18 = vcombine.high %v591_v10, %v595_v11  ;;  %v599_v21 = vld [vmem:[#allocation6 + $0x9c8] sm:$0xff] }
 0x19e   :  { %2751 = vmatpush1.bf16.msra.mxu1 %v5887_v27  ;;  %2711 = vmatprep.subr.bf16.mxu0 %v6150_v54  ;;  %v423_v27 = vld [vmem:[#allocation6 + $0x448] sm:$0xff] }
 0x19f   :  { %2752 = vmatprep.subr.bf16.mxu1 %v5896_v32  ;;  %v427_v54 = vld [vmem:[#allocation6 + $0x468] sm:$0xff]  ;;  %v7702_v32 = vcombine.low %v7686_v19, %v7686_v19  ;;  %v6087_v19 = vcombine.low %v551_v29, %v555_v31 }
 0x1a0   :  { %v5959_v41 = vcombine.low %v423_v27, %v427_v54  ;;  %v611_v29 = vld [vmem:[#allocation6 + $0xa28] sm:$0xff] }
 0x1a1   :  { %2712 = vmatpush1.bf16.msra.mxu0 %v6149_v34  ;;  %v6079_v34 = vcombine.low %v543_v22, %v547_v24  ;;  %v603_v22 = vld [vmem:[#allocation6 + $0x9e8] sm:$0xff]  ;;  %v6127_v24 = vcombine.low %v591_v10, %v595_v11 }
 0x1a2   :  { %2753 = vmatpush1.bf16.msra.mxu1 %v5895_v35  ;;  %2713 = vmatprep.subr.bf16.mxu0 %v6158_v36  ;;  %v5960_v35 = vcombine.high %v423_v27, %v427_v54  ;;  %v431_v36 = vld [vmem:[#allocation6 + $0x488] sm:$0xff]  ;;  %v6136_v27 = vcombine.high %v599_v21, %v603_v22  ;;  %v6135_v31 = vcombine.low %v599_v21, %v603_v22 }
 0x1a3   :  { %2754 = vmatprep.subr.bf16.mxu1 %v5904_v40  ;;  %v563_v40 = vld [vmem:[#allocation6 + $0x8a8] sm:$0xff] }
 0x1a4   :  { %v6096_v45 = vcombine.high %v559_v39, %v563_v40  ;;  %v6095_v49 = vcombine.low %v559_v39, %v563_v40  ;;  %v607_v54 = vld [vmem:[#allocation6 + $0xa08] sm:$0xff] }
 0x1a5   :  { %2714 = vmatpush1.bf16.msra.mxu0 %v6157_v42  ;;  %v5968_v42 = vcombine.high %v431_v36, %v435_v37  ;;  %v6143_v40 = vcombine.low %v607_v54, %v611_v29 }
 0x1a6   :  { %2755 = vmatpush1.bf16.msra.mxu1 %v5903_v43  ;;  %2715 = vmatprep.subr.bf16.mxu0 %v6166_v44  ;;  %v439_v43 = vld [vmem:[#allocation6 + $0x4c8] sm:$0xff] }
 0x1a7   :  { %2756 = vmatprep.subr.bf16.mxu1 %v5912_v48  ;;  %v443_v44 = vld [vmem:[#allocation6 + $0x4e8] sm:$0xff]  ;;  %v5967_v48 = vcombine.low %v431_v36, %v435_v37  ;;  %v6144_v36 = vcombine.high %v607_v54, %v611_v29 }
 0x1a8   :  { %v615_v37 = vld [vmem:[#allocation6 + $0xa48] sm:$0xff] }
 0x1a9   :  { %2716 = vmatpush1.bf16.msra.mxu0 %v6165_v50  ;;  %v5976_v50 = vcombine.high %v439_v43, %v443_v44 }
 0x1aa   :  { %2757 = vmatpush1.bf16.msra.mxu1 %v5911_v51  ;;  %2717 = vmatprep.subr.bf16.mxu0 %v6174_v52  ;;  %v447_v51 = vld [vmem:[#allocation6 + $0x508] sm:$0xff] }
 0x1ab   :  { %2758 = vmatprep.subr.bf16.mxu1 %v5920_v60  ;;  %v451_v52 = vld [vmem:[#allocation6 + $0x528] sm:$0xff]  ;;  %v5975_v60 = vcombine.low %v439_v43, %v443_v44 }
 0x1ac   :  { %v623_v44 = vld [vmem:[#allocation6 + $0xa88] sm:$0xff] }
 0x1ad   :  { %2718 = vmatpush1.bf16.msra.mxu0 %v6173_v62  ;;  %v5984_v62 = vcombine.high %v447_v51, %v451_v52 }
 0x1ae   :  { %2759 = vmatpush1.bf16.msra.mxu1 %v5919_v63  ;;  %2719 = vmatprep.subr.bf16.mxu0 %v6182_v0  ;;  %v455_v63 = vld [vmem:[#allocation6 + $0x548] sm:$0xff] }
 0x1af   :  { %2760 = vmatprep.subr.bf16.mxu1 %v5928_v4  ;;  %v459_v0 = vld [vmem:[#allocation6 + $0x568] sm:$0xff]  ;;  %v5983_v4 = vcombine.low %v447_v51, %v451_v52 }
 0x1b0   :  { %v631_v52 = vld [vmem:[#allocation6 + $0xac8] sm:$0xff] }
 0x1b1   :  { %2720 = vmatpush1.bf16.msra.mxu0 %v6181_v6  ;;  %v5992_v6 = vcombine.high %v455_v63, %v459_v0 }
 0x1b2   :  { %2761 = vmatpush1.bf16.msra.mxu1 %v5927_v7  ;;  %2721 = vmatprep.subr.bf16.mxu0 %v6190_v8  ;;  %v463_v7 = vld [vmem:[#allocation6 + $0x588] sm:$0xff] }
 0x1b3   :  { %2762 = vmatprep.subr.bf16.mxu1 %v5936_v12  ;;  %v467_v8 = vld [vmem:[#allocation6 + $0x5a8] sm:$0xff]  ;;  %v5991_v12 = vcombine.low %v455_v63, %v459_v0 }
 0x1b4   :  { %v515_v63 = vld [vmem:[#allocation6 + $0x728] sm:$0xff] }
 0x1b5   :  { %2722 = vmatpush1.bf16.msra.mxu0 %v6189_v14  ;;  %v6000_v14 = vcombine.high %v463_v7, %v467_v8  ;;  %v639_v0 = vld [vmem:[#allocation6 + $0xb08] sm:$0xff] }
 0x1b6   :  { %2763 = vmatpush1.bf16.msra.mxu1 %v5935_v15  ;;  %2723 = vmatprep.subr.bf16.mxu0 %v6198_v17  ;;  %v471_v15 = vld [vmem:[#allocation6 + $0x5c8] sm:$0xff] }
 0x1b7   :  { %2764 = vmatprep.subr.bf16.mxu1 %v5944_v23  ;;  %v475_v17 = vld [vmem:[#allocation6 + $0x5e8] sm:$0xff]  ;;  %v5999_v23 = vcombine.low %v463_v7, %v467_v8 }
 0x1b8   :  { %v523_v7 = vld [vmem:[#allocation6 + $0x768] sm:$0xff] }
 0x1b9   :  { %2724 = vmatpush1.bf16.msra.mxu0 %v6197_v25  ;;  %v6008_v25 = vcombine.high %v471_v15, %v475_v17  ;;  %v647_v8 = vld [vmem:[#allocation6 + $0xb48] sm:$0xff] }
 0x1ba   :  { %2765 = vmatpush1.bf16.msra.mxu1 %v5943_v26  ;;  %2775 = vmatprep.subr.bf16.mxu0 %v5952_v53  ;;  %v479_v26 = vld [vmem:[#allocation6 + $0x608] sm:$0xff] }
 0x1bb   :  { %2816 = vmatprep.subr.bf16.mxu1 %v6080_v30  ;;  %v483_v53 = vld [vmem:[#allocation6 + $0x628] sm:$0xff]  ;;  %v6007_v30 = vcombine.low %v471_v15, %v475_v17 }
 0x1bc   :  { %2726 = vmatmul.mubr.bf16.vlgmr.msra.gmra.mrb[4].mxu0 %v7702_v32  ;;  %v6015_v39 = vcombine.low %v479_v26, %v483_v53  ;;  %v531_v15 = vld [vmem:[#allocation6 + $0x7a8] sm:$0xff] }
 0x1bd   :  { %2767 = vmatmul.mubr.bf16.vlgmr.msra.gmra.mrb[4].mxu1 %v7684_v16  ;;  %2776 = vmatpush1.bf16.msra.mxu0 %v5951_v33  ;;  %v6016_v33 = vcombine.high %v479_v26, %v483_v53  ;;  %v655_v17 = vld [vmem:[#allocation6 + $0xb88] sm:$0xff] }
 0x1be   :  { %2817 = vmatpush1.bf16.msra.mxu1 %v6079_v34  ;;  %2777 = vmatprep.subr.bf16.mxu0 %v5960_v35  ;;  %v487_v34 = vld [vmem:[#allocation6 + $0x648] sm:$0xff] }
 0x1bf   :  { %2818 = vmatprep.subr.bf16.mxu1 %v6088_v38  ;;  %2807 = vmatprep.mubr.bf16.mxu0 %v7678_v59  ;;  %v491_v35 = vld [vmem:[#allocation6 + $0x668] sm:$0xff] }
 0x1c0   :  { %2848 = vmatprep.mubr.bf16.mxu1 %v7694_v28  ;;  %v619_v38 = vld [vmem:[#allocation6 + $0xa68] sm:$0xff]  ;;  %v6023_v46 = vcombine.low %v487_v34, %v491_v35 }
 0x1c1   :  { %2778 = vmatpush1.bf16.msra.mxu0 %v5959_v41  ;;  %v6024_v41 = vcombine.high %v487_v34, %v491_v35  ;;  %v6152_v43 = vcombine.high %v615_v37, %v619_v38  ;;  %v6151_v47 = vcombine.low %v615_v37, %v619_v38  ;;  %v539_v26 = vld [vmem:[#allocation6 + $0x7e8] sm:$0xff]  ;;  %v292_v34 = vld [vmem:[#allocation6 + $0x30] sm:$0xff] }
 0x1c2   :  { %2819 = vmatpush1.bf16.msra.mxu1 %v6087_v19  ;;  %2779 = vmatprep.subr.bf16.mxu0 %v5968_v42  ;;  %v495_v19 = vld [vmem:[#allocation6 + $0x688] sm:$0xff]  ;;  %v416_v35 = vld [vmem:[#allocation6 + $0x410] sm:$0xff] }
 0x1c3   :  { %2820 = vmatprep.subr.bf16.mxu1 %v6096_v45  ;;  %v499_v42 = vld [vmem:[#allocation6 + $0x6a8] sm:$0xff] }
 0x1c4   :  { %v627_v45 = vld [vmem:[#allocation6 + $0xaa8] sm:$0xff]  ;;  %v6031_v56 = vcombine.low %v495_v19, %v499_v42 }
 0x1c5   :  { %2780 = vmatpush1.bf16.msra.mxu0 %v5967_v48  ;;  %v6032_v48 = vcombine.high %v495_v19, %v499_v42  ;;  %v6160_v51 = vcombine.high %v623_v44, %v627_v45  ;;  %v6159_v57 = vcombine.low %v623_v44, %v627_v45  ;;  %v663_v53 = vld [vmem:[#allocation6 + $0xbc8] sm:$0xff]  ;;  %v300_v19 = vld [vmem:[#allocation6 + $0x70] sm:$0xff] }
 0x1c6   :  { %2821 = vmatpush1.bf16.msra.mxu1 %v6095_v49  ;;  %2781 = vmatprep.subr.bf16.mxu0 %v5976_v50  ;;  %v503_v49 = vld [vmem:[#allocation6 + $0x6c8] sm:$0xff]  ;;  %v424_v42 = vld [vmem:[#allocation6 + $0x450] sm:$0xff] }
 0x1c7   :  { %2822 = vmatprep.subr.bf16.mxu1 %v6104_v55  ;;  %v507_v50 = vld [vmem:[#allocation6 + $0x6e8] sm:$0xff] }
 0x1c8   :  { %v635_v55 = vld [vmem:[#allocation6 + $0xae8] sm:$0xff]  ;;  %v6039_v2 = vcombine.low %v503_v49, %v507_v50 }
 0x1c9   :  { %2782 = vmatpush1.bf16.msra.mxu0 %v5975_v60  ;;  %v6040_v60 = vcombine.high %v503_v49, %v507_v50  ;;  %v6167_v3 = vcombine.low %v631_v52, %v635_v55  ;;  %v308_v49 = vld [vmem:[#allocation6 + $0xb0] sm:$0xff] }
 0x1ca   :  { %2823 = vmatpush1.bf16.msra.mxu1 %v6103_v61  ;;  %2783 = vmatprep.subr.bf16.mxu0 %v5984_v62  ;;  %v6168_v61 = vcombine.high %v631_v52, %v635_v55  ;;  %v511_v62 = vld [vmem:[#allocation6 + $0x708] sm:$0xff]  ;;  %v432_v50 = vld [vmem:[#allocation6 + $0x490] sm:$0xff] }
 0x1cb   :  { %2824 = vmatprep.subr.bf16.mxu1 %v6112_v1  ;;  %v643_v1 = vld [vmem:[#allocation6 + $0xb28] sm:$0xff]  ;;  %v6047_v10 = vcombine.low %v511_v62, %v515_v63 }
 0x1cc   :  { %v6175_v11 = vcombine.low %v639_v0, %v643_v1 }
 0x1cd   :  { %2784 = vmatpush1.bf16.msra.mxu0 %v5983_v4  ;;  %v6048_v4 = vcombine.high %v511_v62, %v515_v63  ;;  %v440_v62 = vld [vmem:[#allocation6 + $0x4d0] sm:$0xff] }
 0x1ce   :  { %2825 = vmatpush1.bf16.msra.mxu1 %v6111_v5  ;;  %2785 = vmatprep.subr.bf16.mxu0 %v5992_v6  ;;  %v6176_v5 = vcombine.high %v639_v0, %v643_v1  ;;  %v519_v6 = vld [vmem:[#allocation6 + $0x748] sm:$0xff]  ;;  %v444_v63 = vld [vmem:[#allocation6 + $0x4f0] sm:$0xff] }
 0x1cf   :  { %2826 = vmatprep.subr.bf16.mxu1 %v6120_v9  ;;  %v651_v9 = vld [vmem:[#allocation6 + $0xb68] sm:$0xff]  ;;  %v6055_v21 = vcombine.low %v519_v6, %v523_v7 }
 0x1d0   :  { %v6183_v22 = vcombine.low %v647_v8, %v651_v9 }
 0x1d1   :  { %2786 = vmatpush1.bf16.msra.mxu0 %v5991_v12  ;;  %v6056_v12 = vcombine.high %v519_v6, %v523_v7  ;;  %v448_v6 = vld [vmem:[#allocation6 + $0x510] sm:$0xff] }
 0x1d2   :  { %2827 = vmatpush1.bf16.msra.mxu1 %v6119_v13  ;;  %2787 = vmatprep.subr.bf16.mxu0 %v6000_v14  ;;  %v6184_v13 = vcombine.high %v647_v8, %v651_v9  ;;  %v527_v14 = vld [vmem:[#allocation6 + $0x788] sm:$0xff]  ;;  %v452_v7 = vld [vmem:[#allocation6 + $0x530] sm:$0xff]  ;;  %v5977_v9 = vcombine.low %v440_v62, %v444_v63 }
 0x1d3   :  { %2828 = vmatprep.subr.bf16.mxu1 %v6128_v18  ;;  %v659_v18 = vld [vmem:[#allocation6 + $0xba8] sm:$0xff]  ;;  %v6063_v54 = vcombine.low %v527_v14, %v531_v15 }
 0x1d4   :  { %v6191_v29 = vcombine.low %v655_v17, %v659_v18 }
 0x1d5   :  { %2788 = vmatpush1.bf16.msra.mxu0 %v5999_v23  ;;  %v6064_v23 = vcombine.high %v527_v14, %v531_v15  ;;  %v456_v14 = vld [vmem:[#allocation6 + $0x550] sm:$0xff] }
 0x1d6   :  { %2829 = vmatpush1.bf16.msra.mxu1 %v6127_v24  ;;  %2789 = vmatprep.subr.bf16.mxu0 %v6008_v25  ;;  %v6192_v24 = vcombine.high %v655_v17, %v659_v18  ;;  %v535_v25 = vld [vmem:[#allocation6 + $0x7c8] sm:$0xff]  ;;  %v460_v15 = vld [vmem:[#allocation6 + $0x570] sm:$0xff]  ;;  %v5985_v18 = vcombine.low %v448_v6, %v452_v7 }
 0x1d7   :  { %2830 = vmatprep.subr.bf16.mxu1 %v6136_v27  ;;  %v667_v27 = vld [vmem:[#allocation6 + $0xbe8] sm:$0xff]  ;;  %v6071_v37 = vcombine.low %v535_v25, %v539_v26 }
 0x1d8   :  { %v6199_v38 = vcombine.low %v663_v53, %v667_v27 }
 0x1d9   :  { %2790 = vmatpush1.bf16.msra.mxu0 %v6007_v30  ;;  %v6072_v30 = vcombine.high %v535_v25, %v539_v26  ;;  %v464_v25 = vld [vmem:[#allocation6 + $0x590] sm:$0xff] }
 0x1da   :  { %2831 = vmatpush1.bf16.msra.mxu1 %v6135_v31  ;;  %2791 = vmatprep.subr.bf16.mxu0 %v6016_v33  ;;  %v6200_v31 = vcombine.high %v663_v53, %v667_v27  ;;  %v288_v33 = vld [vmem:[#allocation6 + $0x10] sm:$0xff]  ;;  %v5993_v27 = vcombine.low %v456_v14, %v460_v15 }
 0x1db   :  { %2832 = vmatprep.subr.bf16.mxu1 %v6144_v36  ;;  %v420_v36 = vld [vmem:[#allocation6 + $0x430] sm:$0xff]  ;;  %v5825_v44 = vcombine.low %v288_v33, %v292_v34 }
 0x1dc   :  { %v5953_v45 = vcombine.low %v416_v35, %v420_v36  ;;  %v468_v26 = vld [vmem:[#allocation6 + $0x5b0] sm:$0xff] }
 0x1dd   :  { %2792 = vmatpush1.bf16.msra.mxu0 %v6015_v39  ;;  %v5826_v39 = vcombine.high %v288_v33, %v292_v34  ;;  %v472_v33 = vld [vmem:[#allocation6 + $0x5d0] sm:$0xff] }
 0x1de   :  { %2833 = vmatpush1.bf16.msra.mxu1 %v6143_v40  ;;  %2793 = vmatprep.subr.bf16.mxu0 %v6024_v41  ;;  %v5954_v40 = vcombine.high %v416_v35, %v420_v36  ;;  %v296_v41 = vld [vmem:[#allocation6 + $0x50] sm:$0xff]  ;;  %v6001_v36 = vcombine.low %v464_v25, %v468_v26 }
 0x1df   :  { %2834 = vmatprep.subr.bf16.mxu1 %v6152_v43  ;;  %v428_v43 = vld [vmem:[#allocation6 + $0x470] sm:$0xff]  ;;  %v5833_v52 = vcombine.low %v296_v41, %v300_v19 }
 0x1e0   :  { %v5961_v55 = vcombine.low %v424_v42, %v428_v43  ;;  %v476_v34 = vld [vmem:[#allocation6 + $0x5f0] sm:$0xff] }
 0x1e1   :  { %2794 = vmatpush1.bf16.msra.mxu0 %v6023_v46  ;;  %v5834_v46 = vcombine.high %v296_v41, %v300_v19  ;;  %v480_v41 = vld [vmem:[#allocation6 + $0x610] sm:$0xff] }
 0x1e2   :  { %2835 = vmatpush1.bf16.msra.mxu1 %v6151_v47  ;;  %2795 = vmatprep.subr.bf16.mxu0 %v6032_v48  ;;  %v5962_v47 = vcombine.high %v424_v42, %v428_v43  ;;  %v304_v48 = vld [vmem:[#allocation6 + $0x90] sm:$0xff]  ;;  %v6009_v43 = vcombine.low %v472_v33, %v476_v34 }
 0x1e3   :  { %2836 = vmatprep.subr.bf16.mxu1 %v6160_v51  ;;  %v436_v51 = vld [vmem:[#allocation6 + $0x4b0] sm:$0xff]  ;;  %v5841_v0 = vcombine.low %v304_v48, %v308_v49 }
 0x1e4   :  { %v5969_v1 = vcombine.low %v432_v50, %v436_v51  ;;  %v484_v19 = vld [vmem:[#allocation6 + $0x630] sm:$0xff] }
 0x1e5   :  { %2796 = vmatpush1.bf16.msra.mxu0 %v6031_v56  ;;  %v5842_v56 = vcombine.high %v304_v48, %v308_v49  ;;  %v488_v48 = vld [vmem:[#allocation6 + $0x650] sm:$0xff] }
 0x1e6   :  { %2837 = vmatpush1.bf16.msra.mxu1 %v6159_v57  ;;  %2797 = vmatprep.subr.bf16.mxu0 %v6040_v60  ;;  %v5970_v57 = vcombine.high %v432_v50, %v436_v51  ;;  %v312_v60 = vld [vmem:[#allocation6 + $0xd0] sm:$0xff]  ;;  %v6017_v51 = vcombine.low %v480_v41, %v484_v19 }
 0x1e7   :  { %2838 = vmatprep.subr.bf16.mxu1 %v6168_v61  ;;  %v316_v61 = vld [vmem:[#allocation6 + $0xf0] sm:$0xff] }
 0x1e8   :  { %v5849_v8 = vcombine.low %v312_v60, %v316_v61  ;;  %v492_v49 = vld [vmem:[#allocation6 + $0x670] sm:$0xff] }
 0x1e9   :  { %2798 = vmatpush1.bf16.msra.mxu0 %v6039_v2  ;;  %v5850_v2 = vcombine.high %v312_v60, %v316_v61  ;;  %v496_v60 = vld [vmem:[#allocation6 + $0x690] sm:$0xff] }
 0x1ea   :  { %2839 = vmatpush1.bf16.msra.mxu1 %v6167_v3  ;;  %2799 = vmatprep.subr.bf16.mxu0 %v6048_v4  ;;  %v5978_v3 = vcombine.high %v440_v62, %v444_v63  ;;  %v320_v4 = vld [vmem:[#allocation6 + $0x110] sm:$0xff]  ;;  %v6025_v63 = vcombine.low %v488_v48, %v492_v49 }
 0x1eb   :  { %2840 = vmatprep.subr.bf16.mxu1 %v6176_v5  ;;  %v324_v5 = vld [vmem:[#allocation6 + $0x130] sm:$0xff] }
 0x1ec   :  { %v5857_v17 = vcombine.low %v320_v4, %v324_v5  ;;  %v500_v61 = vld [vmem:[#allocation6 + $0x6b0] sm:$0xff] }
 0x1ed   :  { %2800 = vmatpush1.bf16.msra.mxu0 %v6047_v10  ;;  %v5858_v10 = vcombine.high %v320_v4, %v324_v5  ;;  %v504_v4 = vld [vmem:[#allocation6 + $0x6d0] sm:$0xff] }
 0x1ee   :  { %2841 = vmatpush1.bf16.msra.mxu1 %v6175_v11  ;;  %2801 = vmatprep.subr.bf16.mxu0 %v6056_v12  ;;  %v5986_v11 = vcombine.high %v448_v6, %v452_v7  ;;  %v328_v12 = vld [vmem:[#allocation6 + $0x150] sm:$0xff]  ;;  %v6033_v7 = vcombine.low %v496_v60, %v500_v61 }
 0x1ef   :  { %2842 = vmatprep.subr.bf16.mxu1 %v6184_v13  ;;  %v332_v13 = vld [vmem:[#allocation6 + $0x170] sm:$0xff] }
 0x1f0   :  { %v5865_v53 = vcombine.low %v328_v12, %v332_v13  ;;  %v508_v5 = vld [vmem:[#allocation6 + $0x6f0] sm:$0xff] }
 0x1f1   :  { %2802 = vmatpush1.bf16.msra.mxu0 %v6055_v21  ;;  %v5866_v21 = vcombine.high %v328_v12, %v332_v13  ;;  %v512_v12 = vld [vmem:[#allocation6 + $0x710] sm:$0xff] }
 0x1f2   :  { %2843 = vmatpush1.bf16.msra.mxu1 %v6183_v22  ;;  %2803 = vmatprep.subr.bf16.mxu0 %v6064_v23  ;;  %v5994_v22 = vcombine.high %v456_v14, %v460_v15  ;;  %v336_v23 = vld [vmem:[#allocation6 + $0x190] sm:$0xff]  ;;  %v6041_v15 = vcombine.low %v504_v4, %v508_v5 }
 0x1f3   :  { %2844 = vmatprep.subr.bf16.mxu1 %v6192_v24  ;;  %v340_v24 = vld [vmem:[#allocation6 + $0x1b0] sm:$0xff] }
 0x1f4   :  { %v5873_v35 = vcombine.low %v336_v23, %v340_v24  ;;  %v516_v13 = vld [vmem:[#allocation6 + $0x730] sm:$0xff] }
 0x1f5   :  { %2804 = vmatpush1.bf16.msra.mxu0 %v6063_v54  ;;  %v5874_v54 = vcombine.high %v336_v23, %v340_v24  ;;  %v520_v23 = vld [vmem:[#allocation6 + $0x750] sm:$0xff] }
 0x1f6   :  { %2845 = vmatpush1.bf16.msra.mxu1 %v6191_v29  ;;  %2805 = vmatprep.subr.bf16.mxu0 %v6072_v30  ;;  %v6002_v29 = vcombine.high %v464_v25, %v468_v26  ;;  %v344_v30 = vld [vmem:[#allocation6 + $0x1d0] sm:$0xff]  ;;  %v6049_v26 = vcombine.low %v512_v12, %v516_v13 }
 0x1f7   :  { %2846 = vmatprep.subr.bf16.mxu1 %v6200_v31  ;;  %v348_v31 = vld [vmem:[#allocation6 + $0x1f0] sm:$0xff] }
 0x1f8   :  { %v5881_v42 = vcombine.low %v344_v30, %v348_v31  ;;  %v524_v24 = vld [vmem:[#allocation6 + $0x770] sm:$0xff] }
 0x1f9   :  { %2806 = vmatpush1.bf16.msra.mxu0 %v6071_v37  ;;  %v5882_v37 = vcombine.high %v344_v30, %v348_v31  ;;  %v528_v30 = vld [vmem:[#allocation6 + $0x790] sm:$0xff] }
 0x1fa   :  { %2847 = vmatpush1.bf16.msra.mxu1 %v6199_v38  ;;  %2857 = vmatprep.subr.bf16.mxu0 %v5826_v39  ;;  %v6010_v38 = vcombine.high %v472_v33, %v476_v34  ;;  %v352_v39 = vld [vmem:[#allocation6 + $0x210] sm:$0xff]  ;;  %v6057_v34 = vcombine.low %v520_v23, %v524_v24 }
 0x1fb   :  { %2898 = vmatprep.subr.bf16.mxu1 %v5954_v40  ;;  %v356_v40 = vld [vmem:[#allocation6 + $0x230] sm:$0xff] }
 0x1fc   :  { %2808 = vmatmul.mubr.bf16.vlgmr.msra.gmra.mrb[8].mxu0 %v7690_v20  ;;  %v5889_v50 = vcombine.low %v352_v39, %v356_v40  ;;  %v532_v31 = vld [vmem:[#allocation6 + $0x7b0] sm:$0xff] }
 0x1fd   :  { %2849 = vmatmul.mubr.bf16.vlgmr.msra.gmra.mrb[8].mxu1 %v7702_v32  ;;  %2858 = vmatpush1.bf16.msra.mxu0 %v5825_v44  ;;  %v5890_v44 = vcombine.high %v352_v39, %v356_v40  ;;  %v536_v39 = vld [vmem:[#allocation6 + $0x7d0] sm:$0xff] }
 0x1fe   :  { %2899 = vmatpush1.bf16.msra.mxu1 %v5953_v45  ;;  %2859 = vmatprep.subr.bf16.mxu0 %v5834_v46  ;;  %v6018_v45 = vcombine.high %v480_v41, %v484_v19  ;;  %v360_v46 = vld [vmem:[#allocation6 + $0x250] sm:$0xff]  ;;  %v6065_v19 = vcombine.low %v528_v30, %v532_v31 }
 0x1ff   :  { %2900 = vmatprep.subr.bf16.mxu1 %v5962_v47  ;;  %2889 = vmatprep.mubr.bf16.mxu0 %v7674_v58  ;;  %v364_v47 = vld [vmem:[#allocation6 + $0x270] sm:$0xff] }
 0x200   :  { %2930 = vmatprep.mubr.bf16.mxu1 %v7678_v59  ;;  %v5897_v62 = vcombine.low %v360_v46, %v364_v47  ;;  %v540_v40 = vld [vmem:[#allocation6 + $0x7f0] sm:$0xff] }
 0x201   :  { %2860 = vmatpush1.bf16.msra.mxu0 %v5833_v52  ;;  %v5898_v52 = vcombine.high %v360_v46, %v364_v47  ;;  %v289_v46 = vld [vmem:[#allocation6 + $0x18] sm:$0xff] }
 0x202   :  { %2901 = vmatpush1.bf16.msra.mxu1 %v5961_v55  ;;  %2861 = vmatprep.subr.bf16.mxu0 %v5842_v56  ;;  %v6026_v55 = vcombine.high %v488_v48, %v492_v49  ;;  %v368_v56 = vld [vmem:[#allocation6 + $0x290] sm:$0xff]  ;;  %v293_v47 = vld [vmem:[#allocation6 + $0x38] sm:$0xff]  ;;  %v6073_v49 = vcombine.low %v536_v39, %v540_v40 }
 0x203   :  { %2902 = vmatprep.subr.bf16.mxu1 %v5970_v57  ;;  %v372_v57 = vld [vmem:[#allocation6 + $0x2b0] sm:$0xff] }
 0x204   :  { %v5905_v6 = vcombine.low %v368_v56, %v372_v57 }
 0x205   :  { %2862 = vmatpush1.bf16.msra.mxu0 %v5841_v0  ;;  %v5906_v0 = vcombine.high %v368_v56, %v372_v57  ;;  %v297_v56 = vld [vmem:[#allocation6 + $0x58] sm:$0xff] }
 0x206   :  { %2903 = vmatpush1.bf16.msra.mxu1 %v5969_v1  ;;  %2863 = vmatprep.subr.bf16.mxu0 %v5850_v2  ;;  %v6034_v1 = vcombine.high %v496_v60, %v500_v61  ;;  %v376_v2 = vld [vmem:[#allocation6 + $0x2d0] sm:$0xff]  ;;  %v301_v57 = vld [vmem:[#allocation6 + $0x78] sm:$0xff]  ;;  %v5827_v61 = vcombine.low %v289_v46, %v293_v47 }
 0x207   :  { %2904 = vmatprep.subr.bf16.mxu1 %v5978_v3  ;;  %v380_v3 = vld [vmem:[#allocation6 + $0x2f0] sm:$0xff] }
 0x208   :  { %v5913_v14 = vcombine.low %v376_v2, %v380_v3 }
 0x209   :  { %2864 = vmatpush1.bf16.msra.mxu0 %v5849_v8  ;;  %v5914_v8 = vcombine.high %v376_v2, %v380_v3  ;;  %v305_v2 = vld [vmem:[#allocation6 + $0x98] sm:$0xff] }
 0x20a   :  { %2905 = vmatpush1.bf16.msra.mxu1 %v5977_v9  ;;  %2865 = vmatprep.subr.bf16.mxu0 %v5858_v10  ;;  %v6042_v9 = vcombine.high %v504_v4, %v508_v5  ;;  %v384_v10 = vld [vmem:[#allocation6 + $0x310] sm:$0xff]  ;;  %v309_v3 = vld [vmem:[#allocation6 + $0xb8] sm:$0xff]  ;;  %v5835_v5 = vcombine.low %v297_v56, %v301_v57 }
 0x20b   :  { %2906 = vmatprep.subr.bf16.mxu1 %v5986_v11  ;;  %v388_v11 = vld [vmem:[#allocation6 + $0x330] sm:$0xff] }
 0x20c   :  { %v5921_v25 = vcombine.low %v384_v10, %v388_v11 }
 0x20d   :  { %2866 = vmatpush1.bf16.msra.mxu0 %v5857_v17  ;;  %v5922_v17 = vcombine.high %v384_v10, %v388_v11  ;;  %v313_v10 = vld [vmem:[#allocation6 + $0xd8] sm:$0xff] }
 0x20e   :  { %2907 = vmatpush1.bf16.msra.mxu1 %v5985_v18  ;;  %2867 = vmatprep.subr.bf16.mxu0 %v5866_v21  ;;  %v6050_v18 = vcombine.high %v512_v12, %v516_v13  ;;  %v392_v21 = vld [vmem:[#allocation6 + $0x350] sm:$0xff]  ;;  %v317_v11 = vld [vmem:[#allocation6 + $0xf8] sm:$0xff]  ;;  %v5843_v13 = vcombine.low %v305_v2, %v309_v3 }
 0x20f   :  { %2908 = vmatprep.subr.bf16.mxu1 %v5994_v22  ;;  %v396_v22 = vld [vmem:[#allocation6 + $0x370] sm:$0xff] }
 0x210   :  { %v5929_v33 = vcombine.low %v392_v21, %v396_v22 }
 0x211   :  { %2868 = vmatpush1.bf16.msra.mxu0 %v5865_v53  ;;  %v5930_v53 = vcombine.high %v392_v21, %v396_v22  ;;  %v321_v21 = vld [vmem:[#allocation6 + $0x118] sm:$0xff] }
 0x212   :  { %2909 = vmatpush1.bf16.msra.mxu1 %v5993_v27  ;;  %2869 = vmatprep.subr.bf16.mxu0 %v5874_v54  ;;  %v6058_v27 = vcombine.high %v520_v23, %v524_v24  ;;  %v400_v54 = vld [vmem:[#allocation6 + $0x390] sm:$0xff]  ;;  %v325_v22 = vld [vmem:[#allocation6 + $0x138] sm:$0xff]  ;;  %v5851_v24 = vcombine.low %v313_v10, %v317_v11 }
 0x213   :  { %2910 = vmatprep.subr.bf16.mxu1 %v6002_v29  ;;  %v404_v29 = vld [vmem:[#allocation6 + $0x3b0] sm:$0xff] }
 0x214   :  { %v5937_v41 = vcombine.low %v400_v54, %v404_v29 }
 0x215   :  { %2870 = vmatpush1.bf16.msra.mxu0 %v5873_v35  ;;  %v5938_v35 = vcombine.high %v400_v54, %v404_v29  ;;  %v333_v54 = vld [vmem:[#allocation6 + $0x178] sm:$0xff] }
 0x216   :  { %2911 = vmatpush1.bf16.msra.mxu1 %v6001_v36  ;;  %2871 = vmatprep.subr.bf16.mxu0 %v5882_v37  ;;  %v6066_v36 = vcombine.high %v528_v30, %v532_v31  ;;  %v408_v37 = vld [vmem:[#allocation6 + $0x3d0] sm:$0xff]  ;;  %v5859_v30 = vcombine.low %v321_v21, %v325_v22 }
 0x217   :  { %2912 = vmatprep.subr.bf16.mxu1 %v6010_v38  ;;  %v412_v38 = vld [vmem:[#allocation6 + $0x3f0] sm:$0xff] }
 0x218   :  { %v5945_v48 = vcombine.low %v408_v37, %v412_v38 }
 0x219   :  { %2872 = vmatpush1.bf16.msra.mxu0 %v5881_v42  ;;  %v5946_v42 = vcombine.high %v408_v37, %v412_v38  ;;  %v341_v37 = vld [vmem:[#allocation6 + $0x1b8] sm:$0xff] }
 0x21a   :  { %2913 = vmatpush1.bf16.msra.mxu1 %v6009_v43  ;;  %2873 = vmatprep.subr.bf16.mxu0 %v5890_v44  ;;  %v6074_v43 = vcombine.high %v536_v39, %v540_v40  ;;  %v544_v44 = vld [vmem:[#allocation6 + $0x810] sm:$0xff] }
 0x21b   :  { %2914 = vmatprep.subr.bf16.mxu1 %v6018_v45  ;;  %v548_v45 = vld [vmem:[#allocation6 + $0x830] sm:$0xff] }
 0x21c   :  { %v6081_v60 = vcombine.low %v544_v44, %v548_v45 }
 0x21d   :  { %2874 = vmatpush1.bf16.msra.mxu0 %v5889_v50  ;;  %v6082_v50 = vcombine.high %v544_v44, %v548_v45 }
 0x21e   :  { %2915 = vmatpush1.bf16.msra.mxu1 %v6017_v51  ;;  %2875 = vmatprep.subr.bf16.mxu0 %v5898_v52  ;;  %v5828_v51 = vcombine.high %v289_v46, %v293_v47  ;;  %v552_v52 = vld [vmem:[#allocation6 + $0x850] sm:$0xff]  ;;  %v345_v46 = vld [vmem:[#allocation6 + $0x1d8] sm:$0xff] }
 0x21f   :  { %2916 = vmatprep.subr.bf16.mxu1 %v6026_v55  ;;  %v556_v55 = vld [vmem:[#allocation6 + $0x870] sm:$0xff]  ;;  %v349_v47 = vld [vmem:[#allocation6 + $0x1f8] sm:$0xff] }
 0x220   :  { %v6089_v4 = vcombine.low %v552_v52, %v556_v55 }
 0x221   :  { %2876 = vmatpush1.bf16.msra.mxu0 %v5897_v62  ;;  %v6090_v62 = vcombine.high %v552_v52, %v556_v55 }
 0x222   :  { %2917 = vmatpush1.bf16.msra.mxu1 %v6025_v63  ;;  %2877 = vmatprep.subr.bf16.mxu0 %v5906_v0  ;;  %v5836_v63 = vcombine.high %v297_v56, %v301_v57  ;;  %v560_v0 = vld [vmem:[#allocation6 + $0x890] sm:$0xff] }
 0x223   :  { %2918 = vmatprep.subr.bf16.mxu1 %v6034_v1  ;;  %v564_v1 = vld [vmem:[#allocation6 + $0x8b0] sm:$0xff] }
 0x224   :  { %v6097_v12 = vcombine.low %v560_v0, %v564_v1 }
 0x225   :  { %2878 = vmatpush1.bf16.msra.mxu0 %v5905_v6  ;;  %v6098_v6 = vcombine.high %v560_v0, %v564_v1  ;;  %v353_v1 = vld [vmem:[#allocation6 + $0x218] sm:$0xff] }
 0x226   :  { %2919 = vmatpush1.bf16.msra.mxu1 %v6033_v7  ;;  %2879 = vmatprep.subr.bf16.mxu0 %v5914_v8  ;;  %v5844_v7 = vcombine.high %v305_v2, %v309_v3  ;;  %v568_v8 = vld [vmem:[#allocation6 + $0x8d0] sm:$0xff]  ;;  %v357_v2 = vld [vmem:[#allocation6 + $0x238] sm:$0xff] }
 0x227   :  { %2920 = vmatprep.subr.bf16.mxu1 %v6042_v9  ;;  %v572_v9 = vld [vmem:[#allocation6 + $0x8f0] sm:$0xff] }
 0x228   :  { %v6105_v23 = vcombine.low %v568_v8, %v572_v9 }
 0x229   :  { %2880 = vmatpush1.bf16.msra.mxu0 %v5913_v14  ;;  %v6106_v14 = vcombine.high %v568_v8, %v572_v9  ;;  %v620_v8 = vld [vmem:[#allocation6 + $0xa70] sm:$0xff]  ;;  %v361_v9 = vld [vmem:[#allocation6 + $0x258] sm:$0xff] }
 0x22a   :  { %2921 = vmatpush1.bf16.msra.mxu1 %v6041_v15  ;;  %2881 = vmatprep.subr.bf16.mxu0 %v5922_v17  ;;  %v5852_v15 = vcombine.high %v313_v10, %v317_v11  ;;  %v576_v17 = vld [vmem:[#allocation6 + $0x910] sm:$0xff]  ;;  %v365_v10 = vld [vmem:[#allocation6 + $0x278] sm:$0xff] }
 0x22b   :  { %2922 = vmatprep.subr.bf16.mxu1 %v6050_v18  ;;  %v580_v18 = vld [vmem:[#allocation6 + $0x930] sm:$0xff] }
 0x22c   :  { %v6113_v29 = vcombine.low %v576_v17, %v580_v18 }
 0x22d   :  { %2882 = vmatpush1.bf16.msra.mxu0 %v5921_v25  ;;  %v6114_v25 = vcombine.high %v576_v17, %v580_v18  ;;  %v628_v17 = vld [vmem:[#allocation6 + $0xab0] sm:$0xff]  ;;  %v369_v18 = vld [vmem:[#allocation6 + $0x298] sm:$0xff] }
 0x22e   :  { %2923 = vmatpush1.bf16.msra.mxu1 %v6049_v26  ;;  %2883 = vmatprep.subr.bf16.mxu0 %v5930_v53  ;;  %v584_v26 = vld [vmem:[#allocation6 + $0x950] sm:$0xff] }
 0x22f   :  { %2924 = vmatprep.subr.bf16.mxu1 %v6058_v27  ;;  %v588_v53 = vld [vmem:[#allocation6 + $0x970] sm:$0xff]  ;;  %v329_v27 = vld [vmem:[#allocation6 + $0x158] sm:$0xff] }
 0x230   :  { %v6122_v31 = vcombine.high %v584_v26, %v588_v53  ;;  %v6121_v38 = vcombine.low %v584_v26, %v588_v53  ;;  %v5867_v39 = vcombine.low %v329_v27, %v333_v54  ;;  %v636_v26 = vld [vmem:[#allocation6 + $0xaf0] sm:$0xff]  ;;  %v377_v53 = vld [vmem:[#allocation6 + $0x2d8] sm:$0xff] }
 0x231   :  { %2884 = vmatpush1.bf16.msra.mxu0 %v5929_v33  ;;  %v5868_v33 = vcombine.high %v329_v27, %v333_v54  ;;  %v381_v27 = vld [vmem:[#allocation6 + $0x2f8] sm:$0xff] }
 0x232   :  { %2925 = vmatpush1.bf16.msra.mxu1 %v6057_v34  ;;  %2885 = vmatprep.subr.bf16.mxu0 %v5938_v35  ;;  %v592_v34 = vld [vmem:[#allocation6 + $0x990] sm:$0xff] }
 0x233   :  { %2926 = vmatprep.subr.bf16.mxu1 %v6066_v36  ;;  %v596_v35 = vld [vmem:[#allocation6 + $0x9b0] sm:$0xff]  ;;  %v337_v36 = vld [vmem:[#allocation6 + $0x198] sm:$0xff] }
 0x234   :  { %v6130_v40 = vcombine.high %v592_v34, %v596_v35  ;;  %v5875_v56 = vcombine.low %v337_v36, %v341_v37 }
 0x235   :  { %2886 = vmatpush1.bf16.msra.mxu0 %v5937_v41 }
 0x236   :  { %2927 = vmatpush1.bf16.msra.mxu1 %v6065_v19  ;;  %2887 = vmatprep.subr.bf16.mxu0 %v5946_v42  ;;  %v5876_v19 = vcombine.high %v337_v36, %v341_v37  ;;  %v600_v42 = vld [vmem:[#allocation6 + $0x9d0] sm:$0xff]  ;;  %v389_v36 = vld [vmem:[#allocation6 + $0x338] sm:$0xff] }
 0x237   :  { %2928 = vmatprep.subr.bf16.mxu1 %v6074_v43  ;;  %v604_v43 = vld [vmem:[#allocation6 + $0x9f0] sm:$0xff] }
 0x238   :  { %v6138_v57 = vcombine.high %v600_v42, %v604_v43  ;;  %v6137_v3 = vcombine.low %v600_v42, %v604_v43  ;;  %v393_v42 = vld [vmem:[#allocation6 + $0x358] sm:$0xff] }
 0x239   :  { %2888 = vmatpush1.bf16.msra.mxu0 %v5945_v48  ;;  %v397_v43 = vld [vmem:[#allocation6 + $0x378] sm:$0xff] }
 0x23a   :  { %2929 = vmatpush1.bf16.msra.mxu1 %v6073_v49  ;;  %2939 = vmatprep.subr.bf16.mxu0 %v6082_v50 }
 0x23b   :  { %2980 = vmatprep.subr.bf16.mxu1 %v5828_v51  ;;  %v6129_v51 = vcombine.low %v592_v34, %v596_v35  ;;  %v644_v34 = vld [vmem:[#allocation6 + $0xb30] sm:$0xff]  ;;  %v385_v35 = vld [vmem:[#allocation6 + $0x318] sm:$0xff] }
 0x23c   :  { %2890 = vmatmul.mubr.bf16.vlgmr.msra.gmra.mrb[12].mxu0 %v7684_v16 }
 0x23d   :  { %2931 = vmatmul.mubr.bf16.vlgmr.msra.gmra.mrb[12].mxu1 %v7690_v20  ;;  %2940 = vmatpush1.bf16.msra.mxu0 %v6081_v60 }
 0x23e   :  { %2981 = vmatpush1.bf16.msra.mxu1 %v5827_v61  ;;  %2941 = vmatprep.subr.bf16.mxu0 %v6090_v62  ;;  %v5884_v61 = vcombine.high %v345_v46, %v349_v47  ;;  %v608_v62 = vld [vmem:[#allocation6 + $0xa10] sm:$0xff] }
 0x23f   :  { %2982 = vmatprep.subr.bf16.mxu1 %v5836_v63  ;;  %2971 = vmatprep.mubr.bf16.mxu0 %v7694_v28  ;;  %v612_v63 = vld [vmem:[#allocation6 + $0xa30] sm:$0xff] }
 0x240   :  { %3012 = vmatprep.mubr.bf16.mxu1 %v7674_v58  ;;  %v5860_v58 = vcombine.high %v321_v21, %v325_v22  ;;  %v6145_v11 = vcombine.low %v608_v62, %v612_v63  ;;  %v373_v21 = vld [vmem:[#allocation6 + $0x2b8] sm:$0xff] }
 0x241   :  { %2942 = vmatpush1.bf16.msra.mxu0 %v6089_v4  ;;  %v5883_v4 = vcombine.low %v345_v46, %v349_v47  ;;  %v5932_v47 = vcombine.high %v393_v42, %v397_v43 }
 0x242   :  { %2983 = vmatpush1.bf16.msra.mxu1 %v5835_v5  ;;  %2943 = vmatprep.subr.bf16.mxu0 %v6098_v6  ;;  %v6146_v5 = vcombine.high %v608_v62, %v612_v63  ;;  %v5892_v6 = vcombine.high %v353_v1, %v357_v2  ;;  %v664_v62 = vld [vmem:[#allocation6 + $0xbd0] sm:$0xff] }
 0x243   :  { %2984 = vmatprep.subr.bf16.mxu1 %v5844_v7  ;;  %v616_v7 = vld [vmem:[#allocation6 + $0xa50] sm:$0xff] }
 0x244   :  { %v6153_v22 = vcombine.low %v616_v7, %v620_v8  ;;  %v668_v63 = vld [vmem:[#allocation6 + $0xbf0] sm:$0xff] }
 0x245   :  { %2944 = vmatpush1.bf16.msra.mxu0 %v6097_v12  ;;  %v5891_v12 = vcombine.low %v353_v1, %v357_v2  ;;  %v413_v1 = vld [vmem:[#allocation6 + $0x3f8] sm:$0xff] }
 0x246   :  { %2985 = vmatpush1.bf16.msra.mxu1 %v5843_v13  ;;  %2945 = vmatprep.subr.bf16.mxu0 %v6106_v14  ;;  %v6154_v13 = vcombine.high %v616_v7, %v620_v8  ;;  %v5900_v14 = vcombine.high %v361_v9, %v365_v10  ;;  %v421_v7 = vld [vmem:[#allocation6 + $0x438] sm:$0xff] }
 0x247   :  { %2986 = vmatprep.subr.bf16.mxu1 %v5852_v15  ;;  %v624_v15 = vld [vmem:[#allocation6 + $0xa90] sm:$0xff]  ;;  %v545_v8 = vld [vmem:[#allocation6 + $0x818] sm:$0xff] }
 0x248   :  { %v6161_v54 = vcombine.low %v624_v15, %v628_v17 }
 0x249   :  { %2946 = vmatpush1.bf16.msra.mxu0 %v6105_v23  ;;  %v5899_v23 = vcombine.low %v361_v9, %v365_v10  ;;  %v549_v9 = vld [vmem:[#allocation6 + $0x838] sm:$0xff]  ;;  %v6201_v10 = vcombine.low %v664_v62, %v668_v63 }
 0x24a   :  { %2987 = vmatpush1.bf16.msra.mxu1 %v5851_v24  ;;  %2947 = vmatprep.subr.bf16.mxu0 %v6114_v25  ;;  %v6162_v24 = vcombine.high %v624_v15, %v628_v17  ;;  %v5908_v25 = vcombine.high %v369_v18, %v373_v21  ;;  %v429_v15 = vld [vmem:[#allocation6 + $0x478] sm:$0xff] }
 0x24b   :  { %2988 = vmatprep.subr.bf16.mxu1 %v5860_v58  ;;  %v632_v58 = vld [vmem:[#allocation6 + $0xad0] sm:$0xff]  ;;  %v553_v17 = vld [vmem:[#allocation6 + $0x858] sm:$0xff] }
 0x24c   :  { %v6169_v37 = vcombine.low %v632_v58, %v636_v26 }
 0x24d   :  { %2948 = vmatpush1.bf16.msra.mxu0 %v6113_v29  ;;  %v5907_v29 = vcombine.low %v369_v18, %v373_v21  ;;  %v557_v18 = vld [vmem:[#allocation6 + $0x878] sm:$0xff] }
 0x24e   :  { %2989 = vmatpush1.bf16.msra.mxu1 %v5859_v30  ;;  %2949 = vmatprep.subr.bf16.mxu0 %v6122_v31  ;;  %v6170_v30 = vcombine.high %v632_v58, %v636_v26  ;;  %v5916_v31 = vcombine.high %v377_v53, %v381_v27  ;;  %v437_v58 = vld [vmem:[#allocation6 + $0x4b8] sm:$0xff] }
 0x24f   :  { %v2645_v41 = vpop.f32.mrb[0].mxu0  ;;  %2990 = vmatprep.subr.bf16.mxu1 %v5868_v33  ;;  %v640_v33 = vld [vmem:[#allocation6 + $0xb10] sm:$0xff]  ;;  %v561_v26 = vld [vmem:[#allocation6 + $0x898] sm:$0xff] }
 0x250   :  { %v2686_v44 = vpop.f32.mrb[0].mxu1  ;;  %v2647_v45 = vpop.f32.mrb[1].mxu0 }
 0x251   :  { %v7716_v48 = vadd.f32 %v2686_v44, %v2645_v41  ;;  %v2688_v49 = vpop.f32.mrb[1].mxu1  ;;  %v2649_v50 = vpop.f32.mrb[2].mxu0  ;;  %2950 = vmatpush1.bf16.msra.mxu0 %v6121_v38  ;;  %v5915_v38 = vcombine.low %v377_v53, %v381_v27  ;;  %v648_v41 = vld [vmem:[#allocation6 + $0xb50] sm:$0xff]  ;;  %v6177_v44 = vcombine.low %v640_v33, %v644_v34  ;;  %v565_v53 = vld [vmem:[#allocation6 + $0x8b8] sm:$0xff] }
 0x252   :  { %v7718_v52 = vadd.f32 %v2688_v49, %v2647_v45  ;;  %v2650_v55 = vpop.f32.mrb[3].mxu0  ;;  %2991 = vmatpush1.bf16.msra.mxu1 %v5867_v39  ;;  %2951 = vmatprep.subr.bf16.mxu0 %v6130_v40  ;;  %v2690_v60 = vpop.f32.mrb[2].mxu1  ;;  %v6178_v39 = vcombine.high %v640_v33, %v644_v34  ;;  %v5924_v40 = vcombine.high %v385_v35, %v389_v36  ;;  %v656_v49 = vld [vmem:[#allocation6 + $0xb90] sm:$0xff]  ;;  %v445_v33 = vld [vmem:[#allocation6 + $0x4f8] sm:$0xff] }
 0x253   :  { %2992 = vmatprep.subr.bf16.mxu1 %v5876_v19  ;;  %v2691_v0 = vpop.f32.mrb[3].mxu1  ;;  %v652_v19 = vld [vmem:[#allocation6 + $0xb70] sm:$0xff]  ;;  %v5923_v45 = vcombine.low %v385_v35, %v389_v36  ;;  %v405_v55 = vld [vmem:[#allocation6 + $0x3b8] sm:$0xff] }
 0x254   :  { %v6186_v46 = vcombine.high %v648_v41, %v652_v19  ;;  %v660_v50 = vld [vmem:[#allocation6 + $0xbb0] sm:$0xff]  ;;  %v409_v0 = vld [vmem:[#allocation6 + $0x3d8] sm:$0xff] }
 0x255   :  { %2952 = vmatpush1.bf16.msra.mxu0 %v6129_v51  ;;  %v401_v51 = vld [vmem:[#allocation6 + $0x398] sm:$0xff]  ;;  %v6194_v60 = vcombine.high %v656_v49, %v660_v50  ;;  %v6193_v2 = vcombine.low %v656_v49, %v660_v50 }
 0x256   :  { %2993 = vmatpush1.bf16.msra.mxu1 %v5875_v56  ;;  %2953 = vmatprep.subr.bf16.mxu0 %v6138_v57  ;;  %v6185_v56 = vcombine.low %v648_v41, %v652_v19  ;;  %v5931_v57 = vcombine.low %v393_v42, %v397_v43  ;;  %v569_v34 = vld [vmem:[#allocation6 + $0x8d8] sm:$0xff] }
 0x257   :  { %2994 = vmatprep.subr.bf16.mxu1 %v5884_v61  ;;  %v5940_v61 = vcombine.high %v401_v51, %v405_v55  ;;  %v573_v35 = vld [vmem:[#allocation6 + $0x8f8] sm:$0xff] }
 0x258   :  { %v577_v41 = vld [vmem:[#allocation6 + $0x918] sm:$0xff] }
 0x259   :  { %2954 = vmatpush1.bf16.msra.mxu0 %v6137_v3  ;;  %v5939_v3 = vcombine.low %v401_v51, %v405_v55  ;;  %v581_v19 = vld [vmem:[#allocation6 + $0x938] sm:$0xff] }
 0x25a   :  { %2995 = vmatpush1.bf16.msra.mxu1 %v5883_v4  ;;  %2955 = vmatprep.subr.bf16.mxu0 %v6146_v5  ;;  %v6202_v4 = vcombine.high %v664_v62, %v668_v63  ;;  %v5948_v5 = vcombine.high %v409_v0, %v413_v1  ;;  %v6115_v50 = vcombine.low %v577_v41, %v581_v19 }
 0x25b   :  { %2996 = vmatprep.subr.bf16.mxu1 %v5892_v6  ;;  %v417_v6 = vld [vmem:[#allocation6 + $0x418] sm:$0xff] }
 0x25c   :  { %v5955_v21 = vcombine.low %v417_v6, %v421_v7 }
 0x25d   :  { %2956 = vmatpush1.bf16.msra.mxu0 %v6145_v11  ;;  %v5947_v11 = vcombine.low %v409_v0, %v413_v1 }
 0x25e   :  { %2997 = vmatpush1.bf16.msra.mxu1 %v5891_v12  ;;  %2957 = vmatprep.subr.bf16.mxu0 %v6154_v13  ;;  %v5956_v12 = vcombine.high %v417_v6, %v421_v7  ;;  %v6084_v13 = vcombine.high %v545_v8, %v549_v9  ;;  %v601_v7 = vld [vmem:[#allocation6 + $0x9d8] sm:$0xff] }
 0x25f   :  { %2998 = vmatprep.subr.bf16.mxu1 %v5900_v14  ;;  %v425_v14 = vld [vmem:[#allocation6 + $0x458] sm:$0xff] }
 0x260   :  { %v5963_v27 = vcombine.low %v425_v14, %v429_v15 }
 0x261   :  { %2958 = vmatpush1.bf16.msra.mxu0 %v6153_v22  ;;  %v6083_v22 = vcombine.low %v545_v8, %v549_v9  ;;  %v605_v8 = vld [vmem:[#allocation6 + $0x9f8] sm:$0xff] }
 0x262   :  { %2999 = vmatpush1.bf16.msra.mxu1 %v5899_v23  ;;  %2959 = vmatprep.subr.bf16.mxu0 %v6162_v24  ;;  %v5964_v23 = vcombine.high %v425_v14, %v429_v15  ;;  %v6092_v24 = vcombine.high %v553_v17, %v557_v18 }
 0x263   :  { %3000 = vmatprep.subr.bf16.mxu1 %v5908_v25  ;;  %v433_v25 = vld [vmem:[#allocation6 + $0x498] sm:$0xff] }
 0x264   :  { %v5971_v36 = vcombine.low %v433_v25, %v437_v58 }
 0x265   :  { %2960 = vmatpush1.bf16.msra.mxu0 %v6161_v54  ;;  %v6091_v54 = vcombine.low %v553_v17, %v557_v18  ;;  %v6140_v18 = vcombine.high %v601_v7, %v605_v8 }
 0x266   :  { %3001 = vmatpush1.bf16.msra.mxu1 %v5907_v29  ;;  %2961 = vmatprep.subr.bf16.mxu0 %v6170_v30  ;;  %v5972_v29 = vcombine.high %v433_v25, %v437_v58  ;;  %v6100_v30 = vcombine.high %v561_v26, %v565_v53  ;;  %v613_v25 = vld [vmem:[#allocation6 + $0xa38] sm:$0xff]  ;;  %v6139_v58 = vcombine.low %v601_v7, %v605_v8 }
 0x267   :  { %3002 = vmatprep.subr.bf16.mxu1 %v5916_v31  ;;  %v441_v31 = vld [vmem:[#allocation6 + $0x4d8] sm:$0xff] }
 0x268   :  { %v5979_v42 = vcombine.low %v441_v31, %v445_v33 }
 0x269   :  { %2962 = vmatpush1.bf16.msra.mxu0 %v6169_v37  ;;  %v5980_v37 = vcombine.high %v441_v31, %v445_v33 }
 0x26a   :  { %3003 = vmatpush1.bf16.msra.mxu1 %v5915_v38  ;;  %2963 = vmatprep.subr.bf16.mxu0 %v6178_v39  ;;  %v6108_v38 = vcombine.high %v569_v34, %v573_v35  ;;  %v449_v39 = vld [vmem:[#allocation6 + $0x518] sm:$0xff] }
 0x26b   :  { %3004 = vmatprep.subr.bf16.mxu1 %v5924_v40  ;;  %v453_v40 = vld [vmem:[#allocation6 + $0x538] sm:$0xff] }
 0x26c   :  { %v5988_v43 = vcombine.high %v449_v39, %v453_v40  ;;  %v5987_v49 = vcombine.low %v449_v39, %v453_v40 }
 0x26d   :  { %2964 = vmatpush1.bf16.msra.mxu0 %v6177_v44  ;;  %v457_v44 = vld [vmem:[#allocation6 + $0x558] sm:$0xff] }
 0x26e   :  { %3005 = vmatpush1.bf16.msra.mxu1 %v5923_v45  ;;  %2965 = vmatprep.subr.bf16.mxu0 %v6186_v46  ;;  %v461_v45 = vld [vmem:[#allocation6 + $0x578] sm:$0xff] }
 0x26f   :  { %3006 = vmatprep.subr.bf16.mxu1 %v5932_v47  ;;  %v585_v46 = vld [vmem:[#allocation6 + $0x958] sm:$0xff]  ;;  %v5996_v51 = vcombine.high %v457_v44, %v461_v45  ;;  %v5995_v62 = vcombine.low %v457_v44, %v461_v45 }
 0x270   :  { %v589_v47 = vld [vmem:[#allocation6 + $0x978] sm:$0xff] }
 0x271   :  { %2966 = vmatpush1.bf16.msra.mxu0 %v6185_v56  ;;  %v6124_v55 = vcombine.high %v585_v46, %v589_v47  ;;  %v465_v56 = vld [vmem:[#allocation6 + $0x598] sm:$0xff]  ;;  %v6123_v63 = vcombine.low %v585_v46, %v589_v47  ;;  %v3132_v47 = vlaneseq }
 0x272   :  { %3007 = vmatpush1.bf16.msra.mxu1 %v5931_v57  ;;  %2967 = vmatprep.subr.bf16.mxu0 %v6194_v60  ;;  %v469_v57 = vld [vmem:[#allocation6 + $0x5b8] sm:$0xff] }
 0x273   :  { %3008 = vmatprep.subr.bf16.mxu1 %v5940_v61  ;;  %v593_v60 = vld [vmem:[#allocation6 + $0x998] sm:$0xff]  ;;  %v6004_v0 = vcombine.high %v465_v56, %v469_v57 }
 0x274   :  { %v597_v61 = vld [vmem:[#allocation6 + $0x9b8] sm:$0xff] }
 0x275   :  { %2968 = vmatpush1.bf16.msra.mxu0 %v6193_v2  ;;  %v6132_v2 = vcombine.high %v593_v60, %v597_v61  ;;  %v6131_v15 = vcombine.low %v593_v60, %v597_v61 }
 0x276   :  { %3009 = vmatpush1.bf16.msra.mxu1 %v5939_v3  ;;  %2969 = vmatprep.subr.bf16.mxu0 %v6202_v4  ;;  %v473_v3 = vld [vmem:[#allocation6 + $0x5d8] sm:$0xff] }
 0x277   :  { %3010 = vmatprep.subr.bf16.mxu1 %v5948_v5  ;;  %v477_v4 = vld [vmem:[#allocation6 + $0x5f8] sm:$0xff] }
 0x278   :  { %v6012_v17 = vcombine.high %v473_v3, %v477_v4 }
 0x279   :  { %2970 = vmatpush1.bf16.msra.mxu0 %v6201_v10 }
 0x27a   :  { %3011 = vmatpush1.bf16.msra.mxu1 %v5947_v11  ;;  %3021 = vmatprep.subr.bf16.mxu0 %v5956_v12  ;;  %v6003_v12 = vcombine.low %v465_v56, %v469_v57  ;;  %v645_v56 = vld [vmem:[#allocation6 + $0xb38] sm:$0xff] }
 0x27b   :  { %3062 = vmatprep.subr.bf16.mxu1 %v6084_v13 }
 0x27c   :  { %2972 = vmatmul.mubr.bf16.vlgmr.msra.gmra.mrb[16].mxu0 %v7702_v32 }
 0x27d   :  { %3022 = vmatpush1.bf16.msra.mxu0 %v5955_v21  ;;  %3013 = vmatmul.mubr.bf16.vlgmr.msra.gmra.mrb[16].mxu1 %v7684_v16  ;;  %v6099_v16 = vcombine.low %v561_v26, %v565_v53  ;;  %v481_v21 = vld [vmem:[#allocation6 + $0x618] sm:$0xff] }
 0x27e   :  { %3063 = vmatpush1.bf16.msra.mxu1 %v6083_v22  ;;  %3023 = vmatprep.subr.bf16.mxu0 %v5964_v23  ;;  %v485_v22 = vld [vmem:[#allocation6 + $0x638] sm:$0xff] }
 0x27f   :  { %3064 = vmatprep.subr.bf16.mxu1 %v6092_v24  ;;  %3053 = vmatprep.mubr.bf16.mxu0 %v7678_v59  ;;  %v6107_v59 = vcombine.low %v569_v34, %v573_v35  ;;  %v609_v24 = vld [vmem:[#allocation6 + $0xa18] sm:$0xff]  ;;  %v6020_v26 = vcombine.high %v481_v21, %v485_v22  ;;  %v6019_v31 = vcombine.low %v481_v21, %v485_v22 }
 0x280   :  { %3094 = vmatprep.mubr.bf16.mxu1 %v7694_v28  ;;  %v6116_v28 = vcombine.high %v577_v41, %v581_v19  ;;  %v6148_v53 = vcombine.high %v609_v24, %v613_v25  ;;  %v6147_v33 = vcombine.low %v609_v24, %v613_v25  ;;  %v537_v25 = vld [vmem:[#allocation6 + $0x7d8] sm:$0xff] }
 0x281   :  { %3024 = vmatpush1.bf16.msra.mxu0 %v5963_v27  ;;  %v489_v27 = vld [vmem:[#allocation6 + $0x658] sm:$0xff] }
 0x282   :  { %3065 = vmatpush1.bf16.msra.mxu1 %v6091_v54  ;;  %3025 = vmatprep.subr.bf16.mxu0 %v5972_v29  ;;  %v493_v54 = vld [vmem:[#allocation6 + $0x678] sm:$0xff] }
 0x283   :  { %3066 = vmatprep.subr.bf16.mxu1 %v6100_v30  ;;  %v617_v29 = vld [vmem:[#allocation6 + $0xa58] sm:$0xff]  ;;  %v6028_v34 = vcombine.high %v489_v27, %v493_v54  ;;  %v6027_v39 = vcombine.low %v489_v27, %v493_v54 }
 0x284   :  { %v621_v30 = vld [vmem:[#allocation6 + $0xa78] sm:$0xff] }
 0x285   :  { %3026 = vmatpush1.bf16.msra.mxu0 %v5971_v36  ;;  %v6156_v35 = vcombine.high %v617_v29, %v621_v30  ;;  %v497_v36 = vld [vmem:[#allocation6 + $0x698] sm:$0xff]  ;;  %v6155_v40 = vcombine.low %v617_v29, %v621_v30 }
 0x286   :  { %3067 = vmatpush1.bf16.msra.mxu1 %v6099_v16  ;;  %3027 = vmatprep.subr.bf16.mxu0 %v5980_v37  ;;  %v501_v16 = vld [vmem:[#allocation6 + $0x6b8] sm:$0xff] }
 0x287   :  { %3068 = vmatprep.subr.bf16.mxu1 %v6108_v38  ;;  %v625_v37 = vld [vmem:[#allocation6 + $0xa98] sm:$0xff]  ;;  %v6036_v41 = vcombine.high %v497_v36, %v501_v16  ;;  %v6035_v44 = vcombine.low %v497_v36, %v501_v16  ;;  %v6631_v16 = vld [vmem:[#allocation11 + $0x14] ss:$8 sps:$4 sm:$0xff]  }
 0x288   :  { %v629_v38 = vld [vmem:[#allocation6 + $0xab8] sm:$0xff] }
 0x289   :  { %3028 = vmatpush1.bf16.msra.mxu0 %v5979_v42  ;;  %v6164_v19 = vcombine.high %v625_v37, %v629_v38  ;;  %v505_v42 = vld [vmem:[#allocation6 + $0x6d8] sm:$0xff]  ;;  %v6163_v45 = vcombine.low %v625_v37, %v629_v38 }
 0x28a   :  { %3069 = vmatpush1.bf16.msra.mxu1 %v6107_v59  ;;  %3029 = vmatprep.subr.bf16.mxu0 %v5988_v43  ;;  %v509_v59 = vld [vmem:[#allocation6 + $0x6f8] sm:$0xff] }
 0x28b   :  { %3070 = vmatprep.subr.bf16.mxu1 %v6116_v28  ;;  %v633_v43 = vld [vmem:[#allocation6 + $0xad8] sm:$0xff]  ;;  %v6044_v46 = vcombine.high %v505_v42, %v509_v59  ;;  %v6043_v57 = vcombine.low %v505_v42, %v509_v59  ;;  %v6643_v59 = vld [vmem:[#allocation11 + $0x54] ss:$8 sps:$4 sm:$0xff]  }
 0x28c   :  { %v637_v28 = vld [vmem:[#allocation6 + $0xaf8] sm:$0xff] }
 0x28d   :  { %3030 = vmatpush1.bf16.msra.mxu0 %v5987_v49  ;;  %v6172_v49 = vcombine.high %v633_v43, %v637_v28  ;;  %v6171_v60 = vcombine.low %v633_v43, %v637_v28  ;;  %v6626_v36 = vld [vmem:[#allocation11] ss:$8 sps:$4 sm:$0xff]   ;;  %v6634_v38 = vld [vmem:[#allocation11 + $0x24] ss:$8 sps:$4 sm:$0xff]  }
 0x28e   :  { %3071 = vmatpush1.bf16.msra.mxu1 %v6115_v50  ;;  %3031 = vmatprep.subr.bf16.mxu0 %v5996_v51  ;;  %v513_v50 = vld [vmem:[#allocation6 + $0x718] sm:$0xff] }
 0x28f   :  { %v2727_v1 = vpop.f32.mrb[4].mxu0  ;;  %3072 = vmatprep.subr.bf16.mxu1 %v6124_v55  ;;  %v517_v51 = vld [vmem:[#allocation6 + $0x738] sm:$0xff] }
 0x290   :  { %v7725_v5 = vadd.f32 %v2727_v1, %v7716_v48  ;;  %v2729_v6 = vpop.f32.mrb[5].mxu0  ;;  %v7727_v9 = vpop.f32.mrb[4].mxu1  ;;  %v641_v55 = vld [vmem:[#allocation6 + $0xb18] sm:$0xff]  ;;  %v6052_v61 = vcombine.high %v513_v50, %v517_v51 }
 0x291   :  { %v7730_v10 = vadd.f32 %v2729_v6, %v7718_v52  ;;  %v2731_v11 = vpop.f32.mrb[6].mxu0  ;;  %3032 = vmatpush1.bf16.msra.mxu0 %v5995_v62  ;;  %v7732_v13 = vpop.f32.mrb[5].mxu1  ;;  %v6011_v52 = vcombine.low %v473_v3, %v477_v4  ;;  %v7734_v62 = vshrl.u32 %v3132_v47, 7  ;;  %v525_v1 = vld [vmem:[#allocation6 + $0x778] sm:$0xff]  ;;  %v6051_v4 = vcombine.low %v513_v50, %v517_v51 }
 0x292   :  { %v2732_v14 = vpop.f32.mrb[7].mxu0  ;;  %3073 = vmatpush1.bf16.msra.mxu1 %v6123_v63  ;;  %3033 = vmatprep.subr.bf16.mxu0 %v6004_v0  ;;  %v2772_v48 = vpop.f32.mrb[6].mxu1  ;;  %v6180_v63 = vcombine.high %v641_v55, %v645_v56  ;;  %v521_v0 = vld [vmem:[#allocation6 + $0x758] sm:$0xff]  ;;  %v6179_v6 = vcombine.low %v641_v55, %v645_v56  ;;  %v6649_v56 = vld [vmem:[#allocation11 + $0x74] ss:$8 sps:$4 sm:$0xff]  }
 0x293   :  { %3074 = vmatprep.subr.bf16.mxu1 %v6132_v2  ;;  %v2773_v23 = vpop.f32.mrb[7].mxu1  ;;  %v649_v2 = vld [vmem:[#allocation6 + $0xb58] sm:$0xff]  ;;  %v6060_v7 = vcombine.high %v521_v0, %v525_v1  ;;  %v7737_v8 = vsub.s32 1, %v7734_v62 }
 0x294   :  { %v653_v3 = vld [vmem:[#allocation6 + $0xb78] sm:$0xff] }
 0x295   :  { %3034 = vmatpush1.bf16.msra.mxu0 %v6003_v12  ;;  %v6188_v11 = vcombine.high %v649_v2, %v653_v3  ;;  %v529_v12 = vld [vmem:[#allocation6 + $0x798] sm:$0xff]  ;;  %v6187_v21 = vcombine.low %v649_v2, %v653_v3 }
 0x296   :  { %3075 = vmatpush1.bf16.msra.mxu1 %v6131_v15  ;;  %3035 = vmatprep.subr.bf16.mxu0 %v6012_v17  ;;  %v533_v14 = vld [vmem:[#allocation6 + $0x7b8] sm:$0xff]  ;;  %v7739_v15 = vld [vmem:[#allocation8] sm:$0xff] }
 0x297   :  { %3076 = vmatprep.subr.bf16.mxu1 %v6140_v18  ;;  %v657_v17 = vld [vmem:[#allocation6 + $0xb98] sm:$0xff]  ;;  %v6059_v18 = vcombine.low %v521_v0, %v525_v1  ;;  %v6068_v22 = vcombine.high %v529_v12, %v533_v14  ;;  %v3139_v23 = vrot.slane %v7739_v15, %v7737_v8  ;;  %v6653_v1 = vld [vmem:[#allocation11 + $0x90] ss:$8 sps:$4 sm:$0xff]  }
 0x298   :  { %v661_v48 = vld [vmem:[#allocation6 + $0xbb8] sm:$0xff] }
 0x299   :  { %3036 = vmatpush1.bf16.msra.mxu0 %v6011_v52  ;;  %v6196_v24 = vcombine.high %v657_v17, %v661_v48  ;;  %v541_v52 = vld [vmem:[#allocation6 + $0x7f8] sm:$0xff]  ;;  %v6195_v27 = vcombine.low %v657_v17, %v661_v48  ;;  %v3173_v29 = vadd.f32 %v3139_v23, %v7730_v10  ;;  %v6629_v10 = vld [vmem:[#allocation11 + $0x10] ss:$8 sps:$4 sm:$0xff]   ;;  %v3146_v17 = vsub.s32 3, %v7734_v62 }
 0x29a   :  { %3077 = vmatpush1.bf16.msra.mxu1 %v6139_v58  ;;  %3037 = vmatprep.subr.bf16.mxu0 %v6020_v26  ;;  %v665_v58 = vld [vmem:[#allocation6 + $0xbd8] sm:$0xff]  ;;  %v6076_v54 = vcombine.high %v537_v25, %v541_v52  ;;  %v6665_v48 = vld [vmem:[#allocation11 + $0xd0] ss:$8 sps:$4 sm:$0xff]  }
 0x29b   :  { %3078 = vmatprep.subr.bf16.mxu1 %v6148_v53  ;;  %v669_v26 = vld [vmem:[#allocation6 + $0xbf8] sm:$0xff]  ;;  %v6067_v53 = vcombine.low %v529_v12, %v533_v14  ;;  %v7751_v12 = vsub.s32 0, %v7734_v62  ;;  %v6667_v14 = vld [vmem:[#allocation11 + $0xd4] ss:$8 sps:$4 sm:$0xff]  }
 0x29c   :  { %v6204_v30 = vcombine.high %v665_v58, %v669_v26  ;;  %v6638_v42 = vld [vmem:[#allocation11 + $0x40] ss:$8 sps:$4 sm:$0xff]   ;;  %v6646_v43 = vld [vmem:[#allocation11 + $0x64] ss:$8 sps:$4 sm:$0xff]  }
 0x29d   :  { %3038 = vmatpush1.bf16.msra.mxu0 %v6019_v31  ;;  %v6075_v31 = vcombine.low %v537_v25, %v541_v52  ;;  %v6644_v50 = vld [vmem:[#allocation11 + $0x60] ss:$8 sps:$4 sm:$0xff]   ;;  %v6658_v2 = vld [vmem:[#allocation11 + $0xa4] ss:$8 sps:$4 sm:$0xff]   ;;  %v6673_v25 = vld [vmem:[#allocation11 + $0xf4] ss:$8 sps:$4 sm:$0xff]  }
 0x29e   :  { %3079 = vmatpush1.bf16.msra.mxu1 %v6147_v33  ;;  %3039 = vmatprep.subr.bf16.mxu0 %v6028_v34  ;;  %v6203_v33 = vcombine.low %v665_v58, %v669_v26  ;;  %v6628_v34 = vld [vmem:[#allocation11 + $0x4] ss:$8 sps:$4 sm:$0xff]   ;;  %v6650_v0 = vld [vmem:[#allocation11 + $0x80] ss:$8 sps:$4 sm:$0xff]   ;;  %v6671_v58 = vld [vmem:[#allocation11 + $0xf0] ss:$8 sps:$4 sm:$0xff]  }
 0x29f   :  { %3080 = vmatprep.subr.bf16.mxu1 %v6156_v35  ;;  %v3181_v35 = vmax.f32 %v3173_v29, 0.0  ;;  %v6656_v3 = vld [vmem:[#allocation11 + $0xa0] ss:$8 sps:$4 sm:$0xff]  }
 0x2a0   :  { %v6668_v23 = vld [vmem:[#allocation11 + $0xe0] ss:$8 sps:$4 sm:$0xff]  }
 0x2a1   :  { %3040 = vmatpush1.bf16.msra.mxu0 %v6027_v39  ;;  %v3189_v37 = vpack.c.bf16 %v3181_v35, %v3181_v35  ;;  %v6632_v39 = vld [vmem:[#allocation11 + $0x20] ss:$8 sps:$4 sm:$0xff]   ;;  %v6685_v35 = vld [vmem:[#allocation11 + $0x134] ss:$8 sps:$4 sm:$0xff]  }
 0x2a2   :  { %3081 = vmatpush1.bf16.msra.mxu1 %v6155_v40  ;;  %3041 = vmatprep.subr.bf16.mxu0 %v6036_v41  ;;  %v6637_v40 = vld [vmem:[#allocation11 + $0x34] ss:$8 sps:$4 sm:$0xff]   ;;  %v6635_v41 = vld [vmem:[#allocation11 + $0x30] ss:$8 sps:$4 sm:$0xff]  }
 0x2a3   :  { %3082 = vmatprep.subr.bf16.mxu1 %v6164_v19  ;;  %v6640_v19 = vld [vmem:[#allocation11 + $0x44] ss:$8 sps:$4 sm:$0xff]  }
 0x2a5   :  { %3042 = vmatpush1.bf16.msra.mxu0 %v6035_v44 }
 0x2a6   :  { %3083 = vmatpush1.bf16.msra.mxu1 %v6163_v45  ;;  %3043 = vmatprep.subr.bf16.mxu0 %v6044_v46 }
 0x2a7   :  { %3084 = vmatprep.subr.bf16.mxu1 %v6172_v49 }
 0x2a9   :  { %3044 = vmatpush1.bf16.msra.mxu0 %v6043_v57 }
 0x2aa   :  { %3085 = vmatpush1.bf16.msra.mxu1 %v6171_v60  ;;  %3045 = vmatprep.subr.bf16.mxu0 %v6052_v61 }
 0x2ab   :  { %3086 = vmatprep.subr.bf16.mxu1 %v6180_v63  ;;  %v6647_v63 = vld [vmem:[#allocation11 + $0x70] ss:$8 sps:$4 sm:$0xff]  }
 0x2ad   :  { %3046 = vmatpush1.bf16.msra.mxu0 %v6051_v4  ;;  %v6661_v4 = vld [vmem:[#allocation11 + $0xb4] ss:$8 sps:$4 sm:$0xff]  }
 0x2ae   :  { %3087 = vmatpush1.bf16.msra.mxu1 %v6179_v6  ;;  %3047 = vmatprep.subr.bf16.mxu0 %v6060_v7  ;;  %v6659_v6 = vld [vmem:[#allocation11 + $0xb0] ss:$8 sps:$4 sm:$0xff]   ;;  %v6664_v7 = vld [vmem:[#allocation11 + $0xc4] ss:$8 sps:$4 sm:$0xff]  }
 0x2af   :  { %3088 = vmatprep.subr.bf16.mxu1 %v6188_v11  ;;  %v6662_v11 = vld [vmem:[#allocation11 + $0xc0] ss:$8 sps:$4 sm:$0xff]  }
 0x2b1   :  { %3048 = vmatpush1.bf16.msra.mxu0 %v6059_v18  ;;  %v3135_v18 = vrot.slane %v7739_v15, %v7751_v12 }
 0x2b2   :  { %3089 = vmatpush1.bf16.msra.mxu1 %v6187_v21  ;;  %3049 = vmatprep.subr.bf16.mxu0 %v6068_v22  ;;  %v6670_v21 = vld [vmem:[#allocation11 + $0xe4] ss:$8 sps:$4 sm:$0xff]   ;;  %v3147_v22 = vrot.slane %v7739_v15, %v3146_v17 }
 0x2b3   :  { %3090 = vmatprep.subr.bf16.mxu1 %v6196_v24  ;;  %v3172_v24 = vadd.f32 %v3135_v18, %v7725_v5  ;;  %v6682_v5 = vld [vmem:[#allocation11 + $0x124] ss:$8 sps:$4 sm:$0xff]  }
 0x2b4   :  { %v6724_v18 = vld [vmem:[#allocation11 + $0x204] ss:$8 sps:$4 sm:$0xff]  }
 0x2b5   :  { %3050 = vmatpush1.bf16.msra.mxu0 %v6067_v53  ;;  %v3180_v26 = vmax.f32 %v3172_v24, 0.0  ;;  %v6676_v53 = vld [vmem:[#allocation11 + $0x104] ss:$8 sps:$4 sm:$0xff]  }
 0x2b6   :  { %3091 = vmatpush1.bf16.msra.mxu1 %v6195_v27  ;;  %3051 = vmatprep.subr.bf16.mxu0 %v6076_v54  ;;  %v6674_v54 = vld [vmem:[#allocation11 + $0x100] ss:$8 sps:$4 sm:$0xff]  }
 0x2b7   :  { %3092 = vmatprep.subr.bf16.mxu1 %v6204_v30  ;;  %v3188_v29 = vpack.c.bf16 %v3180_v26, %v3180_v26  ;;  %v6679_v30 = vld [vmem:[#allocation11 + $0x114] ss:$8 sps:$4 sm:$0xff]   ;;  %v6818_v24 = vld [vmem:[#allocation14 + $0x40] sm:$0xff]   ;;  %v6821_v26 = vld [vmem:[#allocation14 + $0x8] sm:$0xff]  }
 0x2b9   :  { %3052 = vmatpush1.bf16.msra.mxu0 %v6075_v31 }
 0x2ba   :  { %3093 = vmatpush1.bf16.msra.mxu1 %v6203_v33  ;;  %3976 = vmatprep.subr.bf16.mxu0 %v6628_v34  ;;  %v6677_v33 = vld [vmem:[#allocation11 + $0x110] ss:$8 sps:$4 sm:$0xff]   ;;  %v6680_v34 = vld [vmem:[#allocation11 + $0x120] ss:$8 sps:$4 sm:$0xff]  }
 0x2bb   :  { %6527 = vmatprep.subr.bf16.mxu1 %v6818_v24  ;;  %v6767_v24 = vld [vmem:[#allocation11 + $0x2f0] ss:$8 sps:$4 sm:$0xff]  }
 0x2bc   :  { %3054 = vmatmul.mubr.bf16.vlgmr.msra.gmra.mrb[20].mxu0 %v7690_v20  ;;  %v6641_v20 = vld [vmem:[#allocation11 + $0x50] ss:$8 sps:$4 sm:$0xff]  }
 0x2bd   :  { %3977 = vmatpush1.bf16.msra.mxu0 %v6626_v36  ;;  %4008 = vmatprep.mubr.bf16.mxu0 %v3189_v37  ;;  %v6683_v36 = vld [vmem:[#allocation11 + $0x130] ss:$8 sps:$4 sm:$0xff]   ;;  %v6686_v37 = vld [vmem:[#allocation11 + $0x140] ss:$8 sps:$4 sm:$0xff]  }
 0x2be   :  { %3095 = vmatmul.mubr.bf16.vlgmr.msra.gmra.mrb[20].mxu1 %v7702_v32  ;;  %3978 = vmatprep.subr.bf16.mxu0 %v6631_v16  ;;  %v6688_v16 = vld [vmem:[#allocation11 + $0x144] ss:$8 sps:$4 sm:$0xff]  }
 0x2c1   :  { %3979 = vmatpush1.bf16.msra.mxu0 %v6629_v10  ;;  %v6691_v10 = vld [vmem:[#allocation11 + $0x154] ss:$8 sps:$4 sm:$0xff]  }
 0x2c2   :  { %3980 = vmatprep.subr.bf16.mxu0 %v6634_v38  ;;  %v6689_v38 = vld [vmem:[#allocation11 + $0x150] ss:$8 sps:$4 sm:$0xff]  }
 0x2c5   :  { %3981 = vmatpush1.bf16.msra.mxu0 %v6632_v39  ;;  %v6694_v39 = vld [vmem:[#allocation11 + $0x164] ss:$8 sps:$4 sm:$0xff]  }
 0x2c6   :  { %3982 = vmatprep.subr.bf16.mxu0 %v6637_v40 }
 0x2c9   :  { %3983 = vmatpush1.bf16.msra.mxu0 %v6635_v41 }
 0x2ca   :  { %3984 = vmatprep.subr.bf16.mxu0 %v6640_v19 }
 0x2cd   :  { %3985 = vmatpush1.bf16.msra.mxu0 %v6638_v42 }
 0x2ce   :  { %3986 = vmatprep.subr.bf16.mxu0 %v6643_v59 }
 0x2cf   :  { %v2809_v28 = vpop.f32.mrb[8].mxu0 }
 0x2d0   :  { %v2810_v32 = vadd.f32 %v2809_v28, %v7727_v9  ;;  %v2811_v44 = vpop.f32.mrb[9].mxu0  ;;  %v2850_v45 = vpop.f32.mrb[8].mxu1  ;;  %v6652_v9 = vld [vmem:[#allocation11 + $0x84] ss:$8 sps:$4 sm:$0xff]  }
 0x2d1   :  { %v2812_v46 = vadd.f32 %v2811_v44, %v7732_v13  ;;  %v2813_v47 = vpop.f32.mrb[10].mxu0  ;;  %3987 = vmatpush1.bf16.msra.mxu0 %v6641_v20  ;;  %v2852_v49 = vpop.f32.mrb[9].mxu1  ;;  %v6655_v13 = vld [vmem:[#allocation11 + $0x94] ss:$8 sps:$4 sm:$0xff]  }
 0x2d2   :  { %v7748_v51 = vadd.f32 %v2850_v45, %v2810_v32  ;;  %v2814_v55 = vpop.f32.mrb[11].mxu0  ;;  %3988 = vmatprep.subr.bf16.mxu0 %v6646_v43  ;;  %v2854_v57 = vpop.f32.mrb[10].mxu1  ;;  %v6692_v43 = vld [vmem:[#allocation11 + $0x160] ss:$8 sps:$4 sm:$0xff]   ;;  %v6697_v44 = vld [vmem:[#allocation11 + $0x174] ss:$8 sps:$4 sm:$0xff]  }
 0x2d3   :  { %v2853_v60 = vadd.f32 %v2852_v49, %v2812_v46  ;;  %v2855_v61 = vpop.f32.mrb[11].mxu1  ;;  %v6695_v47 = vld [vmem:[#allocation11 + $0x170] ss:$8 sps:$4 sm:$0xff]   ;;  %v6700_v49 = vld [vmem:[#allocation11 + $0x184] ss:$8 sps:$4 sm:$0xff]  }
 0x2d4   :  { %v6703_v55 = vld [vmem:[#allocation11 + $0x194] ss:$8 sps:$4 sm:$0xff]   ;;  %v6706_v57 = vld [vmem:[#allocation11 + $0x1a4] ss:$8 sps:$4 sm:$0xff]  }
 0x2d5   :  { %3989 = vmatpush1.bf16.msra.mxu0 %v6644_v50  ;;  %v3175_v52 = vadd.f32 %v3147_v22, %v2853_v60  ;;  %v6698_v50 = vld [vmem:[#allocation11 + $0x180] ss:$8 sps:$4 sm:$0xff]   ;;  %v6709_v61 = vld [vmem:[#allocation11 + $0x1b4] ss:$8 sps:$4 sm:$0xff]  }
 0x2d6   :  { %3990 = vmatprep.subr.bf16.mxu0 %v6649_v56  ;;  %v6701_v56 = vld [vmem:[#allocation11 + $0x190] ss:$8 sps:$4 sm:$0xff]   ;;  %v6704_v60 = vld [vmem:[#allocation11 + $0x1a0] ss:$8 sps:$4 sm:$0xff]  }
 0x2d7   :  { %v3183_v27 = vmax.f32 %v3175_v52, 0.0  ;;  %v6820_v52 = vld [vmem:[#allocation14 + $0x48] sm:$0xff]  }
 0x2d9   :  { %3991 = vmatpush1.bf16.msra.mxu0 %v6647_v63  ;;  %v3191_v31 = vpack.c.bf16 %v3183_v27, %v3183_v27  ;;  %v6707_v63 = vld [vmem:[#allocation11 + $0x1b0] ss:$8 sps:$4 sm:$0xff]   ;;  %v6728_v27 = vld [vmem:[#allocation11 + $0x220] ss:$8 sps:$4 sm:$0xff]  }
 0x2da   :  { %3992 = vmatprep.subr.bf16.mxu0 %v6652_v9  ;;  %v6712_v9 = vld [vmem:[#allocation11 + $0x1c4] ss:$8 sps:$4 sm:$0xff]  }
 0x2dd   :  { %3993 = vmatpush1.bf16.msra.mxu0 %v6650_v0  ;;  %v6710_v0 = vld [vmem:[#allocation11 + $0x1c0] ss:$8 sps:$4 sm:$0xff]  }
 0x2de   :  { %3994 = vmatprep.subr.bf16.mxu0 %v6655_v13  ;;  %v3142_v13 = vsub.s32 2, %v7734_v62 }
 0x2e1   :  { %3995 = vmatpush1.bf16.msra.mxu0 %v6653_v1  ;;  %v6715_v1 = vld [vmem:[#allocation11 + $0x1d4] ss:$8 sps:$4 sm:$0xff]  }
 0x2e2   :  { %3996 = vmatprep.subr.bf16.mxu0 %v6658_v2  ;;  %v6713_v2 = vld [vmem:[#allocation11 + $0x1d0] ss:$8 sps:$4 sm:$0xff]  }
 0x2e5   :  { %3997 = vmatpush1.bf16.msra.mxu0 %v6656_v3  ;;  %v3143_v3 = vrot.slane %v7739_v15, %v3142_v13 }
 0x2e6   :  { %3998 = vmatprep.subr.bf16.mxu0 %v6661_v4  ;;  %v6718_v4 = vld [vmem:[#allocation11 + $0x1e4] ss:$8 sps:$4 sm:$0xff]  }
 0x2e9   :  { %3999 = vmatpush1.bf16.msra.mxu0 %v6659_v6  ;;  %v6716_v6 = vld [vmem:[#allocation11 + $0x1e0] ss:$8 sps:$4 sm:$0xff]  }
 0x2ea   :  { %4000 = vmatprep.subr.bf16.mxu0 %v6664_v7  ;;  %v3174_v7 = vadd.f32 %v3143_v3, %v7748_v51  ;;  %v6730_v51 = vld [vmem:[#allocation11 + $0x224] ss:$8 sps:$4 sm:$0xff]   ;;  %v6755_v3 = vld [vmem:[#allocation11 + $0x2b0] ss:$8 sps:$4 sm:$0xff]  }
 0x2ed   :  { %4001 = vmatpush1.bf16.msra.mxu0 %v6662_v11  ;;  %v6721_v11 = vld [vmem:[#allocation11 + $0x1f4] ss:$8 sps:$4 sm:$0xff]  }
 0x2ee   :  { %4002 = vmatprep.subr.bf16.mxu0 %v6667_v14  ;;  %v6719_v14 = vld [vmem:[#allocation11 + $0x1f0] ss:$8 sps:$4 sm:$0xff]  }
 0x2f1   :  { %4003 = vmatpush1.bf16.msra.mxu0 %v6665_v48  ;;  %v3182_v48 = vmax.f32 %v3174_v7, 0.0  ;;  %v3150_v7 = vsub.s32 4, %v7734_v62 }
 0x2f2   :  { %4004 = vmatprep.subr.bf16.mxu0 %v6670_v21  ;;  %v6722_v21 = vld [vmem:[#allocation11 + $0x200] ss:$8 sps:$4 sm:$0xff]  }
 0x2f3   :  { %v3190_v22 = vpack.c.bf16 %v3182_v48, %v3182_v48  ;;  %v3151_v48 = vrot.slane %v7739_v15, %v3150_v7 }
 0x2f5   :  { %4005 = vmatpush1.bf16.msra.mxu0 %v6668_v23  ;;  %v6727_v23 = vld [vmem:[#allocation11 + $0x214] ss:$8 sps:$4 sm:$0xff]  }
 0x2f6   :  { %4006 = vmatprep.subr.bf16.mxu0 %v6673_v25  ;;  %v6819_v25 = vld [vmem:[#allocation14] sm:$0xff]  }
 0x2f7   :  { %6528 = vmatpush3.bf16.msra.mxu1 %v6819_v25 }
 0x2f8   :  { %6529 = vmatprep.subr.bf16.mxu1 %v6820_v52  ;;  %v6772_v52 = vld [vmem:[#allocation11 + $0x304] ss:$8 sps:$4 sm:$0xff]  }
 0x2f9   :  { %4007 = vmatpush1.bf16.msra.mxu0 %v6671_v58  ;;  %v6725_v58 = vld [vmem:[#allocation11 + $0x210] ss:$8 sps:$4 sm:$0xff]  }
 0x2fa   :  { %4017 = vmatprep.subr.bf16.mxu0 %v6676_v53  ;;  %v6822_v53 = vld [vmem:[#allocation14 + $0x50] sm:$0xff]  }
 0x2fb   :  { %6530 = vmatpush3.bf16.msra.mxu1 %v6821_v26  ;;  %v6775_v26 = vld [vmem:[#allocation11 + $0x314] ss:$8 sps:$4 sm:$0xff]  }
 0x2fc   :  { %4009 = vmatmul.mubr.bf16.vlgmr.msra.gmra.mrb[24].mxu0 %v3188_v29  ;;  %v6823_v29 = vld [vmem:[#allocation14 + $0x10] sm:$0xff]   ;;  %6531 = vmatprep.subr.bf16.mxu1 %v6822_v53 }
 0x2fd   :  { %4018 = vmatpush1.bf16.msra.mxu0 %v6674_v54  ;;  %4049 = vmatprep.mubr.bf16.mxu0 %v3191_v31  ;;  %v6733_v54 = vld [vmem:[#allocation11 + $0x234] ss:$8 sps:$4 sm:$0xff]   ;;  %v6731_v31 = vld [vmem:[#allocation11 + $0x230] ss:$8 sps:$4 sm:$0xff]  }
 0x2fe   :  { %4019 = vmatprep.subr.bf16.mxu0 %v6679_v30  ;;  %v6824_v30 = vld [vmem:[#allocation14 + $0x58] sm:$0xff]  }
 0x2ff   :  { %6532 = vmatpush3.bf16.msra.mxu1 %v6823_v29  ;;  %v6773_v53 = vld [vmem:[#allocation11 + $0x310] ss:$8 sps:$4 sm:$0xff]   ;;  %v6781_v29 = vld [vmem:[#allocation11 + $0x334] ss:$8 sps:$4 sm:$0xff]  }
 0x300   :  { %6533 = vmatprep.subr.bf16.mxu1 %v6824_v30  ;;  %v6779_v30 = vld [vmem:[#allocation11 + $0x330] ss:$8 sps:$4 sm:$0xff]  }
 0x301   :  { %4020 = vmatpush1.bf16.msra.mxu0 %v6677_v33  ;;  %v6736_v33 = vld [vmem:[#allocation11 + $0x244] ss:$8 sps:$4 sm:$0xff]  }
 0x302   :  { %4021 = vmatprep.subr.bf16.mxu0 %v6682_v5  ;;  %v6825_v5 = vld [vmem:[#allocation14 + $0x18] sm:$0xff]  }
 0x303   :  { %6534 = vmatpush3.bf16.msra.mxu1 %v6825_v5  ;;  %v6787_v5 = vld [vmem:[#allocation11 + $0x354] ss:$8 sps:$4 sm:$0xff]  }
 0x305   :  { %4022 = vmatpush1.bf16.msra.mxu0 %v6680_v34  ;;  %v6826_v34 = vld [vmem:[#allocation14 + $0x60] sm:$0xff]  }
 0x306   :  { %4023 = vmatprep.subr.bf16.mxu0 %v6685_v35  ;;  %v6734_v35 = vld [vmem:[#allocation11 + $0x240] ss:$8 sps:$4 sm:$0xff]   ;;  %6535 = vmatprep.subr.bf16.mxu1 %v6826_v34  ;;  %v6785_v34 = vld [vmem:[#allocation11 + $0x350] ss:$8 sps:$4 sm:$0xff]  }
 0x309   :  { %4024 = vmatpush1.bf16.msra.mxu0 %v6683_v36  ;;  %v6739_v36 = vld [vmem:[#allocation11 + $0x254] ss:$8 sps:$4 sm:$0xff]  }
 0x30a   :  { %4025 = vmatprep.subr.bf16.mxu0 %v6688_v16  ;;  %v3154_v16 = vsub.s32 5, %v7734_v62 }
 0x30d   :  { %4026 = vmatpush1.bf16.msra.mxu0 %v6686_v37  ;;  %v6827_v37 = vld [vmem:[#allocation14 + $0x20] sm:$0xff]  }
 0x30e   :  { %4027 = vmatprep.subr.bf16.mxu0 %v6691_v10  ;;  %v6828_v10 = vld [vmem:[#allocation14 + $0x68] sm:$0xff]   ;;  %6536 = vmatpush3.bf16.msra.mxu1 %v6827_v37 }
 0x30f   :  { %v2891_v40 = vpop.f32.mrb[12].mxu0  ;;  %6537 = vmatprep.subr.bf16.mxu1 %v6828_v10 }
 0x310   :  { %v2932_v41 = vpop.f32.mrb[12].mxu1  ;;  %v2893_v19 = vpop.f32.mrb[13].mxu0 }
 0x311   :  { %v7760_v42 = vadd.f32 %v2932_v41, %v2891_v40  ;;  %v2934_v59 = vpop.f32.mrb[13].mxu1  ;;  %v2895_v20 = vpop.f32.mrb[14].mxu0  ;;  %4028 = vmatpush1.bf16.msra.mxu0 %v6689_v38  ;;  %v6737_v38 = vld [vmem:[#allocation11 + $0x250] ss:$8 sps:$4 sm:$0xff]   ;;  %v3155_v41 = vrot.slane %v7739_v15, %v3154_v16 }
 0x312   :  { %v7762_v28 = vadd.f32 %v2934_v59, %v2893_v19  ;;  %v2896_v32 = vpop.f32.mrb[15].mxu0  ;;  %4029 = vmatprep.subr.bf16.mxu0 %v6694_v39  ;;  %v2936_v45 = vpop.f32.mrb[14].mxu1  ;;  %v6742_v39 = vld [vmem:[#allocation11 + $0x264] ss:$8 sps:$4 sm:$0xff]  }
 0x313   :  { %v2937_v46 = vpop.f32.mrb[15].mxu1  ;;  %v6829_v19 = vld [vmem:[#allocation14 + $0x28] sm:$0xff]  }
 0x314   :  { %v6740_v45 = vld [vmem:[#allocation11 + $0x260] ss:$8 sps:$4 sm:$0xff]   ;;  %6538 = vmatpush3.bf16.msra.mxu1 %v6829_v19 }
 0x315   :  { %4030 = vmatpush1.bf16.msra.mxu0 %v6692_v43 }
 0x316   :  { %4031 = vmatprep.subr.bf16.mxu0 %v6697_v44 }
 0x319   :  { %4032 = vmatpush1.bf16.msra.mxu0 %v6695_v47 }
 0x31a   :  { %4033 = vmatprep.subr.bf16.mxu0 %v6700_v49  ;;  %v6745_v49 = vld [vmem:[#allocation11 + $0x274] ss:$8 sps:$4 sm:$0xff]  }
 0x31d   :  { %4034 = vmatpush1.bf16.msra.mxu0 %v6698_v50 }
 0x31e   :  { %4035 = vmatprep.subr.bf16.mxu0 %v6703_v55 }
 0x321   :  { %4036 = vmatpush1.bf16.msra.mxu0 %v6701_v56 }
 0x322   :  { %4037 = vmatprep.subr.bf16.mxu0 %v6706_v57 }
 0x325   :  { %4038 = vmatpush1.bf16.msra.mxu0 %v6704_v60  ;;  %v6748_v60 = vld [vmem:[#allocation11 + $0x284] ss:$8 sps:$4 sm:$0xff]  }
 0x326   :  { %4039 = vmatprep.subr.bf16.mxu0 %v6709_v61 }
 0x329   :  { %4040 = vmatpush1.bf16.msra.mxu0 %v6707_v63  ;;  %v6751_v63 = vld [vmem:[#allocation11 + $0x294] ss:$8 sps:$4 sm:$0xff]  }
 0x32a   :  { %4041 = vmatprep.subr.bf16.mxu0 %v6712_v9  ;;  %v6749_v9 = vld [vmem:[#allocation11 + $0x290] ss:$8 sps:$4 sm:$0xff]  }
 0x32d   :  { %4042 = vmatpush1.bf16.msra.mxu0 %v6710_v0  ;;  %v6754_v0 = vld [vmem:[#allocation11 + $0x2a4] ss:$8 sps:$4 sm:$0xff]  }
 0x32e   :  { %4043 = vmatprep.subr.bf16.mxu0 %v6715_v1  ;;  %v6752_v1 = vld [vmem:[#allocation11 + $0x2a0] ss:$8 sps:$4 sm:$0xff]  }
 0x331   :  { %4044 = vmatpush1.bf16.msra.mxu0 %v6713_v2  ;;  %v6757_v2 = vld [vmem:[#allocation11 + $0x2b4] ss:$8 sps:$4 sm:$0xff]  }
 0x332   :  { %4045 = vmatprep.subr.bf16.mxu0 %v6718_v4  ;;  %v6760_v4 = vld [vmem:[#allocation11 + $0x2c4] ss:$8 sps:$4 sm:$0xff]  }
 0x335   :  { %4046 = vmatpush1.bf16.msra.mxu0 %v6716_v6  ;;  %v6758_v6 = vld [vmem:[#allocation11 + $0x2c0] ss:$8 sps:$4 sm:$0xff]  }
 0x336   :  { %4047 = vmatprep.subr.bf16.mxu0 %v6721_v11  ;;  %v6763_v11 = vld [vmem:[#allocation11 + $0x2d4] ss:$8 sps:$4 sm:$0xff]  }
 0x339   :  { %4048 = vmatpush1.bf16.msra.mxu0 %v6719_v14  ;;  %v6761_v14 = vld [vmem:[#allocation11 + $0x2d0] ss:$8 sps:$4 sm:$0xff]  }
 0x33a   :  { %4058 = vmatprep.subr.bf16.mxu0 %v6724_v18  ;;  %v6766_v18 = vld [vmem:[#allocation11 + $0x2e4] ss:$8 sps:$4 sm:$0xff]  }
 0x33c   :  { %4050 = vmatmul.mubr.bf16.vlgmr.msra.gmra.mrb[24].mxu0 %v3190_v22 }
 0x33d   :  { %4059 = vmatpush1.bf16.msra.mxu0 %v6722_v21  ;;  %v6764_v21 = vld [vmem:[#allocation11 + $0x2e0] ss:$8 sps:$4 sm:$0xff]  }
 0x33e   :  { %4060 = vmatprep.subr.bf16.mxu0 %v6727_v23  ;;  %v6769_v23 = vld [vmem:[#allocation11 + $0x2f4] ss:$8 sps:$4 sm:$0xff]  }
 0x341   :  { %4061 = vmatpush1.bf16.msra.mxu0 %v6725_v58  ;;  %v6770_v58 = vld [vmem:[#allocation11 + $0x300] ss:$8 sps:$4 sm:$0xff]  }
 0x342   :  { %4062 = vmatprep.subr.bf16.mxu0 %v6730_v51 }
 0x345   :  { %4063 = vmatpush1.bf16.msra.mxu0 %v6728_v27  ;;  %v6778_v27 = vld [vmem:[#allocation11 + $0x324] ss:$8 sps:$4 sm:$0xff]  }
 0x346   :  { %4064 = vmatprep.subr.bf16.mxu0 %v6733_v54  ;;  %v6776_v54 = vld [vmem:[#allocation11 + $0x320] ss:$8 sps:$4 sm:$0xff]  }
 0x349   :  { %4065 = vmatpush1.bf16.msra.mxu0 %v6731_v31  ;;  %v6784_v31 = vld [vmem:[#allocation11 + $0x344] ss:$8 sps:$4 sm:$0xff]  }
 0x34a   :  { %4066 = vmatprep.subr.bf16.mxu0 %v6736_v33  ;;  %v6782_v33 = vld [vmem:[#allocation11 + $0x340] ss:$8 sps:$4 sm:$0xff]  }
 0x34d   :  { %4067 = vmatpush1.bf16.msra.mxu0 %v6734_v35  ;;  %v3162_v35 = vsub.s32 7, %v7734_v62 }
 0x34e   :  { %4068 = vmatprep.subr.bf16.mxu0 %v6739_v36  ;;  %v6790_v36 = vld [vmem:[#allocation11 + $0x364] ss:$8 sps:$4 sm:$0xff]  }
 0x34f   :  { %v2973_v40 = vpop.f32.mrb[16].mxu0  ;;  %v3163_v19 = vrot.slane %v7739_v15, %v3162_v35 }
 0x350   :  { %v2974_v59 = vadd.f32 %v2973_v40, %v7760_v42  ;;  %v2975_v20 = vpop.f32.mrb[17].mxu0  ;;  %v7774_v43 = vpop.f32.mrb[16].mxu1  ;;  %v6743_v42 = vld [vmem:[#allocation11 + $0x270] ss:$8 sps:$4 sm:$0xff]  }
 0x351   :  { %v2976_v32 = vadd.f32 %v2975_v20, %v7762_v28  ;;  %v2977_v44 = vpop.f32.mrb[18].mxu0  ;;  %4069 = vmatpush1.bf16.msra.mxu0 %v6737_v38  ;;  %v7777_v46 = vpop.f32.mrb[17].mxu1  ;;  %v6746_v28 = vld [vmem:[#allocation11 + $0x280] ss:$8 sps:$4 sm:$0xff]  }
 0x352   :  { %v2978_v47 = vpop.f32.mrb[19].mxu0  ;;  %4070 = vmatprep.subr.bf16.mxu0 %v6742_v39  ;;  %v3018_v50 = vpop.f32.mrb[18].mxu1  ;;  %v3176_v22 = vadd.f32 %v3151_v48, %v2974_v59  ;;  %v6788_v59 = vld [vmem:[#allocation11 + $0x360] ss:$8 sps:$4 sm:$0xff]  }
 0x353   :  { %v3177_v55 = vadd.f32 %v3155_v41, %v2976_v32  ;;  %v3019_v56 = vpop.f32.mrb[19].mxu1  ;;  %v6812_v48 = vld [vmem:[#allocation11 + $0x3e0] ss:$8 sps:$4 sm:$0xff]  }
 0x354   :  { %v3184_v25 = vmax.f32 %v3176_v22, 0.0  ;;  %v6815_v22 = vld [vmem:[#allocation11 + $0x3f0] ss:$8 sps:$4 sm:$0xff]  }
 0x355   :  { %v3185_v57 = vmax.f32 %v3177_v55, 0.0  ;;  %4071 = vmatpush1.bf16.msra.mxu0 %v6740_v45  ;;  %v6793_v45 = vld [vmem:[#allocation11 + $0x374] ss:$8 sps:$4 sm:$0xff]   ;;  %v6791_v55 = vld [vmem:[#allocation11 + $0x370] ss:$8 sps:$4 sm:$0xff]  }
 0x356   :  { %4072 = vmatprep.subr.bf16.mxu0 %v6745_v49  ;;  %v3192_v51 = vpack.c.bf16 %v3184_v25, %v3184_v25  ;;  %v6830_v25 = vld [vmem:[#allocation14 + $0x70] sm:$0xff]  }
 0x357   :  { %v3193_v61 = vpack.c.bf16 %v3185_v57, %v3185_v57  ;;  %6539 = vmatprep.subr.bf16.mxu1 %v6830_v25 }
 0x359   :  { %4073 = vmatpush1.bf16.msra.mxu0 %v6743_v42  ;;  %4090 = vmatprep.mubr.bf16.mxu0 %v3193_v61  ;;  %v6794_v42 = vld [vmem:[#allocation11 + $0x380] ss:$8 sps:$4 sm:$0xff]   ;;  %v6797_v61 = vld [vmem:[#allocation11 + $0x390] ss:$8 sps:$4 sm:$0xff]  }
 0x35a   :  { %4074 = vmatprep.subr.bf16.mxu0 %v6748_v60  ;;  %v6799_v60 = vld [vmem:[#allocation11 + $0x394] ss:$8 sps:$4 sm:$0xff]  }
 0x35d   :  { %4075 = vmatpush1.bf16.msra.mxu0 %v6746_v28  ;;  %v6802_v28 = vld [vmem:[#allocation11 + $0x3a4] ss:$8 sps:$4 sm:$0xff]  }
 0x35e   :  { %4076 = vmatprep.subr.bf16.mxu0 %v6751_v63  ;;  %v6800_v63 = vld [vmem:[#allocation11 + $0x3a0] ss:$8 sps:$4 sm:$0xff]  }
 0x361   :  { %4077 = vmatpush1.bf16.msra.mxu0 %v6749_v9  ;;  %v6805_v9 = vld [vmem:[#allocation11 + $0x3b4] ss:$8 sps:$4 sm:$0xff]  }
 0x362   :  { %4078 = vmatprep.subr.bf16.mxu0 %v6754_v0  ;;  %v6803_v0 = vld [vmem:[#allocation11 + $0x3b0] ss:$8 sps:$4 sm:$0xff]  }
 0x365   :  { %4079 = vmatpush1.bf16.msra.mxu0 %v6752_v1  ;;  %v6808_v1 = vld [vmem:[#allocation11 + $0x3c4] ss:$8 sps:$4 sm:$0xff]  }
 0x366   :  { %4080 = vmatprep.subr.bf16.mxu0 %v6757_v2  ;;  %v6806_v2 = vld [vmem:[#allocation11 + $0x3c0] ss:$8 sps:$4 sm:$0xff]  }
 0x369   :  { %4081 = vmatpush1.bf16.msra.mxu0 %v6755_v3  ;;  %v3158_v3 = vsub.s32 6, %v7734_v62 }
 0x36a   :  { %4082 = vmatprep.subr.bf16.mxu0 %v6760_v4  ;;  %v6811_v4 = vld [vmem:[#allocation11 + $0x3d4] ss:$8 sps:$4 sm:$0xff]  }
 0x36d   :  { %4083 = vmatpush1.bf16.msra.mxu0 %v6758_v6  ;;  %v6809_v6 = vld [vmem:[#allocation11 + $0x3d0] ss:$8 sps:$4 sm:$0xff]  }
 0x36e   :  { %4084 = vmatprep.subr.bf16.mxu0 %v6763_v11  ;;  %v3159_v11 = vrot.slane %v7739_v15, %v3158_v3  ;;  %v6833_v15 = vld [vmem:[#allocation14 + $0x38] sm:$0xff]  }
 0x371   :  { %4085 = vmatpush1.bf16.msra.mxu0 %v6761_v14  ;;  %v6814_v14 = vld [vmem:[#allocation11 + $0x3e4] ss:$8 sps:$4 sm:$0xff]  }
 0x372   :  { %4086 = vmatprep.subr.bf16.mxu0 %v6766_v18 }
 0x375   :  { %4087 = vmatpush1.bf16.msra.mxu0 %v6764_v21  ;;  %v6817_v21 = vld [vmem:[#allocation11 + $0x3f4] ss:$8 sps:$4 sm:$0xff]  }
 0x376   :  { %4088 = vmatprep.subr.bf16.mxu0 %v6769_v23 }
 0x379   :  { %4089 = vmatpush1.bf16.msra.mxu0 %v6767_v24 }
 0x37a   :  { %4099 = vmatprep.subr.bf16.mxu0 %v6772_v52  ;;  %v6831_v52 = vld [vmem:[#allocation14 + $0x30] sm:$0xff]  }
 0x37b   :  { %6540 = vmatpush3.bf16.msra.mxu1 %v6831_v52 }
 0x37c   :  { %4091 = vmatmul.mubr.bf16.vlgmr.msra.gmra.mrb[24].mxu0 %v3192_v51  ;;  %v6836_v51 = vld [vmem:[#allocation17 + $0x4] ss:$8 sps:$4 sm:$0xff]  }
 0x37d   :  { %4100 = vmatpush1.bf16.msra.mxu0 %v6770_v58  ;;  %v6832_v58 = vld [vmem:[#allocation14 + $0x78] sm:$0xff]  }
 0x37e   :  { %4101 = vmatprep.subr.bf16.mxu0 %v6775_v26  ;;  %6541 = vmatprep.subr.bf16.mxu1 %v6832_v58  ;;  %v3324_v26 = vld [vmem:[#allocation12] sm:$0x3] }
 0x37f   :  { %6542 = vmatpush3.bf16.msra.mxu1 %v6833_v15 }
 0x380   :  { %4429 = vmatprep.subr.bf16.mxu1 %v6836_v51 }
 0x381   :  { %4102 = vmatpush1.bf16.msra.mxu0 %v6773_v53  ;;  %v3329_v53 = vrot.slane %v3324_v26, %v7751_v12 }
 0x382   :  { %4103 = vmatprep.subr.bf16.mxu0 %v6778_v27  ;;  %v3333_v27 = vrot.slane %v3324_v26, %v7737_v8 }
 0x385   :  { %4104 = vmatpush1.bf16.msra.mxu0 %v6776_v54 }
 0x386   :  { %4105 = vmatprep.subr.bf16.mxu0 %v6781_v29 }
 0x389   :  { %4106 = vmatpush1.bf16.msra.mxu0 %v6779_v30 }
 0x38a   :  { %4107 = vmatprep.subr.bf16.mxu0 %v6784_v31 }
 0x38d   :  { %4108 = vmatpush1.bf16.msra.mxu0 %v6782_v33 }
 0x38e   :  { %4109 = vmatprep.subr.bf16.mxu0 %v6787_v5 }
 0x38f   :  { %v3055_v37 = vpop.f32.mrb[20].mxu0 }
 0x390   :  { %v3056_v10 = vadd.f32 %v3055_v37, %v7774_v43  ;;  %v3057_v38 = vpop.f32.mrb[21].mxu0 }
 0x391   :  { %v3058_v39 = vadd.f32 %v3057_v38, %v7777_v46  ;;  %v3059_v40 = vpop.f32.mrb[22].mxu0  ;;  %v3096_v41 = vpop.f32.mrb[20].mxu1  ;;  %4110 = vmatpush1.bf16.msra.mxu0 %v6785_v34  ;;  %v6796_v46 = vld [vmem:[#allocation11 + $0x384] ss:$8 sps:$4 sm:$0xff]  }
 0x392   :  { %v3097_v20 = vadd.f32 %v3096_v41, %v3056_v10  ;;  %v3060_v32 = vpop.f32.mrb[23].mxu0  ;;  %v3098_v44 = vpop.f32.mrb[21].mxu1  ;;  %4111 = vmatprep.subr.bf16.mxu0 %v6790_v36  ;;  %v6834_v10 = vld [vmem:[#allocation17] ss:$8 sps:$4 sm:$0xff]   ;;  %v6837_v40 = vld [vmem:[#allocation17 + $0x10] ss:$8 sps:$4 sm:$0xff]  }
 0x393   :  { %v3099_v47 = vadd.f32 %v3098_v44, %v3058_v39  ;;  %v3100_v49 = vpop.f32.mrb[22].mxu1  ;;  %v6839_v39 = vld [vmem:[#allocation17 + $0x14] ss:$8 sps:$4 sm:$0xff]   ;;  %v6842_v41 = vld [vmem:[#allocation17 + $0x24] ss:$8 sps:$4 sm:$0xff]  }
 0x394   :  { %v3101_v50 = vpop.f32.mrb[23].mxu1  ;;  %v3178_v18 = vadd.f32 %v3159_v11, %v3097_v20  ;;  %v6843_v20 = vld [vmem:[#allocation17 + $0x30] ss:$8 sps:$4 sm:$0xff]   ;;  %v6848_v32 = vld [vmem:[#allocation17 + $0x44] ss:$8 sps:$4 sm:$0xff]  }
 0x395   :  { %v3179_v43 = vadd.f32 %v3163_v19, %v3099_v47  ;;  %4112 = vmatpush1.bf16.msra.mxu0 %v6788_v59  ;;  %v6840_v19 = vld [vmem:[#allocation17 + $0x20] ss:$8 sps:$4 sm:$0xff]   ;;  %v6845_v59 = vld [vmem:[#allocation17 + $0x34] ss:$8 sps:$4 sm:$0xff]   ;;  %v6849_v47 = vld [vmem:[#allocation17 + $0x50] ss:$8 sps:$4 sm:$0xff]  }
 0x396   :  { %4113 = vmatprep.subr.bf16.mxu0 %v6793_v45  ;;  %v3186_v23 = vmax.f32 %v3178_v18, 0.0  ;;  %v6846_v44 = vld [vmem:[#allocation17 + $0x40] ss:$8 sps:$4 sm:$0xff]   ;;  %v6851_v45 = vld [vmem:[#allocation17 + $0x54] ss:$8 sps:$4 sm:$0xff]  }
 0x397   :  { %v3187_v56 = vmax.f32 %v3179_v43, 0.0  ;;  %v6854_v49 = vld [vmem:[#allocation17 + $0x64] ss:$8 sps:$4 sm:$0xff]   ;;  %v6852_v50 = vld [vmem:[#allocation17 + $0x60] ss:$8 sps:$4 sm:$0xff]   ;;  %v6864_v18 = vld [vmem:[#allocation20 + $0x30] sm:$0xff]  }
 0x398   :  { %v3194_v24 = vpack.c.bf16 %v3186_v23, %v3186_v23  ;;  %v6857_v43 = vld [vmem:[#allocation17 + $0x74] ss:$8 sps:$4 sm:$0xff]   ;;  %v4337_v23 = vld [vmem:[#allocation18] sm:$0x3] }
 0x399   :  { %v3195_v57 = vpack.c.bf16 %v3187_v56, %v3187_v56  ;;  %4114 = vmatpush1.bf16.msra.mxu0 %v6791_v55  ;;  %v6855_v55 = vld [vmem:[#allocation17 + $0x70] ss:$8 sps:$4 sm:$0xff]   ;;  %v7355_v56 = vmov 0.0   ;;  %v4346_v25 = vrot.slane %v4337_v23, %v7737_v8 }
 0x39a   :  { %4115 = vmatprep.subr.bf16.mxu0 %v6796_v46  ;;  %v7354_v46 = vmov 0   ;;  %v6861_v11 = vld [vmem:[#allocation20 + $0x18] sm:$0xff]  }
 0x39b   :  { %4131 = vmatprep.mubr.bf16.mxu0 %v3195_v57 }
 0x39d   :  { %4116 = vmatpush1.bf16.msra.mxu0 %v6794_v42  ;;  %v6333_v42 = vld [vmem:[#allocation15] ss:$0 sm:$0xff] }
 0x39e   :  { %4117 = vmatprep.subr.bf16.mxu0 %v6799_v60 }
 0x3a1   :  { %4118 = vmatpush1.bf16.msra.mxu0 %v6797_v61 }
 0x3a2   :  { %4119 = vmatprep.subr.bf16.mxu0 %v6802_v28 }
 0x3a5   :  { %4120 = vmatpush1.bf16.msra.mxu0 %v6800_v63 }
 0x3a6   :  { %4121 = vmatprep.subr.bf16.mxu0 %v6805_v9 }
 0x3a9   :  { %4122 = vmatpush1.bf16.msra.mxu0 %v6803_v0 }
 0x3aa   :  { %4123 = vmatprep.subr.bf16.mxu0 %v6808_v1  ;;  %v6858_v1 = vld [vmem:[#allocation20] sm:$0xff]  }
 0x3ad   :  { %4124 = vmatpush1.bf16.msra.mxu0 %v6806_v2 }
 0x3ae   :  { %4125 = vmatprep.subr.bf16.mxu0 %v6811_v4  ;;  %v6859_v4 = vld [vmem:[#allocation20 + $0x8] sm:$0xff]  }
 0x3b1   :  { %4126 = vmatpush1.bf16.msra.mxu0 %v6809_v6  ;;  %v6860_v6 = vld [vmem:[#allocation20 + $0x10] sm:$0xff]  }
 0x3b2   :  { %4127 = vmatprep.subr.bf16.mxu0 %v6814_v14  ;;  %v6862_v14 = vld [vmem:[#allocation20 + $0x20] sm:$0xff]  }
 0x3b5   :  { %4128 = vmatpush1.bf16.msra.mxu0 %v6812_v48  ;;  %v6863_v48 = vld [vmem:[#allocation20 + $0x28] sm:$0xff]  }
 0x3b6   :  { %4129 = vmatprep.subr.bf16.mxu0 %v6817_v21  ;;  %v6865_v21 = vld [vmem:[#allocation20 + $0x38] sm:$0xff]  }
 0x3b9   :  { %4130 = vmatpush1.bf16.msra.mxu0 %v6815_v22  ;;  %v6868_v22 = vld [vmem:[#allocation23 + $0x4] ss:$8 sps:$4 sm:$0xff]  }
 0x3bc   :  { %4132 = vmatmul.mubr.bf16.vlgmr.msra.gmra.mrb[24].mxu0 %v3194_v24  ;;  %v4342_v24 = vrot.slane %v4337_v23, %v7751_v12  ;;  %v4785_v23 = vld [vmem:[#allocation26 + $0x150] sm:$0xff] }
 0x48f   :  { %v4133_v54 = vpop.f32.mrb[24].mxu0 }
 0x490   :  { %v6578_v29 = vadd.f32 %v4133_v54, %v3329_v53  ;;  %v4135_v30 = vpop.f32.mrb[25].mxu0 }
 0x491   :  { %v6579_v31 = vadd.f32 %v4135_v30, %v3333_v27  ;;  %v4137_v33 = vpop.f32.mrb[26].mxu0 }
 0x492   :  { %v4140_v5 = vmax.f32 %v6578_v29, 0.0  ;;  %v4138_v34 = vpop.f32.mrb[27].mxu0  ;;  %v4473_v29 = vld [vmem:[#allocation9] sm:$0xff] }
 0x493   :  { %v4141_v36 = vmax.f32 %v6579_v31, 0.0 }
 0x494   :  { %v4142_v38 = vpack.c.bf16 %v4140_v5, %v4140_v5  ;;  %v6866_v5 = vld [vmem:[#allocation23] ss:$8 sps:$4 sm:$0xff]  }
 0x495   :  { %v4143_v37 = vpack.c.bf16 %v4141_v36, %v4141_v36  ;;  %v6871_v36 = vld [vmem:[#allocation23 + $0x14] ss:$8 sps:$4 sm:$0xff]  }
 0x497   :  { %4311 = vmatprep.mubr.bf16.mxu1 %v4143_v37  ;;  %v6869_v37 = vld [vmem:[#allocation23 + $0x10] ss:$8 sps:$4 sm:$0xff]  }
 0x498   :  { %4312 = vmatmul.mubr.bf16.vlgmr.msra.gmra.mrb[24].mxu1 %v4142_v38  ;;  %v6872_v38 = vld [vmem:[#allocation23 + $0x20] ss:$8 sps:$4 sm:$0xff]  }
 0x499   :  { %4430 = vmatpush1.bf16.msra.mxu1 %v6834_v10  ;;  %4461 = vmatprep.mubr.bf16.mxu1 %v7354_v46  ;;  %v6874_v10 = vld [vmem:[#allocation23 + $0x24] ss:$8 sps:$4 sm:$0xff]  }
 0x49a   :  { %4431 = vmatprep.subr.bf16.mxu1 %v6839_v39  ;;  %v6877_v39 = vld [vmem:[#allocation23 + $0x34] ss:$8 sps:$4 sm:$0xff]  }
 0x49d   :  { %4432 = vmatpush1.bf16.msra.mxu1 %v6837_v40  ;;  %v6875_v40 = vld [vmem:[#allocation23 + $0x30] ss:$8 sps:$4 sm:$0xff]  }
 0x49e   :  { %4433 = vmatprep.subr.bf16.mxu1 %v6842_v41  ;;  %v6880_v41 = vld [vmem:[#allocation23 + $0x44] ss:$8 sps:$4 sm:$0xff]  }
 0x4a1   :  { %4434 = vmatpush1.bf16.msra.mxu1 %v6840_v19  ;;  %v6878_v19 = vld [vmem:[#allocation23 + $0x40] ss:$8 sps:$4 sm:$0xff]  }
 0x4a2   :  { %4435 = vmatprep.subr.bf16.mxu1 %v6845_v59  ;;  %v6883_v59 = vld [vmem:[#allocation23 + $0x54] ss:$8 sps:$4 sm:$0xff]  }
 0x4a5   :  { %4436 = vmatpush1.bf16.msra.mxu1 %v6843_v20  ;;  %v6881_v20 = vld [vmem:[#allocation23 + $0x50] ss:$8 sps:$4 sm:$0xff]  }
 0x4a6   :  { %4437 = vmatprep.subr.bf16.mxu1 %v6848_v32  ;;  %v6886_v32 = vld [vmem:[#allocation23 + $0x64] ss:$8 sps:$4 sm:$0xff]  }
 0x4a9   :  { %4438 = vmatpush1.bf16.msra.mxu1 %v6846_v44  ;;  %v6884_v44 = vld [vmem:[#allocation23 + $0x60] ss:$8 sps:$4 sm:$0xff]  }
 0x4aa   :  { %4439 = vmatprep.subr.bf16.mxu1 %v6851_v45  ;;  %v6889_v45 = vld [vmem:[#allocation23 + $0x74] ss:$8 sps:$4 sm:$0xff]  }
 0x4ad   :  { %4440 = vmatpush1.bf16.msra.mxu1 %v6849_v47  ;;  %v6887_v47 = vld [vmem:[#allocation23 + $0x70] ss:$8 sps:$4 sm:$0xff]  }
 0x4ae   :  { %4441 = vmatprep.subr.bf16.mxu1 %v6854_v49  ;;  %v7799_v49 = vld [vmem:[#allocation26] sm:$0xff] }
 0x4b1   :  { %4442 = vmatpush1.bf16.msra.mxu1 %v6852_v50  ;;  %v7801_v50 = vld [vmem:[#allocation26 + $0x20] sm:$0xff] }
 0x4b2   :  { %4443 = vmatprep.subr.bf16.mxu1 %v6857_v43  ;;  %v6391_v43 = vcombine.low %v7799_v49, %v7801_v50 }
 0x4b5   :  { %4444 = vmatpush1.bf16.msra.mxu1 %v6855_v55  ;;  %v6392_v55 = vcombine.high %v7799_v49, %v7801_v50 }
 0x4b6   :  { %6558 = vmatprep.subr.bf16.mxu1 %v7355_v56 }
 0x56b   :  { %v6543_v57 = vpop.f32.mrb[24].mxu1 }
 0x56c   :  { %v6544_v60 = vpop.f32.mrb[25].mxu1 }
 0x56d   :  { %v6545_v61 = vadd.f32 %v6544_v60, %v6543_v57  ;;  %v6546_v28 = vpop.f32.mrb[26].mxu1  ;;  %v4753_v60 = vld [vmem:[#allocation26 + $0x50] sm:$0xff] }
 0x56e   :  { %v6547_v63 = vpop.f32.mrb[27].mxu1 }
 0x56f   :  { %v4314_v9 = vadd.f32 %v6545_v61, %v6333_v42  ;;  %v4757_v61 = vld [vmem:[#allocation26 + $0x70] sm:$0xff] }
 0x570   :  { %v6403_v28 = vcombine.low %v4753_v60, %v4757_v61  ;;  %v6404_v63 = vcombine.high %v4753_v60, %v4757_v61  ;;  %v6366_v60 = vld [vmem:[#allocation21] ss:$0 sm:$0xff] }
 0x571   :  { %v4319_v0 = vmax.f32 %v4314_v9, 0.0  ;;  %v4761_v9 = vld [vmem:[#allocation26 + $0x90] sm:$0xff] }
 0x573   :  { %v4320_v2 = vpack.c.bf16 %v4319_v0, %v4319_v0  ;;  %v4765_v0 = vld [vmem:[#allocation26 + $0xb0] sm:$0xff] }
 0x575   :  { %4462 = vmatmul.mubr.bf16.vlgmr.msra.gmra.mrb[28].mxu1 %v4320_v2  ;;  %v6412_v2 = vcombine.high %v4761_v9, %v4765_v0 }
 0x576   :  { %6559 = vmatpush3.bf16.msra.mxu1 %v6858_v1  ;;  %6574 = vmatprep.mubr.msk.bf16.mxu1 %vm7356_vm0, %v7355_v56  ;;  %v6411_v1 = vcombine.low %v4761_v9, %v4765_v0  ;;  %v4751_v0 = vld [vmem:[#allocation26 + $0x40] sm:$0xff] }
 0x577   :  { %6560 = vmatprep.subr.bf16.mxu1 %v7355_v56 }
 0x57a   :  { %6561 = vmatpush3.bf16.msra.mxu1 %v6859_v4  ;;  %v4769_v4 = vld [vmem:[#allocation26 + $0xd0] sm:$0xff] }
 0x57b   :  { %6562 = vmatprep.subr.bf16.mxu1 %v7355_v56 }
 0x57e   :  { %6563 = vmatpush3.bf16.msra.mxu1 %v6860_v6  ;;  %v4773_v6 = vld [vmem:[#allocation26 + $0xf0] sm:$0xff] }
 0x57f   :  { %6564 = vmatprep.subr.bf16.mxu1 %v7355_v56 }
 0x582   :  { %6565 = vmatpush3.bf16.msra.mxu1 %v6861_v11  ;;  %v6419_v11 = vcombine.low %v4769_v4, %v4773_v6 }
 0x583   :  { %6566 = vmatprep.subr.bf16.mxu1 %v7355_v56 }
 0x586   :  { %6567 = vmatpush3.bf16.msra.mxu1 %v6862_v14  ;;  %v6420_v14 = vcombine.high %v4769_v4, %v4773_v6 }
 0x587   :  { %6568 = vmatprep.subr.bf16.mxu1 %v7355_v56 }
 0x58a   :  { %6569 = vmatpush3.bf16.msra.mxu1 %v6863_v48  ;;  %v4777_v48 = vld [vmem:[#allocation26 + $0x110] sm:$0xff] }
 0x58b   :  { %6570 = vmatprep.subr.bf16.mxu1 %v7355_v56 }
 0x58e   :  { %6571 = vmatpush3.bf16.msra.mxu1 %v6864_v18  ;;  %v4781_v18 = vld [vmem:[#allocation26 + $0x130] sm:$0xff] }
 0x58f   :  { %6572 = vmatprep.subr.bf16.mxu1 %v7355_v56  ;;  %v4749_v56 = vld [vmem:[#allocation26 + $0x30] sm:$0xff] }
 0x592   :  { %6573 = vmatpush3.bf16.msra.mxu1 %v6865_v21  ;;  %v6427_v21 = vcombine.low %v4777_v48, %v4781_v18 }
 0x593   :  { %4698 = vmatprep.subr.bf16.mxu1 %v6868_v22  ;;  %v6428_v22 = vcombine.high %v4777_v48, %v4781_v18  ;;  %v4763_v48 = vld [vmem:[#allocation26 + $0xa0] sm:$0xff] }
 0x648   :  { %v4463_v52 = vpop.f32.mrb[28].mxu1 }
 0x649   :  { %v4464_v58 = vadd.f32 %v4463_v52, %v4342_v24  ;;  %v4465_v15 = vpop.f32.mrb[29].mxu1  ;;  %v4789_v24 = vld [vmem:[#allocation26 + $0x170] sm:$0xff] }
 0x64a   :  { %v4466_v51 = vadd.f32 %v4465_v15, %v4346_v25  ;;  %v4467_v26 = vpop.f32.mrb[30].mxu1  ;;  %v6435_v25 = vcombine.low %v4785_v23, %v4789_v24  ;;  %v6436_v52 = vcombine.high %v4785_v23, %v4789_v24  ;;  %v4797_v15 = vld [vmem:[#allocation26 + $0x1b0] sm:$0xff]  ;;  %v4771_v23 = vld [vmem:[#allocation26 + $0xe0] sm:$0xff] }
 0x64b   :  { %5733 = vst [vmem:[#allocation29] sm:$0xff] %v4464_v58  ;;  %v4468_v53 = vpop.f32.mrb[31].mxu1 }
 0x64c   :  { %v4470_v27 = vmul.f32 0.5, %v4466_v51  ;;  %v4801_v53 = vld [vmem:[#allocation26 + $0x1d0] sm:$0xff] }
 0x64e   :  { %v4471_v54 = vmul.f32 1.442695, %v4470_v27  ;;  %v4805_v27 = vld [vmem:[#allocation26 + $0x1f0] sm:$0xff] }
 0x650   :  { %6890 = vpow2.f32 %v4471_v54  ;;  %v6451_v54 = vcombine.low %v4801_v53, %v4805_v27 }
 0x65a   :  { %v6891_v30 = vpop.eup %6890 }
 0x65b   :  { %5734 = vst [vmem:[#allocation30] sm:$0xff] %v6891_v30  ;;  %v4474_v31 = vmul.f32 %v6891_v30, %v4473_v29  ;;  %v6452_v29 = vcombine.high %v4801_v53, %v4805_v27  ;;  %v4809_v30 = vld [vmem:[#allocation26 + $0x210] sm:$0xff]  ;;  %v4787_v53 = vld [vmem:[#allocation26 + $0x160] sm:$0xff] }
 0x65c   :  { %v4795_v27 = vld [vmem:[#allocation26 + $0x1a0] sm:$0xff] }
 0x65d   :  { %v4475_v33 = vadd.f32 %v4474_v31, %v4464_v58  ;;  %v4793_v58 = vld [vmem:[#allocation26 + $0x190] sm:$0xff] }
 0x65e   :  { %v6443_v51 = vcombine.low %v4793_v58, %v4797_v15  ;;  %v6444_v26 = vcombine.high %v4793_v58, %v4797_v15  ;;  %v4813_v31 = vld [vmem:[#allocation26 + $0x230] sm:$0xff]  ;;  %v4779_v58 = vld [vmem:[#allocation26 + $0x120] sm:$0xff] }
 0x65f   :  { %v4476_v34 = vpack.c.bf16 %v4475_v33, %v4475_v33  ;;  %v6459_v33 = vcombine.low %v4809_v30, %v4813_v31 }
 0x661   :  { %6575 = vmatmul.mubr.bf16.vlgmr.msra.gmra.mrb[32].mxu1 %v4476_v34  ;;  %v4817_v34 = vld [vmem:[#allocation26 + $0x250] sm:$0xff] }
 0x662   :  { %4699 = vmatpush1.bf16.msra.mxu1 %v6866_v5  ;;  %4730 = vmatprep.mubr.bf16.mxu1 %v7354_v46  ;;  %v4745_v46 = vld [vmem:[#allocation26 + $0x10] sm:$0xff]  ;;  %v6460_v5 = vcombine.high %v4809_v30, %v4813_v31  ;;  %v4799_v30 = vld [vmem:[#allocation26 + $0x1c0] sm:$0xff] }
 0x663   :  { %4700 = vmatprep.subr.bf16.mxu1 %v6871_v36  ;;  %v6395_v57 = vcombine.low %v4745_v46, %v4749_v56  ;;  %v6396_v42 = vcombine.high %v4745_v46, %v4749_v56  ;;  %v4821_v36 = vld [vmem:[#allocation26 + $0x270] sm:$0xff]  ;;  %v4803_v31 = vld [vmem:[#allocation26 + $0x1e0] sm:$0xff] }
 0x664   :  { %v4849_v46 = vld [vmem:[#allocation26 + $0x350] sm:$0xff] }
 0x665   :  { %5635 = vmatprep.subr.bf16.mxu0 %v6396_v42  ;;  %v4853_v56 = vld [vmem:[#allocation26 + $0x370] sm:$0xff] }
 0x666   :  { %4701 = vmatpush1.bf16.msra.mxu1 %v6869_v37  ;;  %5636 = vmatpush1.bf16.msra.mxu0 %v6395_v57  ;;  %v6467_v37 = vcombine.low %v4817_v34, %v4821_v36  ;;  %v6499_v57 = vcombine.low %v4849_v46, %v4853_v56  ;;  %v6500_v42 = vcombine.high %v4849_v46, %v4853_v56  ;;  %v4839_v46 = vld [vmem:[#allocation26 + $0x300] sm:$0xff] }
 0x667   :  { %4702 = vmatprep.subr.bf16.mxu1 %v6874_v10  ;;  %5637 = vmatprep.subr.bf16.mxu0 %v6404_v63  ;;  %v6468_v10 = vcombine.high %v4817_v34, %v4821_v36  ;;  %v4807_v34 = vld [vmem:[#allocation26 + $0x200] sm:$0xff] }
 0x668   :  { %v4811_v36 = vld [vmem:[#allocation26 + $0x220] sm:$0xff] }
 0x669   :  { %v4843_v56 = vld [vmem:[#allocation26 + $0x320] sm:$0xff] }
 0x66a   :  { %4703 = vmatpush1.bf16.msra.mxu1 %v6872_v38  ;;  %5638 = vmatpush1.bf16.msra.mxu0 %v6403_v28  ;;  %v4825_v38 = vld [vmem:[#allocation26 + $0x290] sm:$0xff] }
 0x66b   :  { %4704 = vmatprep.subr.bf16.mxu1 %v6877_v39  ;;  %5639 = vmatprep.subr.bf16.mxu0 %v6412_v2  ;;  %v4829_v39 = vld [vmem:[#allocation26 + $0x2b0] sm:$0xff] }
 0x66e   :  { %4705 = vmatpush1.bf16.msra.mxu1 %v6875_v40  ;;  %5640 = vmatpush1.bf16.msra.mxu0 %v6411_v1  ;;  %v6475_v40 = vcombine.low %v4825_v38, %v4829_v39  ;;  %v4755_v1 = vld [vmem:[#allocation26 + $0x60] sm:$0xff] }
 0x66f   :  { %4706 = vmatprep.subr.bf16.mxu1 %v6880_v41  ;;  %5641 = vmatprep.subr.bf16.mxu0 %v6420_v14  ;;  %v6476_v41 = vcombine.high %v4825_v38, %v4829_v39  ;;  %v4759_v14 = vld [vmem:[#allocation26 + $0x80] sm:$0xff]  ;;  %v6399_v18 = vcombine.low %v4751_v0, %v4755_v1 }
 0x670   :  { %v6407_v24 = vcombine.low %v4759_v14, %v4763_v48  ;;  %v4815_v38 = vld [vmem:[#allocation26 + $0x240] sm:$0xff] }
 0x671   :  { %v4819_v39 = vld [vmem:[#allocation26 + $0x260] sm:$0xff] }
 0x672   :  { %4707 = vmatpush1.bf16.msra.mxu1 %v6878_v19  ;;  %5642 = vmatpush1.bf16.msra.mxu0 %v6419_v11  ;;  %v4833_v19 = vld [vmem:[#allocation26 + $0x2d0] sm:$0xff]  ;;  %v6400_v11 = vcombine.high %v4751_v0, %v4755_v1  ;;  %v4855_v0 = vld [vmem:[#allocation26 + $0x380] sm:$0xff] }
 0x673   :  { %4708 = vmatprep.subr.bf16.mxu1 %v6883_v59  ;;  %5643 = vmatprep.subr.bf16.mxu0 %v6428_v22  ;;  %v4837_v59 = vld [vmem:[#allocation26 + $0x2f0] sm:$0xff]  ;;  %v4767_v22 = vld [vmem:[#allocation26 + $0xc0] sm:$0xff] }
 0x674   :  { %v6415_v15 = vcombine.low %v4767_v22, %v4771_v23  ;;  %v4859_v1 = vld [vmem:[#allocation26 + $0x3a0] sm:$0xff] }
 0x676   :  { %4709 = vmatpush1.bf16.msra.mxu1 %v6881_v20  ;;  %5644 = vmatpush1.bf16.msra.mxu0 %v6427_v21  ;;  %v6483_v20 = vcombine.low %v4833_v19, %v4837_v59  ;;  %v6408_v21 = vcombine.high %v4759_v14, %v4763_v48 }
 0x677   :  { %4710 = vmatprep.subr.bf16.mxu1 %v6886_v32  ;;  %5645 = vmatprep.subr.bf16.mxu0 %v6436_v52  ;;  %v6484_v32 = vcombine.high %v4833_v19, %v4837_v59  ;;  %v4775_v52 = vld [vmem:[#allocation26 + $0x100] sm:$0xff] }
 0x678   :  { %v6423_v49 = vcombine.low %v4775_v52, %v4779_v58  ;;  %v4823_v19 = vld [vmem:[#allocation26 + $0x280] sm:$0xff] }
 0x679   :  { %v4827_v59 = vld [vmem:[#allocation26 + $0x2a0] sm:$0xff] }
 0x67a   :  { %4711 = vmatpush1.bf16.msra.mxu1 %v6884_v44  ;;  %5646 = vmatpush1.bf16.msra.mxu0 %v6435_v25  ;;  %v4841_v44 = vld [vmem:[#allocation26 + $0x310] sm:$0xff]  ;;  %v6416_v25 = vcombine.high %v4767_v22, %v4771_v23 }
 0x67b   :  { %4712 = vmatprep.subr.bf16.mxu1 %v6889_v45  ;;  %5647 = vmatprep.subr.bf16.mxu0 %v6444_v26  ;;  %v4845_v45 = vld [vmem:[#allocation26 + $0x330] sm:$0xff]  ;;  %v4783_v26 = vld [vmem:[#allocation26 + $0x140] sm:$0xff] }
 0x67c   :  { %v6432_v50 = vcombine.high %v4783_v26, %v4787_v53  ;;  %v4865_v23 = vld [vmem:[#allocation26 + $0x3d0] sm:$0xff] }
 0x67e   :  { %4713 = vmatpush1.bf16.msra.mxu1 %v6887_v47  ;;  %5648 = vmatpush1.bf16.msra.mxu0 %v6443_v51  ;;  %v6491_v47 = vcombine.low %v4841_v44, %v4845_v45  ;;  %v6424_v51 = vcombine.high %v4775_v52, %v4779_v58 }
 0x67f   :  { %5553 = vmatprep.subr.bf16.mxu1 %v6392_v55  ;;  %5649 = vmatprep.subr.bf16.mxu0 %v6452_v29  ;;  %v6492_v55 = vcombine.high %v4841_v44, %v4845_v45  ;;  %v4831_v44 = vld [vmem:[#allocation26 + $0x2c0] sm:$0xff] }
 0x680   :  { %v4835_v45 = vld [vmem:[#allocation26 + $0x2e0] sm:$0xff] }
 0x682   :  { %5650 = vmatpush1.bf16.msra.mxu0 %v6451_v54  ;;  %v6431_v54 = vcombine.low %v4783_v26, %v4787_v53 }
 0x683   :  { %5651 = vmatprep.subr.bf16.mxu0 %v6460_v5  ;;  %v6448_v5 = vcombine.high %v4799_v30, %v4803_v31 }
 0x686   :  { %5652 = vmatpush1.bf16.msra.mxu0 %v6459_v33 }
 0x687   :  { %5653 = vmatprep.subr.bf16.mxu0 %v6468_v10  ;;  %v6456_v10 = vcombine.high %v4807_v34, %v4811_v36 }
 0x68a   :  { %5654 = vmatpush1.bf16.msra.mxu0 %v6467_v37  ;;  %v6447_v37 = vcombine.low %v4799_v30, %v4803_v31 }
 0x68b   :  { %5655 = vmatprep.subr.bf16.mxu0 %v6476_v41  ;;  %v6464_v41 = vcombine.high %v4815_v38, %v4819_v39 }
 0x68e   :  { %5656 = vmatpush1.bf16.msra.mxu0 %v6475_v40  ;;  %v6455_v40 = vcombine.low %v4807_v34, %v4811_v36  ;;  %v4752_v36 = vld [vmem:[#allocation26 + $0x48] sm:$0xff] }
 0x68f   :  { %5657 = vmatprep.subr.bf16.mxu0 %v6484_v32  ;;  %v6472_v32 = vcombine.high %v4823_v19, %v4827_v59 }
 0x692   :  { %5658 = vmatpush1.bf16.msra.mxu0 %v6483_v20  ;;  %v6463_v20 = vcombine.low %v4815_v38, %v4819_v39 }
 0x693   :  { %5659 = vmatprep.subr.bf16.mxu0 %v6492_v55  ;;  %v6480_v55 = vcombine.high %v4831_v44, %v4835_v45 }
 0x696   :  { %5660 = vmatpush1.bf16.msra.mxu0 %v6491_v47  ;;  %v6471_v47 = vcombine.low %v4823_v19, %v4827_v59 }
 0x697   :  { %5661 = vmatprep.subr.bf16.mxu0 %v6500_v42  ;;  %v6488_v42 = vcombine.high %v4839_v46, %v4843_v56 }
 0x69a   :  { %5662 = vmatpush1.bf16.msra.mxu0 %v6499_v57  ;;  %v6479_v57 = vcombine.low %v4831_v44, %v4835_v45 }
 0x734   :  { %v4582_v61 = vpop.f32.mrb[32].mxu1 }
 0x735   :  { %v4583_v28 = vadd.f32 %v6366_v60, %v4582_v61  ;;  %v6576_v63 = vpop.f32.mrb[33].mxu1  ;;  %v4847_v60 = vld [vmem:[#allocation26 + $0x340] sm:$0xff] }
 0x736   :  { %v4585_v9 = vpop.f32.mrb[34].mxu1  ;;  %v4851_v61 = vld [vmem:[#allocation26 + $0x360] sm:$0xff] }
 0x737   :  { %v4588_v2 = vmax.f32 %v4583_v28, 0.0  ;;  %v6577_v4 = vpop.f32.mrb[35].mxu1  ;;  %v6487_v28 = vcombine.low %v4839_v46, %v4843_v56  ;;  %v6496_v63 = vcombine.high %v4847_v60, %v4851_v61  ;;  %v6495_v9 = vcombine.low %v4847_v60, %v4851_v61 }
 0x738   :  { %v4857_v4 = vld [vmem:[#allocation26 + $0x390] sm:$0xff] }
 0x739   :  { %v4589_v6 = vpack.c.bf16 %v4588_v2, %v4588_v2  ;;  %v6504_v2 = vcombine.high %v4855_v0, %v4859_v1 }
 0x73b   :  { %4731 = vmatmul.mubr.bf16.vlgmr.msra.gmra.mrb[36].mxu1 %v4589_v6  ;;  %v4861_v6 = vld [vmem:[#allocation26 + $0x3b0] sm:$0xff] }
 0x73c   :  { %5554 = vmatpush1.bf16.msra.mxu1 %v6391_v43  ;;  %v4791_v43 = vld [vmem:[#allocation26 + $0x180] sm:$0xff]  ;;  %v6508_v14 = vcombine.high %v4857_v4, %v4861_v6  ;;  %v6507_v48 = vcombine.low %v4857_v4, %v4861_v6 }
 0x73d   :  { %5555 = vmatprep.subr.bf16.mxu1 %v6400_v11  ;;  %v6440_v29 = vcombine.high %v4791_v43, %v4795_v27  ;;  %v6439_v33 = vcombine.low %v4791_v43, %v4795_v27  ;;  %v6503_v11 = vcombine.low %v4855_v0, %v4859_v1  ;;  %v4800_v1 = vld [vmem:[#allocation26 + $0x1c8] sm:$0xff] }
 0x73e   :  { %5663 = vmatprep.subr.bf16.mxu0 %v6508_v14  ;;  %v4812_v14 = vld [vmem:[#allocation26 + $0x228] sm:$0xff] }
 0x73f   :  { %5664 = vmatpush1.bf16.msra.mxu0 %v6507_v48 }
 0x740   :  { %5556 = vmatpush1.bf16.msra.mxu1 %v6399_v18  ;;  %v4863_v18 = vld [vmem:[#allocation26 + $0x3c0] sm:$0xff] }
 0x741   :  { %5557 = vmatprep.subr.bf16.mxu1 %v6408_v21  ;;  %v4867_v21 = vld [vmem:[#allocation26 + $0x3e0] sm:$0xff] }
 0x742   :  { %v6512_v22 = vcombine.high %v4863_v18, %v4867_v21 }
 0x744   :  { %5558 = vmatpush1.bf16.msra.mxu1 %v6407_v24  ;;  %v4869_v24 = vld [vmem:[#allocation26 + $0x3f0] sm:$0xff] }
 0x745   :  { %5559 = vmatprep.subr.bf16.mxu1 %v6416_v25  ;;  %v6511_v25 = vcombine.low %v4863_v18, %v4867_v21  ;;  %v6516_v52 = vcombine.high %v4865_v23, %v4869_v24  ;;  %v6515_v58 = vcombine.low %v4865_v23, %v4869_v24  ;;  %v4816_v21 = vld [vmem:[#allocation26 + $0x248] sm:$0xff] }
 0x747   :  { %5665 = vmatprep.subr.bf16.mxu0 %v6516_v52  ;;  %v4828_v52 = vld [vmem:[#allocation26 + $0x2a8] sm:$0xff] }
 0x748   :  { %5560 = vmatpush1.bf16.msra.mxu1 %v6415_v15  ;;  %v4744_v15 = vld [vmem:[#allocation26 + $0x8] sm:$0xff]  ;;  %5666 = vmatpush1.bf16.msra.mxu0 %v6515_v58 }
 0x749   :  { %5561 = vmatprep.subr.bf16.mxu1 %v6424_v51  ;;  %v4748_v51 = vld [vmem:[#allocation26 + $0x28] sm:$0xff] }
 0x74a   :  { %v6394_v26 = vcombine.high %v4744_v15, %v4748_v51  ;;  %v6393_v53 = vcombine.low %v4744_v15, %v4748_v51  ;;  %v4832_v51 = vld [vmem:[#allocation26 + $0x2c8] sm:$0xff] }
 0x74c   :  { %5562 = vmatpush1.bf16.msra.mxu1 %v6423_v49  ;;  %v4606_v49 = vld [vmem:[#allocation24] sm:$0x3] }
 0x74d   :  { %5563 = vmatprep.subr.bf16.mxu1 %v6432_v50  ;;  %v4611_v50 = vrot.slane %v4606_v49, %v7751_v12  ;;  %v4615_v43 = vrot.slane %v4606_v49, %v7737_v8 }
 0x750   :  { %5564 = vmatpush1.bf16.msra.mxu1 %v6431_v54 }
 0x751   :  { %5565 = vmatprep.subr.bf16.mxu1 %v6440_v29 }
 0x754   :  { %5566 = vmatpush1.bf16.msra.mxu1 %v6439_v33 }
 0x755   :  { %5567 = vmatprep.subr.bf16.mxu1 %v6448_v5 }
 0x758   :  { %5568 = vmatpush1.bf16.msra.mxu1 %v6447_v37  ;;  %v4756_v37 = vld [vmem:[#allocation26 + $0x68] sm:$0xff] }
 0x759   :  { %5569 = vmatprep.subr.bf16.mxu1 %v6456_v10  ;;  %v6402_v39 = vcombine.high %v4752_v36, %v4756_v37  ;;  %v6401_v19 = vcombine.low %v4752_v36, %v4756_v37 }
 0x75c   :  { %5570 = vmatpush1.bf16.msra.mxu1 %v6455_v40  ;;  %v4760_v40 = vld [vmem:[#allocation26 + $0x88] sm:$0xff] }
 0x75d   :  { %5571 = vmatprep.subr.bf16.mxu1 %v6464_v41  ;;  %v4764_v41 = vld [vmem:[#allocation26 + $0xa8] sm:$0xff] }
 0x75e   :  { %v6410_v59 = vcombine.high %v4760_v40, %v4764_v41  ;;  %v6409_v44 = vcombine.low %v4760_v40, %v4764_v41  ;;  %v4868_v40 = vld [vmem:[#allocation26 + $0x3e8] sm:$0xff] }
 0x760   :  { %5572 = vmatpush1.bf16.msra.mxu1 %v6463_v20  ;;  %v4768_v20 = vld [vmem:[#allocation26 + $0xc8] sm:$0xff] }
 0x761   :  { %5573 = vmatprep.subr.bf16.mxu1 %v6472_v32  ;;  %v4772_v32 = vld [vmem:[#allocation26 + $0xe8] sm:$0xff] }
 0x762   :  { %v6418_v45 = vcombine.high %v4768_v20, %v4772_v32  ;;  %v6417_v46 = vcombine.low %v4768_v20, %v4772_v32  ;;  %v4750_v20 = vld [vmem:[#allocation26 + $0x38] sm:$0xff] }
 0x764   :  { %5574 = vmatpush1.bf16.msra.mxu1 %v6471_v47  ;;  %v4776_v47 = vld [vmem:[#allocation26 + $0x108] sm:$0xff] }
 0x765   :  { %5575 = vmatprep.subr.bf16.mxu1 %v6480_v55  ;;  %v4780_v55 = vld [vmem:[#allocation26 + $0x128] sm:$0xff] }
 0x766   :  { %v6426_v56 = vcombine.high %v4776_v47, %v4780_v55  ;;  %v6425_v60 = vcombine.low %v4776_v47, %v4780_v55  ;;  %v4758_v47 = vld [vmem:[#allocation26 + $0x78] sm:$0xff] }
 0x768   :  { %5576 = vmatpush1.bf16.msra.mxu1 %v6479_v57  ;;  %v4784_v57 = vld [vmem:[#allocation26 + $0x148] sm:$0xff] }
 0x769   :  { %5577 = vmatprep.subr.bf16.mxu1 %v6488_v42  ;;  %v4788_v42 = vld [vmem:[#allocation26 + $0x168] sm:$0xff] }
 0x76a   :  { %v6434_v61 = vcombine.high %v4784_v57, %v4788_v42 }
 0x76c   :  { %5578 = vmatpush1.bf16.msra.mxu1 %v6487_v28  ;;  %v4792_v28 = vld [vmem:[#allocation26 + $0x188] sm:$0xff] }
 0x76d   :  { %5579 = vmatprep.subr.bf16.mxu1 %v6496_v63  ;;  %v4796_v63 = vld [vmem:[#allocation26 + $0x1a8] sm:$0xff] }
 0x76e   :  { %v6442_v0 = vcombine.high %v4792_v28, %v4796_v63  ;;  %v6441_v4 = vcombine.low %v4792_v28, %v4796_v63  ;;  %v4774_v28 = vld [vmem:[#allocation26 + $0xf8] sm:$0xff] }
 0x770   :  { %5580 = vmatpush1.bf16.msra.mxu1 %v6495_v9  ;;  %v6433_v9 = vcombine.low %v4784_v57, %v4788_v42  ;;  %v4766_v57 = vld [vmem:[#allocation26 + $0xb8] sm:$0xff] }
 0x771   :  { %5581 = vmatprep.subr.bf16.mxu1 %v6504_v2  ;;  %v4804_v2 = vld [vmem:[#allocation26 + $0x1e8] sm:$0xff] }
 0x772   :  { %v6450_v6 = vcombine.high %v4800_v1, %v4804_v2  ;;  %v6449_v48 = vcombine.low %v4800_v1, %v4804_v2  ;;  %v4782_v1 = vld [vmem:[#allocation26 + $0x138] sm:$0xff] }
 0x774   :  { %5582 = vmatpush1.bf16.msra.mxu1 %v6503_v11  ;;  %v4808_v11 = vld [vmem:[#allocation26 + $0x208] sm:$0xff] }
 0x775   :  { %5583 = vmatprep.subr.bf16.mxu1 %v6512_v22  ;;  %v6458_v18 = vcombine.high %v4808_v11, %v4812_v14  ;;  %v4820_v22 = vld [vmem:[#allocation26 + $0x268] sm:$0xff]  ;;  %v6457_v23 = vcombine.low %v4808_v11, %v4812_v14  ;;  %v4790_v11 = vld [vmem:[#allocation26 + $0x178] sm:$0xff] }
 0x776   :  { %v6466_v24 = vcombine.high %v4816_v21, %v4820_v22  ;;  %v6465_v58 = vcombine.low %v4816_v21, %v4820_v22 }
 0x778   :  { %5584 = vmatpush1.bf16.msra.mxu1 %v6511_v25  ;;  %v4824_v25 = vld [vmem:[#allocation26 + $0x288] sm:$0xff] }
 0x779   :  { %5594 = vmatprep.subr.bf16.mxu1 %v6394_v26  ;;  %v6474_v15 = vcombine.high %v4824_v25, %v4828_v52  ;;  %v4836_v26 = vld [vmem:[#allocation26 + $0x2e8] sm:$0xff] }
 0x77a   :  { %v6482_v49 = vcombine.high %v4832_v51, %v4836_v26 }
 0x80e   :  { %v4732_v27 = vpop.f32.mrb[36].mxu1 }
 0x80f   :  { %v4733_v54 = vadd.f32 %v4732_v27, %v4611_v50  ;;  %v4734_v29 = vpop.f32.mrb[37].mxu1  ;;  %v4840_v50 = vld [vmem:[#allocation26 + $0x308] sm:$0xff]  ;;  %v6481_v27 = vcombine.low %v4832_v51, %v4836_v26 }
 0x810   :  { %v4735_v30 = vadd.f32 %v4734_v29, %v4615_v43  ;;  %v4736_v31 = vpop.f32.mrb[38].mxu1  ;;  %v4844_v43 = vld [vmem:[#allocation26 + $0x328] sm:$0xff] }
 0x811   :  { %v4739_v33 = vmax.f32 %v4733_v54, 0.0  ;;  %v4737_v5 = vpop.f32.mrb[39].mxu1  ;;  %v6490_v54 = vcombine.high %v4840_v50, %v4844_v43  ;;  %v4848_v29 = vld [vmem:[#allocation26 + $0x348] sm:$0xff]  ;;  %v6489_v31 = vcombine.low %v4840_v50, %v4844_v43 }
 0x812   :  { %v4740_v34 = vmax.f32 %v4735_v30, 0.0  ;;  %v4852_v30 = vld [vmem:[#allocation26 + $0x368] sm:$0xff] }
 0x813   :  { %v7814_v38 = vpack.c.bf16 %v4739_v33, %v4739_v33  ;;  %v6498_v33 = vcombine.high %v4848_v29, %v4852_v30  ;;  %v4856_v5 = vld [vmem:[#allocation26 + $0x388] sm:$0xff]  ;;  %v6497_v36 = vcombine.low %v4848_v29, %v4852_v30 }
 0x814   :  { %v7812_v10 = vpack.c.bf16 %v4740_v34, %v4740_v34  ;;  %v4860_v34 = vld [vmem:[#allocation26 + $0x3a8] sm:$0xff] }
 0x815   :  { %v6506_v37 = vcombine.high %v4856_v5, %v4860_v34  ;;  %v6505_v41 = vcombine.low %v4856_v5, %v4860_v34 }
 0x816   :  { %5585 = vmatprep.mubr.bf16.mxu1 %v7812_v10  ;;  %5667 = vmatprep.mubr.bf16.mxu0 %v7812_v10 }
 0x817   :  { %5586 = vmatmul.mubr.bf16.vlgmr.msra.gmra.mrb[40].mxu1 %v7814_v38  ;;  %5668 = vmatmul.mubr.bf16.vlgmr.msra.gmra.mrb[28].mxu0 %v7814_v38 }
 0x818   :  { %5595 = vmatpush1.bf16.msra.mxu1 %v6393_v53  ;;  %5626 = vmatprep.mubr.bf16.mxu1 %v7812_v10  ;;  %v6473_v53 = vcombine.low %v4824_v25, %v4828_v52 }
 0x819   :  { %5596 = vmatprep.subr.bf16.mxu1 %v6402_v39  ;;  %v4864_v39 = vld [vmem:[#allocation26 + $0x3c8] sm:$0xff] }
 0x81a   :  { %v6513_v32 = vcombine.low %v4864_v39, %v4868_v40 }
 0x81c   :  { %5597 = vmatpush1.bf16.msra.mxu1 %v6401_v19  ;;  %v6514_v19 = vcombine.high %v4864_v39, %v4868_v40 }
 0x81d   :  { %5598 = vmatprep.subr.bf16.mxu1 %v6410_v59  ;;  %v4746_v59 = vld [vmem:[#allocation26 + $0x18] sm:$0xff] }
 0x81e   :  { %v6397_v55 = vcombine.low %v4746_v59, %v4750_v20 }
 0x820   :  { %5599 = vmatpush1.bf16.msra.mxu1 %v6409_v44  ;;  %v6398_v44 = vcombine.high %v4746_v59, %v4750_v20 }
 0x821   :  { %5600 = vmatprep.subr.bf16.mxu1 %v6418_v45  ;;  %v4754_v45 = vld [vmem:[#allocation26 + $0x58] sm:$0xff] }
 0x822   :  { %v6405_v42 = vcombine.low %v4754_v45, %v4758_v47 }
 0x824   :  { %5601 = vmatpush1.bf16.msra.mxu1 %v6417_v46  ;;  %v6406_v46 = vcombine.high %v4754_v45, %v4758_v47 }
 0x825   :  { %5602 = vmatprep.subr.bf16.mxu1 %v6426_v56  ;;  %v4762_v56 = vld [vmem:[#allocation26 + $0x98] sm:$0xff] }
 0x826   :  { %v6413_v63 = vcombine.low %v4762_v56, %v4766_v57 }
 0x828   :  { %5603 = vmatpush1.bf16.msra.mxu1 %v6425_v60  ;;  %v6414_v60 = vcombine.high %v4762_v56, %v4766_v57 }
 0x829   :  { %5604 = vmatprep.subr.bf16.mxu1 %v6434_v61  ;;  %v4770_v61 = vld [vmem:[#allocation26 + $0xd8] sm:$0xff] }
 0x82a   :  { %v6421_v2 = vcombine.low %v4770_v61, %v4774_v28 }
 0x82c   :  { %5605 = vmatpush1.bf16.msra.mxu1 %v6433_v9  ;;  %v6422_v9 = vcombine.high %v4770_v61, %v4774_v28 }
 0x82d   :  { %5606 = vmatprep.subr.bf16.mxu1 %v6442_v0  ;;  %v4778_v0 = vld [vmem:[#allocation26 + $0x118] sm:$0xff] }
 0x82e   :  { %v6429_v14 = vcombine.low %v4778_v0, %v4782_v1 }
 0x830   :  { %5607 = vmatpush1.bf16.msra.mxu1 %v6441_v4  ;;  %v6430_v4 = vcombine.high %v4778_v0, %v4782_v1 }
 0x831   :  { %5608 = vmatprep.subr.bf16.mxu1 %v6450_v6  ;;  %v4786_v6 = vld [vmem:[#allocation26 + $0x158] sm:$0xff] }
 0x832   :  { %v6437_v21 = vcombine.low %v4786_v6, %v4790_v11 }
 0x834   :  { %5609 = vmatpush1.bf16.msra.mxu1 %v6449_v48  ;;  %v4794_v48 = vld [vmem:[#allocation26 + $0x198] sm:$0xff] }
 0x835   :  { %5610 = vmatprep.subr.bf16.mxu1 %v6458_v18  ;;  %v4798_v18 = vld [vmem:[#allocation26 + $0x1b8] sm:$0xff] }
 0x836   :  { %v6446_v22 = vcombine.high %v4794_v48, %v4798_v18  ;;  %v6445_v25 = vcombine.low %v4794_v48, %v4798_v18 }
 0x838   :  { %5611 = vmatpush1.bf16.msra.mxu1 %v6457_v23  ;;  %v4802_v23 = vld [vmem:[#allocation26 + $0x1d8] sm:$0xff] }
 0x839   :  { %5612 = vmatprep.subr.bf16.mxu1 %v6466_v24  ;;  %v4806_v24 = vld [vmem:[#allocation26 + $0x1f8] sm:$0xff] }
 0x83a   :  { %v6454_v52 = vcombine.high %v4802_v23, %v4806_v24  ;;  %v6453_v51 = vcombine.low %v4802_v23, %v4806_v24 }
 0x83c   :  { %5613 = vmatpush1.bf16.msra.mxu1 %v6465_v58  ;;  %v4810_v58 = vld [vmem:[#allocation26 + $0x218] sm:$0xff] }
 0x83d   :  { %5614 = vmatprep.subr.bf16.mxu1 %v6474_v15  ;;  %v4814_v15 = vld [vmem:[#allocation26 + $0x238] sm:$0xff] }
 0x83e   :  { %v6462_v26 = vcombine.high %v4810_v58, %v4814_v15  ;;  %v6461_v50 = vcombine.low %v4810_v58, %v4814_v15 }
 0x840   :  { %5615 = vmatpush1.bf16.msra.mxu1 %v6473_v53  ;;  %v4818_v53 = vld [vmem:[#allocation26 + $0x258] sm:$0xff] }
 0x841   :  { %5616 = vmatprep.subr.bf16.mxu1 %v6482_v49  ;;  %v4822_v49 = vld [vmem:[#allocation26 + $0x278] sm:$0xff] }
 0x842   :  { %v6470_v43 = vcombine.high %v4818_v53, %v4822_v49  ;;  %v6469_v29 = vcombine.low %v4818_v53, %v4822_v49 }
 0x844   :  { %5617 = vmatpush1.bf16.msra.mxu1 %v6481_v27  ;;  %v4826_v27 = vld [vmem:[#allocation26 + $0x298] sm:$0xff] }
 0x845   :  { %5618 = vmatprep.subr.bf16.mxu1 %v6490_v54  ;;  %v4830_v54 = vld [vmem:[#allocation26 + $0x2b8] sm:$0xff] }
 0x846   :  { %v6478_v30 = vcombine.high %v4826_v27, %v4830_v54  ;;  %v6477_v5 = vcombine.low %v4826_v27, %v4830_v54 }
 0x848   :  { %5619 = vmatpush1.bf16.msra.mxu1 %v6489_v31  ;;  %v4834_v31 = vld [vmem:[#allocation26 + $0x2d8] sm:$0xff] }
 0x849   :  { %5620 = vmatprep.subr.bf16.mxu1 %v6498_v33  ;;  %v4838_v33 = vld [vmem:[#allocation26 + $0x2f8] sm:$0xff] }
 0x84a   :  { %v6486_v34 = vcombine.high %v4834_v31, %v4838_v33  ;;  %v6485_v39 = vcombine.low %v4834_v31, %v4838_v33 }
 0x84c   :  { %5621 = vmatpush1.bf16.msra.mxu1 %v6497_v36  ;;  %v4842_v36 = vld [vmem:[#allocation26 + $0x318] sm:$0xff] }
 0x84d   :  { %5622 = vmatprep.subr.bf16.mxu1 %v6506_v37  ;;  %v4846_v37 = vld [vmem:[#allocation26 + $0x338] sm:$0xff] }
 0x84e   :  { %v6494_v40 = vcombine.high %v4842_v36, %v4846_v37  ;;  %v6493_v59 = vcombine.low %v4842_v36, %v4846_v37 }
 0x850   :  { %5623 = vmatpush1.bf16.msra.mxu1 %v6505_v41  ;;  %v4850_v41 = vld [vmem:[#allocation26 + $0x358] sm:$0xff] }
 0x851   :  { %5624 = vmatprep.subr.bf16.mxu1 %v6514_v19  ;;  %v4854_v19 = vld [vmem:[#allocation26 + $0x378] sm:$0xff] }
 0x852   :  { %v6502_v20 = vcombine.high %v4850_v41, %v4854_v19  ;;  %v6501_v45 = vcombine.low %v4850_v41, %v4854_v19 }
 0x854   :  { %5625 = vmatpush1.bf16.msra.mxu1 %v6513_v32  ;;  %v4858_v32 = vld [vmem:[#allocation26 + $0x398] sm:$0xff] }
 0x855   :  { %5676 = vmatprep.subr.bf16.mxu1 %v6398_v44  ;;  %v4862_v44 = vld [vmem:[#allocation26 + $0x3b8] sm:$0xff] }
 0x856   :  { %v6510_v47 = vcombine.high %v4858_v32, %v4862_v44  ;;  %v6509_v56 = vcombine.low %v4858_v32, %v4862_v44 }
 0x857   :  { %5627 = vmatmul.mubr.bf16.vlgmr.msra.gmra.mrb[44].mxu1 %v7814_v38 }
 0x858   :  { %5677 = vmatpush1.bf16.msra.mxu1 %v6397_v55  ;;  %5708 = vmatprep.mubr.bf16.mxu1 %v7812_v10  ;;  %v6438_v10 = vcombine.high %v4786_v6, %v4790_v11  ;;  %v4866_v55 = vld [vmem:[#allocation26 + $0x3d8] sm:$0xff] }
 0x859   :  { %5678 = vmatprep.subr.bf16.mxu1 %v6406_v46  ;;  %v4870_v46 = vld [vmem:[#allocation26 + $0x3f8] sm:$0xff] }
 0x85a   :  { %v6518_v57 = vcombine.high %v4866_v55, %v4870_v46 }
 0x85c   :  { %5679 = vmatpush1.bf16.msra.mxu1 %v6405_v42  ;;  %v6517_v42 = vcombine.low %v4866_v55, %v4870_v46 }
 0x85d   :  { %5680 = vmatprep.subr.bf16.mxu1 %v6414_v60  ;;  %v7824_v60 = vld [vmem:[#allocation27] sm:$0xff] }
 0x85e   :  { %v4876_v61 = vrot.slane %v7824_v60, %v7751_v12  ;;  %v4892_v28 = vrot.slane %v7824_v60, %v3150_v7 }
 0x860   :  { %5681 = vmatpush1.bf16.msra.mxu1 %v6413_v63  ;;  %v4880_v63 = vrot.slane %v7824_v60, %v7737_v8 }
 0x861   :  { %5682 = vmatprep.subr.bf16.mxu1 %v6422_v9  ;;  %v4896_v9 = vrot.slane %v7824_v60, %v3154_v16 }
 0x864   :  { %5683 = vmatpush1.bf16.msra.mxu1 %v6421_v2 }
 0x865   :  { %5684 = vmatprep.subr.bf16.mxu1 %v6430_v4 }
 0x868   :  { %5685 = vmatpush1.bf16.msra.mxu1 %v6429_v14 }
 0x869   :  { %5686 = vmatprep.subr.bf16.mxu1 %v6438_v10 }
 0x86c   :  { %5687 = vmatpush1.bf16.msra.mxu1 %v6437_v21 }
 0x86d   :  { %5688 = vmatprep.subr.bf16.mxu1 %v6446_v22 }
 0x870   :  { %5689 = vmatpush1.bf16.msra.mxu1 %v6445_v25 }
 0x871   :  { %5690 = vmatprep.subr.bf16.mxu1 %v6454_v52 }
 0x874   :  { %5691 = vmatpush1.bf16.msra.mxu1 %v6453_v51 }
 0x875   :  { %5692 = vmatprep.subr.bf16.mxu1 %v6462_v26 }
 0x878   :  { %5693 = vmatpush1.bf16.msra.mxu1 %v6461_v50 }
 0x879   :  { %5694 = vmatprep.subr.bf16.mxu1 %v6470_v43 }
 0x87c   :  { %5695 = vmatpush1.bf16.msra.mxu1 %v6469_v29 }
 0x87d   :  { %5696 = vmatprep.subr.bf16.mxu1 %v6478_v30 }
 0x880   :  { %5697 = vmatpush1.bf16.msra.mxu1 %v6477_v5 }
 0x881   :  { %5698 = vmatprep.subr.bf16.mxu1 %v6486_v34 }
 0x884   :  { %5699 = vmatpush1.bf16.msra.mxu1 %v6485_v39 }
 0x885   :  { %5700 = vmatprep.subr.bf16.mxu1 %v6494_v40 }
 0x888   :  { %5701 = vmatpush1.bf16.msra.mxu1 %v6493_v59 }
 0x889   :  { %5702 = vmatprep.subr.bf16.mxu1 %v6502_v20 }
 0x88c   :  { %5703 = vmatpush1.bf16.msra.mxu1 %v6501_v45 }
 0x88d   :  { %5704 = vmatprep.subr.bf16.mxu1 %v6510_v47 }
 0x890   :  { %5705 = vmatpush1.bf16.msra.mxu1 %v6509_v56 }
 0x891   :  { %5706 = vmatprep.subr.bf16.mxu1 %v6518_v57 }
 0x894   :  { %5707 = vmatpush1.bf16.msra.mxu1 %v6517_v42 }
 0x897   :  { %5709 = vmatmul.mubr.bf16.vlgmr.msra.gmra.mrb[48].mxu1 %v7814_v38 }
 0x8ea   :  { %v5587_v0 = vpop.f32.mrb[40].mxu1  ;;  %v5669_v1 = vpop.f32.mrb[28].mxu0 }
 0x8eb   :  { %v5588_v2 = vadd.f32 %v5587_v0, %v4876_v61  ;;  %v5670_v38 = vadd.f32 %v5669_v1, %v4892_v28  ;;  %v5589_v4 = vpop.f32.mrb[41].mxu1  ;;  %v5671_v6 = vpop.f32.mrb[29].mxu0 }
 0x8ec   :  { %v5590_v11 = vadd.f32 %v5589_v4, %v4880_v63  ;;  %v5672_v14 = vadd.f32 %v5671_v6, %v4896_v9  ;;  %v5591_v12 = vpop.f32.mrb[42].mxu1  ;;  %v5673_v10 = vpop.f32.mrb[30].mxu0 }
 0x8ed   :  { %v5717_v48 = vmax.f32 %v5588_v2, 0.0  ;;  %v5721_v18 = vmax.f32 %v5670_v38, 0.0  ;;  %v5592_v7 = vpop.f32.mrb[43].mxu1  ;;  %v5674_v21 = vpop.f32.mrb[31].mxu0 }
 0x8ee   :  { %v5718_v22 = vmax.f32 %v5590_v11, 0.0  ;;  %v5722_v8 = vmax.f32 %v5672_v14, 0.0 }
 0x8f0   :  { %v6523_v23 = vpack.c.bf16 %v5718_v22, %v5717_v48  ;;  %v6525_v24 = vpack.c.bf16 %v5722_v8, %v5721_v18 }
 0x8f2   :  { %5759 = vst [vmem:[#allocation32] sm:$0xff] %v6523_v23  ;;  %5761 = vst [vmem:[#allocation32 + $0x10] sm:$0xff] %v6525_v24 }
 0x8f3   :  { %7255 = shalt.err (!%p7252_p6)
}
 0x8f4   :  { %s7256_s25 = scalar_lea.hbm %s7901_s17, 128 }
 0x8f5   :  { %p7257_p7 = scmp.ne.s32.totalorder %s7901_s17, %s7256_s25  ;;  %p7260_p8 = scmp.lt.u32.totalorder %s7256_s25, %s7901_s17 }
 0x8f7   :  { %p7262_p9 = pnand %p7260_p8, %p7257_p7 }
 0x8f9   :  { %7265 = shalt.err (!%p7262_p9)
}
 0x8fa   :  { %5782 = dma.vmem_to_hbm [thread:$0]  %s5780_s24, 128, %s7901_s17, [#allocation31]  }
 0x8fb   :  { %s7266_s19 = scalar_lea.vmem %s5770_s0, 128  ;;  %p7271_p11 = scmp.lt.s32.totalorder %s5770_s0, %s5770_s0 }
 0x8fc   :  { %p7267_p10 = scmp.ne.s32.totalorder %s5770_s0, %s7266_s19  ;;  %p7272_p12 = scmp.lt.s32.totalorder %s7266_s19, %s7266_s19 }
 0x8fe   :  { %p7273_p13 = por %p7272_p12, %p7271_p11 }
 0x900   :  { %p7274_p0 = pnand %p7273_p13, %p7267_p10 }
 0x902   :  { %7277 = shalt.err (!%p7274_p0)
}
 0x903   :  { %s7916_s22 = sld [smem:[#allocation47_spill]] }
 0x909   :  { %s7278_s1 = scalar_lea.hbm %s7916_s22, 128 }
 0x90a   :  { %p7279_p1 = scmp.ne.s32.totalorder %s7916_s22, %s7278_s1  ;;  %p7282_p2 = scmp.lt.u32.totalorder %s7278_s1, %s7916_s22 }
 0x90c   :  { %p7284_p3 = pnand %p7282_p2, %p7279_p1 }
 0x90e   :  { %7287 = shalt.err (!%p7284_p3)
}
 0x90f   :  { %5772 = dma.vmem_to_hbm [thread:$0]  %s5770_s0, 128, %s7916_s22, [#allocation5]   ;;  %v4884_v16 = vrot.slane %v7824_v60, %v3142_v13  ;;  %v4888_v25 = vrot.slane %v7824_v60, %v3146_v17  ;;  %v4900_v27 = vrot.slane %v7824_v60, %v3158_v3  ;;  %v4904_v13 = vrot.slane %v7824_v60, %v3162_v35 }
 0x910   :  { %s7359_s3 = smov [#allocation32]  }
 0x911   :  { %s5789_s6 = sshll.u32 %s7359_s3, 4  ;;  %s5790_s6 = int_to_ptr.vmem [resolvable:$true] %s5789_s6 }
 0x912   :  { %s7288_s18 = scalar_lea.vmem %s5790_s6, 512  ;;  %p7293_p5 = scmp.lt.s32.totalorder %s5790_s6, %s5790_s6 }
 0x913   :  { %p7289_p4 = scmp.ne.s32.totalorder %s5790_s6, %s7288_s18  ;;  %p7294_p6 = scmp.lt.s32.totalorder %s7288_s18, %s7288_s18 }
 0x915   :  { %p7295_p7 = por %p7294_p6, %p7293_p5 }
 0x917   :  { %p7296_p8 = pnand %p7295_p7, %p7289_p4 }
 0x92a   :  { %v5628_v52 = vpop.f32.mrb[44].mxu1 }
 0x92b   :  { %v5629_v58 = vadd.f32 %v5628_v52, %v4884_v16  ;;  %v5630_v15 = vpop.f32.mrb[45].mxu1 }
 0x92c   :  { %v5631_v51 = vadd.f32 %v5630_v15, %v4888_v25  ;;  %v5632_v26 = vpop.f32.mrb[46].mxu1 }
 0x92d   :  { %v5719_v53 = vmax.f32 %v5629_v58, 0.0  ;;  %v5633_v49 = vpop.f32.mrb[47].mxu1 }
 0x92e   :  { %v5720_v50 = vmax.f32 %v5631_v51, 0.0 }
 0x930   :  { %v6524_v43 = vpack.c.bf16 %v5720_v50, %v5719_v53 }
 0x932   :  { %5760 = vst [vmem:[#allocation32 + $0x8] sm:$0xff] %v6524_v43 }
 0x96a   :  { %v5710_v54 = vpop.f32.mrb[48].mxu1 }
 0x96b   :  { %v5711_v17 = vadd.f32 %v5710_v54, %v4900_v27  ;;  %v5712_v29 = vpop.f32.mrb[49].mxu1 }
 0x96c   :  { %v5713_v30 = vadd.f32 %v5712_v29, %v4904_v13  ;;  %v5714_v31 = vpop.f32.mrb[50].mxu1 }
 0x96d   :  { %v5723_v33 = vmax.f32 %v5711_v17, 0.0  ;;  %v5715_v5 = vpop.f32.mrb[51].mxu1 }
 0x96e   :  { %v5724_v34 = vmax.f32 %v5713_v30, 0.0 }
 0x970   :  { %v6526_v36 = vpack.c.bf16 %v5724_v34, %v5723_v33 }
 0x972   :  { %5762 = vst [vmem:[#allocation32 + $0x18] sm:$0xff] %v6526_v36 }
 0x973   :  { %7299 = shalt.err (!%p7296_p8)
}
 0x974   :  { %s7917_s23 = sld [smem:[#allocation48_spill]] }
 0x97a   :  { %s7300_s15 = scalar_lea.hbm %s7917_s23, 512 }
 0x97b   :  { %p7301_p9 = scmp.ne.s32.totalorder %s7917_s23, %s7300_s15  ;;  %p7304_p10 = scmp.lt.u32.totalorder %s7300_s15, %s7917_s23 }
 0x97d   :  { %p7306_p11 = pnand %p7304_p10, %p7301_p9 }
 0x97f   :  { %7309 = shalt.err (!%p7306_p11)
}
 0x980   :  { %5792 = dma.vmem_to_hbm [thread:$0]  %s5790_s6, 512, %s7917_s23, [#allocation31]  }
 0x981   :  { %7328 = dma.done.wait [#allocation5], 128  }
 0x982   :  { %7329 = vsyncadd [#allocation5], 4294967168 }
 0x983   :  { %7330 = dma.done.wait [#allocation31], 640  }
 0x984   :  { %7331 = vsyncadd [#allocation31], 4294966656 }
 0x985   :  { %5802 = vsyncpa [#allocation4], 1 }
 0x986   :  { %5803 = vsyncpa [#allocation7], 1 }
 0x987   :  { %5804 = vsyncpa [#allocation10], 1 }
 0x988   :  { %5805 = vsyncpa [#allocation13], 1 }
 0x989   :  { %5806 = vsyncpa [#allocation16], 1 }
 0x98a   :  { %5807 = vsyncpa [#allocation19], 1 }
 0x98b   :  { %5808 = vsyncpa [#allocation22], 1 }
 0x98c   :  { %5809 = vsyncpa [#allocation25], 1 }
 0x98d   :  { %5810 = vsyncpa [#allocation28], 1 }
 0x98e   :  { %5811 = vsyncpa [#allocation5], 1 }
 0x98f   :  { %5812 = vsyncpa [#allocation31], 1 }

</bundles_post_ra>
